<compile_context>
chip_gen: v7x
topology: tpu7x:2x2x1
jax: 0.10.0
libtpu: 0.0.40
codegen_flags: <defaults>
</compile_context>

<pallas_src>
import functools

import jax
import jax.numpy as jnp
from jax import lax
from jax.experimental import pallas as pl
from jax.experimental.pallas import tpu as pltpu


_ACT_DTYPE = jnp.bfloat16   # inter-layer activation / gx storage dtype
_GATE_ORDER = (0, 1, 3, 2)  # repack PyTorch (i, f, g, o) -> (i, f, o, g)


def _round_up(x, m):
    return (x + m - 1) // m * m


def _choose_batch_block(b_pad):
    """Fill the MXU M dimension with the whole padded batch; split into two
    shards (one per v7x TensorCore) only when each shard keeps >=128 rows."""
    if b_pad >= 256 and (b_pad // 2) % 8 == 0:
        return b_pad // 2
    return b_pad


def _vmem_limit_bytes(T, b_blk, e_pad, h_pad, o_pad, n_layers, n_act):
    """Explicit scoped-VMEM budget (capped at v7x's 64 MiB physical)."""
    bf2, f4 = 2, 4
    est = 2 * T * b_blk * e_pad * bf2                        # x block (2 bufs)
    for l in range(n_layers):
        d_in = e_pad if l == 0 else h_pad
        est += 2 * (d_in * 4 * h_pad * bf2                   # w_ih
                    + h_pad * 4 * h_pad * bf2                # w_hh
                    + 4 * h_pad * f4)                        # bias
    est += 2 * (h_pad * o_pad * bf2 + o_pad * f4)            # fc weights
    est += 2 * 4 * n_layers * b_blk * h_pad * f4             # h0/c0 + hn/cn
    est += 2 * b_blk * o_pad * f4                            # out
    est += T * b_blk * 4 * h_pad * bf2                       # gx scratch (bf16)
    est += n_act * T * b_blk * h_pad * bf2                   # inter-layer acts
    return int(min(max(2 * est, 32 << 20), 64 << 20))


# ----------------------------------------------------------------------------
# Fused Pallas kernel: stacked LSTM (time recurrence) + FC + sigmoid
# ----------------------------------------------------------------------------
def _fused_sentiment_lstm_kernel(*refs, n_layers, seq_len, b_blk, h_pad):
    """Inputs  : x (T,Bb,E_pad) bf16, per-layer [w_ih (D,4H) bf16,
                 w_hh (H,4H) bf16, b (1,4H) f32], fc_w (H,O_pad) bf16,
                 fc_b (1,O_pad) f32, h0 (L,Bb,H) f32, c0 (L,Bb,H) f32.
       Outputs : out (Bb,O_pad) f32, h_n (L,Bb,H) f32, c_n (L,Bb,H) f32.
       Scratch : gx (T,Bb,4H) bf16, inter-layer act buffers (T,Bb,H) bf16.
       Gate blocks are 128-lane aligned in repacked (i, f, o, g) order."""
    T, H = seq_len, h_pad
    n_in = 1 + 3 * n_layers + 4

    x_ref = refs[0]
    layer_refs = refs[1:1 + 3 * n_layers]
    fcw_ref, fcb_ref, h0_ref, c0_ref = refs[1 + 3 * n_layers:n_in]
    out_ref, hn_ref, cn_ref = refs[n_in:n_in + 3]
    gx_ref = refs[n_in + 3]
    act_refs = refs[n_in + 4:]

    unroll = min(8, T)   # bounded unroll: LLO visibility without vreg blowup

    def run_layer(layer, in_ref, y_ref):
        w_ih_ref = layer_refs[3 * layer]        # (D_in, 4H) bf16  (VMEM ref)
        w_hh_ref = layer_refs[3 * layer + 1]    # (H, 4H)    bf16  (VMEM ref)
        bias = layer_refs[3 * layer + 2][...]   # (1, 4H)    f32   (tiny)

        # Hoisted input projection: ONE big (T*Bb, D_in) @ (D_in, 4H) matmul.
        x_seq = in_ref[...]                     # (T, Bb, D_in) bf16
        d_in = x_seq.shape[-1]
        gx = jnp.dot(x_seq.reshape(T * b_blk, d_in), w_ih_ref[...],
                     preferred_element_type=jnp.float32)
        gx_ref[...] = (gx.reshape(T, b_blk, 4 * H) + bias).astype(gx_ref.dtype)

        def step(t, carry):
            h_f32, h_bf, c = carry
            # w_hh stays VMEM-resident: per-step vld streams into the MXU
            # instead of pinning the whole weight matrix in vregs.
            gates = (gx_ref[t].astype(jnp.float32)
                     + jnp.dot(h_bf, w_hh_ref[...],
                               preferred_element_type=jnp.float32))
            # Repacked gate order (i, f, o, g): one sigmoid over 3 blocks,
            # one tanh over the last block (3 EUP issues / step).
            sig = jax.nn.sigmoid(gates[:, :3 * H])
            i_g = sig[:, 0 * H:1 * H]
            f_g = sig[:, 1 * H:2 * H]
            o_g = sig[:, 2 * H:3 * H]
            g_g = jnp.tanh(gates[:, 3 * H:4 * H])
            c_new = f_g * c + i_g * g_g
            h_new = o_g * jnp.tanh(c_new)
            h_new_bf = h_new.astype(_ACT_DTYPE)   # single cast, reused twice
            if y_ref is not None:                 # top layer never writes y
                y_ref[t] = h_new_bf
            return (h_new, h_new_bf, c_new)

        h0 = h0_ref[layer]
        carry0 = (h0, h0.astype(_ACT_DTYPE), c0_ref[layer])
        h_fin, h_fin_bf, c_fin = lax.fori_loop(0, T, step, carry0,
                                               unroll=unroll)
        hn_ref[layer] = h_fin
        cn_ref[layer] = c_fin
        return h_fin_bf

    cur_in = x_ref
    h_top_bf = None
    for layer in range(n_layers):
        is_top = layer == n_layers - 1
        y_ref = None if is_top else act_refs[layer % len(act_refs)]
        h_top_bf = run_layer(layer, cur_in, y_ref)
        cur_in = y_ref

    # Fused dropout(eval)=identity -> FC -> sigmoid on the final hidden state
    # only: out.view(B,-1)[:, -1] depends solely on h_{T-1} of the top layer.
    logits = jnp.dot(h_top_bf, fcw_ref[...],
                     preferred_element_type=jnp.float32) + fcb_ref[...]
    out_ref[...] = jax.nn.sigmoid(logits)


def _fused_forward_call(x_tm, layer_params, fc_w, fc_b, h0, c0, *,
                        n_layers, seq_len, b_pad, e_pad, h_pad, o_pad):
    T = seq_len
    b_blk = _choose_batch_block(b_pad)
    n_shards = b_pad // b_blk
    n_act = min(2, max(n_layers - 1, 0))          # ping-pong inter-layer bufs

    kernel = functools.partial(
        _fused_sentiment_lstm_kernel,
        n_layers=n_layers, seq_len=T, b_blk=b_blk, h_pad=h_pad)

    def rep2(shape):                              # replicated (weights/bias)
        return pl.BlockSpec(shape, lambda i: (0, 0))

    def batch3(s0, s2):                           # sharded over batch
        return pl.BlockSpec((s0, b_blk, s2), lambda i: (0, i, 0))

    in_specs = [batch3(T, e_pad)]
    flat_layer_params = []
    for (wih, whh, b) in layer_params:
        in_specs += [rep2(wih.shape), rep2(whh.shape), rep2(b.shape)]
        flat_layer_params += [wih, whh, b]
    in_specs += [rep2(fc_w.shape), rep2(fc_b.shape),
                 batch3(n_layers, h_pad), batch3(n_layers, h_pad)]

    out_shape = (
        jax.ShapeDtypeStruct((b_pad, o_pad), jnp.float32),
        jax.ShapeDtypeStruct((n_layers, b_pad, h_pad), jnp.float32),
        jax.ShapeDtypeStruct((n_layers, b_pad, h_pad), jnp.float32),
    )
    out_specs = (
        pl.BlockSpec((b_blk, o_pad), lambda i: (i, 0)),
        batch3(n_layers, h_pad),
        batch3(n_layers, h_pad),
    )

    scratch_shapes = (
        [pltpu.VMEM((T, b_blk, 4 * h_pad), _ACT_DTYPE)]          # gx (bf16)
        + [pltpu.VMEM((T, b_blk, h_pad), _ACT_DTYPE)] * n_act    # acts
    )

    vmem_limit = _vmem_limit_bytes(T, b_blk, e_pad, h_pad, o_pad,
                                   n_layers, n_act)

    return pl.pallas_call(
        kernel,
        grid=(n_shards,),
        out_shape=out_shape,
        in_specs=in_specs,
        out_specs=out_specs,
        scratch_shapes=scratch_shapes,
        compiler_params=pltpu.CompilerParams(
            dimension_semantics=("parallel",),    # batch shards -> v7x dual TC
            vmem_limit_bytes=vmem_limit),
    )(x_tm, *flat_layer_params, fc_w, fc_b, h0, c0)


# ----------------------------------------------------------------------------
# Parameters: raw (PyTorch-layout) init + one-time prepared (padded/bf16) form
# ----------------------------------------------------------------------------
def init_params(key, vocab_size, output_size, embedding_dim, hidden_dim, n_layers):
    params = {}
    keys = jax.random.split(key, 2 + 4 * n_layers + 2)
    k = iter(keys)
    params["embedding"] = 0.1 * jax.random.normal(
        next(k), (vocab_size, embedding_dim), jnp.float32)
    for layer in range(n_layers):
        in_dim = embedding_dim if layer == 0 else hidden_dim
        params[f"w_ih_{layer}"] = 0.1 * jax.random.normal(
            next(k), (4 * hidden_dim, in_dim), jnp.float32)
        params[f"w_hh_{layer}"] = 0.1 * jax.random.normal(
            next(k), (4 * hidden_dim, hidden_dim), jnp.float32)
        params[f"b_ih_{layer}"] = 0.1 * jax.random.normal(
            next(k), (4 * hidden_dim,), jnp.float32)
        params[f"b_hh_{layer}"] = 0.1 * jax.random.normal(
            next(k), (4 * hidden_dim,), jnp.float32)
    params["fc_w"] = 0.1 * jax.random.normal(
        next(k), (output_size, hidden_dim), jnp.float32)
    params["fc_b"] = 0.1 * jax.random.normal(next(k), (output_size,), jnp.float32)
    return params


def prepare_params(raw, *, n_layers, embedding_dim, hidden_dim, output_size):
    """One-time transpose / lane-pad / gate-repack / dtype cast of the params."""
    H, E, O = hidden_dim, embedding_dim, output_size
    H_pad = _round_up(H, 128)
    E_pad = _round_up(E, 128)
    O_pad = _round_up(O, 128)

    def pad_gate_cols(w_t, h, h_pad):
        # (d, 4h) in PyTorch (i,f,g,o) order -> (d, 4*h_pad) in (i,f,o,g)
        # order, each gate block re-packed at a 128-lane offset.
        d = w_t.shape[0]
        out = jnp.zeros((d, 4 * h_pad), jnp.float32)
        for dst, src in enumerate(_GATE_ORDER):
            out = out.at[:, dst * h_pad:dst * h_pad + h].set(
                w_t[:, src * h:(src + 1) * h])
        return out

    def pad_rows(w, d_pad):
        return jnp.zeros((d_pad,) + w.shape[1:], w.dtype).at[:w.shape[0]].set(w)

    emb = jnp.zeros((raw["embedding"].shape[0], E_pad), jnp.float32)
    emb = emb.at[:, :E].set(raw["embedding"]).astype(_ACT_DTYPE)

    layers = []
    for l in range(n_layers):
        d_in_pad = E_pad if l == 0 else H_pad
        wih_p = pad_rows(pad_gate_cols(raw[f"w_ih_{l}"].T, H, H_pad),
                         d_in_pad).astype(jnp.bfloat16)
        whh_p = pad_rows(pad_gate_cols(raw[f"w_hh_{l}"].T, H, H_pad),
                         H_pad).astype(jnp.bfloat16)
        b_p = pad_gate_cols((raw[f"b_ih_{l}"] + raw[f"b_hh_{l}"])[None, :],
                            H, H_pad)                     # (1, 4*H_pad) f32
        layers.append((wih_p, whh_p, b_p))

    fc_w = jnp.zeros((H_pad, O_pad), jnp.float32)
    fc_w = fc_w.at[:H, :O].set(raw["fc_w"].T).astype(jnp.bfloat16)
    fc_b = jnp.zeros((1, O_pad), jnp.float32).at[0, :O].set(raw["fc_b"])

    return {"embedding": emb, "layers": layers, "fc_w": fc_w, "fc_b": fc_b,
            "n_layers": n_layers, "H": H, "E": E, "O": O,
            "H_pad": H_pad, "E_pad": E_pad, "O_pad": O_pad}


# ----------------------------------------------------------------------------
# Forward (mirrors SentimentLSTM.forward, eval mode)
# ----------------------------------------------------------------------------
def sentiment_lstm_forward(prep, x, hidden):
    """x: (B, T) int token ids; hidden: (h0, c0) each (n_layers, B, H).
    Returns (out (B,), (h_n, c_n))."""
    B, T = x.shape
    L, H, O = prep["n_layers"], prep["H"], prep["O"]
    H_pad, E_pad, O_pad = prep["H_pad"], prep["E_pad"], prep["O_pad"]
    h0, c0 = hidden

    B_pad = _round_up(max(B, 8), 8)

    # Embedding gather directly into time-major layout (single pass).
    ids_tm = jnp.transpose(x.astype(jnp.int32))            # (T, B)
    x_tm = jnp.take(prep["embedding"], ids_tm, axis=0)     # (T, B, E_pad) bf16
    if B_pad != B:
        x_tm = jnp.pad(x_tm, ((0, 0), (0, B_pad - B), (0, 0)))

    h0_p = jnp.zeros((L, B_pad, H_pad), jnp.float32).at[:, :B, :H].set(
        h0.astype(jnp.float32))
    c0_p = jnp.zeros((L, B_pad, H_pad), jnp.float32).at[:, :B, :H].set(
        c0.astype(jnp.float32))

    out_p, hn_p, cn_p = _fused_forward_call(
        x_tm, prep["layers"], prep["fc_w"], prep["fc_b"], h0_p, c0_p,
        n_layers=L, seq_len=T, b_pad=B_pad, e_pad=E_pad,
        h_pad=H_pad, o_pad=O_pad)

    # out.view(B, -1)[:, -1]  ==  sigmoid(fc(h_{T-1}))[:, O-1]
    out = out_p[:B, O - 1]
    hn = hn_p[:, :B, :H]
    cn = cn_p[:, :B, :H]
    return out, (hn, cn)


# ----------------------------------------------------------------------------
# Pure-JAX reference (f32) for a correctness sanity check
# ----------------------------------------------------------------------------
def reference_forward(raw, x, hidden, *, n_layers, hidden_dim):
    B, T = x.shape
    H = hidden_dim
    h0, c0 = hidden
    inp = jnp.transpose(jnp.take(raw["embedding"], x.astype(jnp.int32), axis=0),
                        (1, 0, 2))                          # (T, B, E)
    hs, cs = [], []
    for l in range(n_layers):
        wih, whh = raw[f"w_ih_{l}"], raw[f"w_hh_{l}"]
        b = raw[f"b_ih_{l}"] + raw[f"b_hh_{l}"]
        h, c = h0[l], c0[l]
        ys = []
        for t in range(T):
            gates = inp[t] @ wih.T + h @ whh.T + b
            i = jax.nn.sigmoid(gates[:, :H])
            f = jax.nn.sigmoid(gates[:, H:2 * H])
            g = jnp.tanh(gates[:, 2 * H:3 * H])
            o = jax.nn.sigmoid(gates[:, 3 * H:4 * H])
            c = f * c + i * g
            h = o * jnp.tanh(c)
            ys.append(h)
        inp = jnp.stack(ys, axis=0)
        hs.append(h)
        cs.append(c)
    lstm_out = jnp.transpose(inp, (1, 0, 2)).reshape(-1, H)
    out = jax.nn.sigmoid(lstm_out @ raw["fc_w"].T + raw["fc_b"])
    out = out.reshape(B, -1)[:, -1]
    return out, (jnp.stack(hs, 0), jnp.stack(cs, 0))


# ----------------------------------------------------------------------------
# Example run
# ----------------------------------------------------------------------------
if __name__ == "__main__":
    vocab_size = 50
    output_size = 1
    embedding_dim = 32
    hidden_dim = 32
    n_layers = 2
    batch = 2
    seq = 8

    key = jax.random.PRNGKey(0)
    pkey, xkey = jax.random.split(key)
    raw_params = init_params(pkey, vocab_size, output_size,
                             embedding_dim, hidden_dim, n_layers)
    prep = prepare_params(raw_params, n_layers=n_layers,
                          embedding_dim=embedding_dim,
                          hidden_dim=hidden_dim, output_size=output_size)

    x = jax.random.randint(xkey, (batch, seq), 0, vocab_size, dtype=jnp.int32)

    # init_hidden: zeros of shape (n_layers, batch, hidden_dim)
    h0 = jnp.zeros((n_layers, batch, hidden_dim), jnp.float32)
    c0 = jnp.zeros((n_layers, batch, hidden_dim), jnp.float32)

    out, (h_n, c_n) = sentiment_lstm_forward(prep, x, (h0, c0))
    jax.block_until_ready((out, h_n, c_n))

    assert out.shape == (batch,)
    assert h_n.shape == (n_layers, batch, hidden_dim)
    assert c_n.shape == (n_layers, batch, hidden_dim)

    # Sanity check against the pure-JAX f32 reference (bf16 matmul tolerance).
    # NOTE: W_hh/gx are bf16 on the recurrent path; at production T re-validate
    # the tolerance (or keep W_hh in f32) since rounding compounds across steps.
    ref_out, (ref_h, ref_c) = reference_forward(
        raw_params, x, (h0, c0), n_layers=n_layers, hidden_dim=hidden_dim)
    assert float(jnp.max(jnp.abs(out - ref_out))) < 5e-2
    assert float(jnp.max(jnp.abs(h_n - ref_h))) < 5e-2
    assert float(jnp.max(jnp.abs(c_n - ref_c))) < 5e-2

    print("KERNEL_OK")
</pallas_src>

<mosaic_0001>
module attributes {stable_mosaic.version = 11 : i64} {
  func.func @_fused_sentiment_lstm_kernel(%arg0: i32, %arg1: memref<8x8x128xbf16, #tpu.memory_space<vmem>>, %arg2: memref<128x512xbf16, #tpu.memory_space<vmem>>, %arg3: memref<128x512xbf16, #tpu.memory_space<vmem>>, %arg4: memref<1x512xf32, #tpu.memory_space<vmem>>, %arg5: memref<128x512xbf16, #tpu.memory_space<vmem>>, %arg6: memref<128x512xbf16, #tpu.memory_space<vmem>>, %arg7: memref<1x512xf32, #tpu.memory_space<vmem>>, %arg8: memref<128x128xbf16, #tpu.memory_space<vmem>>, %arg9: memref<1x128xf32, #tpu.memory_space<vmem>>, %arg10: memref<2x8x128xf32, #tpu.memory_space<vmem>>, %arg11: memref<2x8x128xf32, #tpu.memory_space<vmem>>, %arg12: memref<8x128xf32, #tpu.memory_space<vmem>>, %arg13: memref<2x8x128xf32, #tpu.memory_space<vmem>>, %arg14: memref<2x8x128xf32, #tpu.memory_space<vmem>>, %arg15: memref<8x8x512xbf16, #tpu.memory_space<vmem>>, %arg16: memref<8x8x128xbf16, #tpu.memory_space<vmem>>) attributes {dimension_semantics = [#tpu.dimension_semantics<parallel>], iteration_bounds = array<i64: 1>, scalar_prefetch = 0 : i64, scratch_operands = 2 : i64, tpu.core_type = #tpu.core_type<tc>, window_params = [{transform_indices = @transform_0, window_bounds = array<i64: 8, 8, 128>}, {pipeline_mode = #tpu.pipeline_mode<synchronous>, transform_indices = @transform_1, window_bounds = array<i64: 128, 512>}, {pipeline_mode = #tpu.pipeline_mode<synchronous>, transform_indices = @transform_2, window_bounds = array<i64: 128, 512>}, {pipeline_mode = #tpu.pipeline_mode<synchronous>, transform_indices = @transform_3, window_bounds = array<i64: 1, 512>}, {pipeline_mode = #tpu.pipeline_mode<synchronous>, transform_indices = @transform_4, window_bounds = array<i64: 128, 512>}, {pipeline_mode = #tpu.pipeline_mode<synchronous>, transform_indices = @transform_5, window_bounds = array<i64: 128, 512>}, {pipeline_mode = #tpu.pipeline_mode<synchronous>, transform_indices = @transform_6, window_bounds = array<i64: 1, 512>}, {pipeline_mode = #tpu.pipeline_mode<synchronous>, transform_indices = @transform_7, window_bounds = array<i64: 128, 128>}, {pipeline_mode = #tpu.pipeline_mode<synchronous>, transform_indices = @transform_8, window_bounds = array<i64: 1, 128>}, {transform_indices = @transform_9, window_bounds = array<i64: 2, 8, 128>}, {transform_indices = @transform_10, window_bounds = array<i64: 2, 8, 128>}, {transform_indices = @transform_11, window_bounds = array<i64: 8, 128>}, {transform_indices = @transform_12, window_bounds = array<i64: 2, 8, 128>}, {transform_indices = @transform_13, window_bounds = array<i64: 2, 8, 128>}]} {
    %c0 = arith.constant 0 : index
    %c0_0 = arith.constant 0 : index
    %0 = vector.load %arg4[%c0, %c0_0] : memref<1x512xf32, #tpu.memory_space<vmem>>, vector<1x512xf32>
    %c0_1 = arith.constant 0 : index
    %c0_2 = arith.constant 0 : index
    %c0_3 = arith.constant 0 : index
    %1 = vector.load %arg1[%c0_1, %c0_2, %c0_3] : memref<8x8x128xbf16, #tpu.memory_space<vmem>>, vector<8x8x128xbf16>
    %2 = vector.shape_cast %1 : vector<8x8x128xbf16> to vector<64x128xbf16>
    %c0_4 = arith.constant 0 : index
    %c0_5 = arith.constant 0 : index
    %3 = vector.load %arg2[%c0_4, %c0_5] : memref<128x512xbf16, #tpu.memory_space<vmem>>, vector<128x512xbf16>
    %cst = arith.constant dense<0.000000e+00> : vector<64x512xf32>
    %4 = tpu.matmul %2, %3, %cst {dimension_numbers = #tpu.dot_dimension_numbers<[1], [0], [0], [1], [0, 0, 1, 1], [], []>} : vector<64x128xbf16>, vector<128x512xbf16>, vector<64x512xf32> -> vector<64x512xf32>
    %5 = vector.shape_cast %4 : vector<64x512xf32> to vector<8x8x512xf32>
    %6 = vector.shape_cast %0 : vector<1x512xf32> to vector<1x1x512xf32>
    %7 = vector.broadcast %6 : vector<1x1x512xf32> to vector<8x8x512xf32>
    %8 = arith.addf %5, %7 : vector<8x8x512xf32>
    %9 = arith.truncf %8 : vector<8x8x512xf32> to vector<8x8x512xbf16>
    %c0_6 = arith.constant 0 : index
    %c0_7 = arith.constant 0 : index
    %c0_8 = arith.constant 0 : index
    %10 = vector.load %arg15[%c0_6, %c0_7, %c0_8] : memref<8x8x512xbf16, #tpu.memory_space<vmem>>, vector<8x8x512xbf16>
    tpu.vector_store %arg15[%c0_6, %c0_7, %c0_8], %9 {strides = array<i32>} : memref<8x8x512xbf16, #tpu.memory_space<vmem>>, vector<8x8x512xbf16>,
    %c0_9 = arith.constant 0 : index
    %c0_10 = arith.constant 0 : index
    %c0_11 = arith.constant 0 : index
    %11 = vector.load %arg10[%c0_9, %c0_10, %c0_11] : memref<2x8x128xf32, #tpu.memory_space<vmem>>, vector<1x8x128xf32>
    %12 = vector.shape_cast %11 : vector<1x8x128xf32> to vector<8x128xf32>
    %13 = arith.truncf %12 : vector<8x128xf32> to vector<8x128xbf16>
    %c0_12 = arith.constant 0 : index
    %c0_13 = arith.constant 0 : index
    %c0_14 = arith.constant 0 : index
    %14 = vector.load %arg11[%c0_12, %c0_13, %c0_14] : memref<2x8x128xf32, #tpu.memory_space<vmem>>, vector<1x8x128xf32>
    %15 = vector.shape_cast %14 : vector<1x8x128xf32> to vector<8x128xf32>
    %c0_i32 = arith.constant 0 : i32
    %16 = arith.index_cast %c0_i32 : i32 to index
    %c0_15 = arith.constant 0 : index
    %c0_16 = arith.constant 0 : index
    %17 = vector.load %arg15[%16, %c0_15, %c0_16] : memref<8x8x512xbf16, #tpu.memory_space<vmem>>, vector<1x8x512xbf16>
    %18 = vector.shape_cast %17 : vector<1x8x512xbf16> to vector<8x512xbf16>
    %19 = arith.extf %18 : vector<8x512xbf16> to vector<8x512xf32>
    %c0_17 = arith.constant 0 : index
    %c0_18 = arith.constant 0 : index
    %20 = vector.load %arg3[%c0_17, %c0_18] : memref<128x512xbf16, #tpu.memory_space<vmem>>, vector<128x512xbf16>
    %cst_19 = arith.constant dense<0.000000e+00> : vector<8x512xf32>
    %21 = tpu.matmul %13, %20, %cst_19 {dimension_numbers = #tpu.dot_dimension_numbers<[1], [0], [0], [1], [0, 0, 1, 1], [], []>} : vector<8x128xbf16>, vector<128x512xbf16>, vector<8x512xf32> -> vector<8x512xf32>
    %22 = arith.addf %19, %21 : vector<8x512xf32>
    %23 = vector.extract_strided_slice %22 {offsets = [0, 0], sizes = [8, 384], strides = [1, 1]} : vector<8x512xf32> to vector<8x384xf32>
    %24 = arith.negf %23 : vector<8x384xf32>
    %25 = math.exp %24 : vector<8x384xf32>
    %cst_20 = arith.constant 1.000000e+00 : f32
    %26 = vector.broadcast %cst_20 : f32 to vector<8x384xf32>
    %27 = arith.addf %26, %25 : vector<8x384xf32>
    %28 = arith.divf %26, %27 : vector<8x384xf32>
    %29 = vector.extract_strided_slice %28 {offsets = [0, 0], sizes = [8, 128], strides = [1, 1]} : vector<8x384xf32> to vector<8x128xf32>
    %30 = vector.extract_strided_slice %28 {offsets = [0, 128], sizes = [8, 128], strides = [1, 1]} : vector<8x384xf32> to vector<8x128xf32>
    %31 = vector.extract_strided_slice %28 {offsets = [0, 256], sizes = [8, 128], strides = [1, 1]} : vector<8x384xf32> to vector<8x128xf32>
    %32 = vector.extract_strided_slice %22 {offsets = [0, 384], sizes = [8, 128], strides = [1, 1]} : vector<8x512xf32> to vector<8x128xf32>
    %33 = math.tanh %32 : vector<8x128xf32>
    %34 = arith.mulf %30, %15 : vector<8x128xf32>
    %35 = arith.mulf %29, %33 : vector<8x128xf32>
    %36 = arith.addf %34, %35 : vector<8x128xf32>
    %37 = math.tanh %36 : vector<8x128xf32>
    %38 = arith.mulf %31, %37 : vector<8x128xf32>
    %39 = arith.truncf %38 : vector<8x128xf32> to vector<8x128xbf16>
    %40 = arith.index_cast %c0_i32 : i32 to index
    %c0_21 = arith.constant 0 : index
    %c0_22 = arith.constant 0 : index
    %41 = vector.load %arg16[%40, %c0_21, %c0_22] : memref<8x8x128xbf16, #tpu.memory_space<vmem>>, vector<1x8x128xbf16>
    %42 = vector.shape_cast %41 : vector<1x8x128xbf16> to vector<8x128xbf16>
    %43 = vector.shape_cast %39 : vector<8x128xbf16> to vector<1x8x128xbf16>
    tpu.vector_store %arg16[%40, %c0_21, %c0_22], %43 {strides = array<i32>} : memref<8x8x128xbf16, #tpu.memory_space<vmem>>, vector<1x8x128xbf16>,
    %c1_i32 = arith.constant 1 : i32
    %44 = arith.index_cast %c1_i32 : i32 to index
    %c0_23 = arith.constant 0 : index
    %c0_24 = arith.constant 0 : index
    %45 = vector.load %arg15[%44, %c0_23, %c0_24] : memref<8x8x512xbf16, #tpu.memory_space<vmem>>, vector<1x8x512xbf16>
    %46 = vector.shape_cast %45 : vector<1x8x512xbf16> to vector<8x512xbf16>
    %47 = arith.extf %46 : vector<8x512xbf16> to vector<8x512xf32>
    %c0_25 = arith.constant 0 : index
    %c0_26 = arith.constant 0 : index
    %48 = vector.load %arg3[%c0_25, %c0_26] : memref<128x512xbf16, #tpu.memory_space<vmem>>, vector<128x512xbf16>
    %cst_27 = arith.constant dense<0.000000e+00> : vector<8x512xf32>
    %49 = tpu.matmul %39, %48, %cst_27 {dimension_numbers = #tpu.dot_dimension_numbers<[1], [0], [0], [1], [0, 0, 1, 1], [], []>} : vector<8x128xbf16>, vector<128x512xbf16>, vector<8x512xf32> -> vector<8x512xf32>
    %50 = arith.addf %47, %49 : vector<8x512xf32>
    %51 = vector.extract_strided_slice %50 {offsets = [0, 0], sizes = [8, 384], strides = [1, 1]} : vector<8x512xf32> to vector<8x384xf32>
    %52 = arith.negf %51 : vector<8x384xf32>
    %53 = math.exp %52 : vector<8x384xf32>
    %cst_28 = arith.constant 1.000000e+00 : f32
    %54 = vector.broadcast %cst_28 : f32 to vector<8x384xf32>
    %55 = arith.addf %54, %53 : vector<8x384xf32>
    %56 = arith.divf %54, %55 : vector<8x384xf32>
    %57 = vector.extract_strided_slice %56 {offsets = [0, 0], sizes = [8, 128], strides = [1, 1]} : vector<8x384xf32> to vector<8x128xf32>
    %58 = vector.extract_strided_slice %56 {offsets = [0, 128], sizes = [8, 128], strides = [1, 1]} : vector<8x384xf32> to vector<8x128xf32>
    %59 = vector.extract_strided_slice %56 {offsets = [0, 256], sizes = [8, 128], strides = [1, 1]} : vector<8x384xf32> to vector<8x128xf32>
    %60 = vector.extract_strided_slice %50 {offsets = [0, 384], sizes = [8, 128], strides = [1, 1]} : vector<8x512xf32> to vector<8x128xf32>
    %61 = math.tanh %60 : vector<8x128xf32>
    %62 = arith.mulf %58, %36 : vector<8x128xf32>
    %63 = arith.mulf %57, %61 : vector<8x128xf32>
    %64 = arith.addf %62, %63 : vector<8x128xf32>
    %65 = math.tanh %64 : vector<8x128xf32>
    %66 = arith.mulf %59, %65 : vector<8x128xf32>
    %67 = arith.truncf %66 : vector<8x128xf32> to vector<8x128xbf16>
    %68 = arith.index_cast %c1_i32 : i32 to index
    %c0_29 = arith.constant 0 : index
    %c0_30 = arith.constant 0 : index
    %69 = vector.load %arg16[%68, %c0_29, %c0_30] : memref<8x8x128xbf16, #tpu.memory_space<vmem>>, vector<1x8x128xbf16>
    %70 = vector.shape_cast %69 : vector<1x8x128xbf16> to vector<8x128xbf16>
    %71 = vector.shape_cast %67 : vector<8x128xbf16> to vector<1x8x128xbf16>
    tpu.vector_store %arg16[%68, %c0_29, %c0_30], %71 {strides = array<i32>} : memref<8x8x128xbf16, #tpu.memory_space<vmem>>, vector<1x8x128xbf16>,
    %c2_i32 = arith.constant 2 : i32
    %72 = arith.index_cast %c2_i32 : i32 to index
    %c0_31 = arith.constant 0 : index
    %c0_32 = arith.constant 0 : index
    %73 = vector.load %arg15[%72, %c0_31, %c0_32] : memref<8x8x512xbf16, #tpu.memory_space<vmem>>, vector<1x8x512xbf16>
    %74 = vector.shape_cast %73 : vector<1x8x512xbf16> to vector<8x512xbf16>
    %75 = arith.extf %74 : vector<8x512xbf16> to vector<8x512xf32>
    %c0_33 = arith.constant 0 : index
    %c0_34 = arith.constant 0 : index
    %76 = vector.load %arg3[%c0_33, %c0_34] : memref<128x512xbf16, #tpu.memory_space<vmem>>, vector<128x512xbf16>
    %cst_35 = arith.constant dense<0.000000e+00> : vector<8x512xf32>
    %77 = tpu.matmul %67, %76, %cst_35 {dimension_numbers = #tpu.dot_dimension_numbers<[1], [0], [0], [1], [0, 0, 1, 1], [], []>} : vector<8x128xbf16>, vector<128x512xbf16>, vector<8x512xf32> -> vector<8x512xf32>
    %78 = arith.addf %75, %77 : vector<8x512xf32>
    %79 = vector.extract_strided_slice %78 {offsets = [0, 0], sizes = [8, 384], strides = [1, 1]} : vector<8x512xf32> to vector<8x384xf32>
    %80 = arith.negf %79 : vector<8x384xf32>
    %81 = math.exp %80 : vector<8x384xf32>
    %cst_36 = arith.constant 1.000000e+00 : f32
    %82 = vector.broadcast %cst_36 : f32 to vector<8x384xf32>
    %83 = arith.addf %82, %81 : vector<8x384xf32>
    %84 = arith.divf %82, %83 : vector<8x384xf32>
    %85 = vector.extract_strided_slice %84 {offsets = [0, 0], sizes = [8, 128], strides = [1, 1]} : vector<8x384xf32> to vector<8x128xf32>
    %86 = vector.extract_strided_slice %84 {offsets = [0, 128], sizes = [8, 128], strides = [1, 1]} : vector<8x384xf32> to vector<8x128xf32>
    %87 = vector.extract_strided_slice %84 {offsets = [0, 256], sizes = [8, 128], strides = [1, 1]} : vector<8x384xf32> to vector<8x128xf32>
    %88 = vector.extract_strided_slice %78 {offsets = [0, 384], sizes = [8, 128], strides = [1, 1]} : vector<8x512xf32> to vector<8x128xf32>
    %89 = math.tanh %88 : vector<8x128xf32>
    %90 = arith.mulf %86, %64 : vector<8x128xf32>
    %91 = arith.mulf %85, %89 : vector<8x128xf32>
    %92 = arith.addf %90, %91 : vector<8x128xf32>
    %93 = math.tanh %92 : vector<8x128xf32>
    %94 = arith.mulf %87, %93 : vector<8x128xf32>
    %95 = arith.truncf %94 : vector<8x128xf32> to vector<8x128xbf16>
    %96 = arith.index_cast %c2_i32 : i32 to index
    %c0_37 = arith.constant 0 : index
    %c0_38 = arith.constant 0 : index
    %97 = vector.load %arg16[%96, %c0_37, %c0_38] : memref<8x8x128xbf16, #tpu.memory_space<vmem>>, vector<1x8x128xbf16>
    %98 = vector.shape_cast %97 : vector<1x8x128xbf16> to vector<8x128xbf16>
    %99 = vector.shape_cast %95 : vector<8x128xbf16> to vector<1x8x128xbf16>
    tpu.vector_store %arg16[%96, %c0_37, %c0_38], %99 {strides = array<i32>} : memref<8x8x128xbf16, #tpu.memory_space<vmem>>, vector<1x8x128xbf16>,
    %c3_i32 = arith.constant 3 : i32
    %100 = arith.index_cast %c3_i32 : i32 to index
    %c0_39 = arith.constant 0 : index
    %c0_40 = arith.constant 0 : index
    %101 = vector.load %arg15[%100, %c0_39, %c0_40] : memref<8x8x512xbf16, #tpu.memory_space<vmem>>, vector<1x8x512xbf16>
    %102 = vector.shape_cast %101 : vector<1x8x512xbf16> to vector<8x512xbf16>
    %103 = arith.extf %102 : vector<8x512xbf16> to vector<8x512xf32>
    %c0_41 = arith.constant 0 : index
    %c0_42 = arith.constant 0 : index
    %104 = vector.load %arg3[%c0_41, %c0_42] : memref<128x512xbf16, #tpu.memory_space<vmem>>, vector<128x512xbf16>
    %cst_43 = arith.constant dense<0.000000e+00> : vector<8x512xf32>
    %105 = tpu.matmul %95, %104, %cst_43 {dimension_numbers = #tpu.dot_dimension_numbers<[1], [0], [0], [1], [0, 0, 1, 1], [], []>} : vector<8x128xbf16>, vector<128x512xbf16>, vector<8x512xf32> -> vector<8x512xf32>
    %106 = arith.addf %103, %105 : vector<8x512xf32>
    %107 = vector.extract_strided_slice %106 {offsets = [0, 0], sizes = [8, 384], strides = [1, 1]} : vector<8x512xf32> to vector<8x384xf32>
    %108 = arith.negf %107 : vector<8x384xf32>
    %109 = math.exp %108 : vector<8x384xf32>
    %cst_44 = arith.constant 1.000000e+00 : f32
    %110 = vector.broadcast %cst_44 : f32 to vector<8x384xf32>
    %111 = arith.addf %110, %109 : vector<8x384xf32>
    %112 = arith.divf %110, %111 : vector<8x384xf32>
    %113 = vector.extract_strided_slice %112 {offsets = [0, 0], sizes = [8, 128], strides = [1, 1]} : vector<8x384xf32> to vector<8x128xf32>
    %114 = vector.extract_strided_slice %112 {offsets = [0, 128], sizes = [8, 128], strides = [1, 1]} : vector<8x384xf32> to vector<8x128xf32>
    %115 = vector.extract_strided_slice %112 {offsets = [0, 256], sizes = [8, 128], strides = [1, 1]} : vector<8x384xf32> to vector<8x128xf32>
    %116 = vector.extract_strided_slice %106 {offsets = [0, 384], sizes = [8, 128], strides = [1, 1]} : vector<8x512xf32> to vector<8x128xf32>
    %117 = math.tanh %116 : vector<8x128xf32>
    %118 = arith.mulf %114, %92 : vector<8x128xf32>
    %119 = arith.mulf %113, %117 : vector<8x128xf32>
    %120 = arith.addf %118, %119 : vector<8x128xf32>
    %121 = math.tanh %120 : vector<8x128xf32>
    %122 = arith.mulf %115, %121 : vector<8x128xf32>
    %123 = arith.truncf %122 : vector<8x128xf32> to vector<8x128xbf16>
    %124 = arith.index_cast %c3_i32 : i32 to index
    %c0_45 = arith.constant 0 : index
    %c0_46 = arith.constant 0 : index
    %125 = vector.load %arg16[%124, %c0_45, %c0_46] : memref<8x8x128xbf16, #tpu.memory_space<vmem>>, vector<1x8x128xbf16>
    %126 = vector.shape_cast %125 : vector<1x8x128xbf16> to vector<8x128xbf16>
    %127 = vector.shape_cast %123 : vector<8x128xbf16> to vector<1x8x128xbf16>
    tpu.vector_store %arg16[%124, %c0_45, %c0_46], %127 {strides = array<i32>} : memref<8x8x128xbf16, #tpu.memory_space<vmem>>, vector<1x8x128xbf16>,
    %c4_i32 = arith.constant 4 : i32
    %128 = arith.index_cast %c4_i32 : i32 to index
    %c0_47 = arith.constant 0 : index
    %c0_48 = arith.constant 0 : index
    %129 = vector.load %arg15[%128, %c0_47, %c0_48] : memref<8x8x512xbf16, #tpu.memory_space<vmem>>, vector<1x8x512xbf16>
    %130 = vector.shape_cast %129 : vector<1x8x512xbf16> to vector<8x512xbf16>
    %131 = arith.extf %130 : vector<8x512xbf16> to vector<8x512xf32>
    %c0_49 = arith.constant 0 : index
    %c0_50 = arith.constant 0 : index
    %132 = vector.load %arg3[%c0_49, %c0_50] : memref<128x512xbf16, #tpu.memory_space<vmem>>, vector<128x512xbf16>
    %cst_51 = arith.constant dense<0.000000e+00> : vector<8x512xf32>
    %133 = tpu.matmul %123, %132, %cst_51 {dimension_numbers = #tpu.dot_dimension_numbers<[1], [0], [0], [1], [0, 0, 1, 1], [], []>} : vector<8x128xbf16>, vector<128x512xbf16>, vector<8x512xf32> -> vector<8x512xf32>
    %134 = arith.addf %131, %133 : vector<8x512xf32>
    %135 = vector.extract_strided_slice %134 {offsets = [0, 0], sizes = [8, 384], strides = [1, 1]} : vector<8x512xf32> to vector<8x384xf32>
    %136 = arith.negf %135 : vector<8x384xf32>
    %137 = math.exp %136 : vector<8x384xf32>
    %cst_52 = arith.constant 1.000000e+00 : f32
    %138 = vector.broadcast %cst_52 : f32 to vector<8x384xf32>
    %139 = arith.addf %138, %137 : vector<8x384xf32>
    %140 = arith.divf %138, %139 : vector<8x384xf32>
    %141 = vector.extract_strided_slice %140 {offsets = [0, 0], sizes = [8, 128], strides = [1, 1]} : vector<8x384xf32> to vector<8x128xf32>
    %142 = vector.extract_strided_slice %140 {offsets = [0, 128], sizes = [8, 128], strides = [1, 1]} : vector<8x384xf32> to vector<8x128xf32>
    %143 = vector.extract_strided_slice %140 {offsets = [0, 256], sizes = [8, 128], strides = [1, 1]} : vector<8x384xf32> to vector<8x128xf32>
    %144 = vector.extract_strided_slice %134 {offsets = [0, 384], sizes = [8, 128], strides = [1, 1]} : vector<8x512xf32> to vector<8x128xf32>
    %145 = math.tanh %144 : vector<8x128xf32>
    %146 = arith.mulf %142, %120 : vector<8x128xf32>
    %147 = arith.mulf %141, %145 : vector<8x128xf32>
    %148 = arith.addf %146, %147 : vector<8x128xf32>
    %149 = math.tanh %148 : vector<8x128xf32>
    %150 = arith.mulf %143, %149 : vector<8x128xf32>
    %151 = arith.truncf %150 : vector<8x128xf32> to vector<8x128xbf16>
    %152 = arith.index_cast %c4_i32 : i32 to index
    %c0_53 = arith.constant 0 : index
    %c0_54 = arith.constant 0 : index
    %153 = vector.load %arg16[%152, %c0_53, %c0_54] : memref<8x8x128xbf16, #tpu.memory_space<vmem>>, vector<1x8x128xbf16>
    %154 = vector.shape_cast %153 : vector<1x8x128xbf16> to vector<8x128xbf16>
    %155 = vector.shape_cast %151 : vector<8x128xbf16> to vector<1x8x128xbf16>
    tpu.vector_store %arg16[%152, %c0_53, %c0_54], %155 {strides = array<i32>} : memref<8x8x128xbf16, #tpu.memory_space<vmem>>, vector<1x8x128xbf16>,
    %c5_i32 = arith.constant 5 : i32
    %156 = arith.index_cast %c5_i32 : i32 to index
    %c0_55 = arith.constant 0 : index
    %c0_56 = arith.constant 0 : index
    %157 = vector.load %arg15[%156, %c0_55, %c0_56] : memref<8x8x512xbf16, #tpu.memory_space<vmem>>, vector<1x8x512xbf16>
    %158 = vector.shape_cast %157 : vector<1x8x512xbf16> to vector<8x512xbf16>
    %159 = arith.extf %158 : vector<8x512xbf16> to vector<8x512xf32>
    %c0_57 = arith.constant 0 : index
    %c0_58 = arith.constant 0 : index
    %160 = vector.load %arg3[%c0_57, %c0_58] : memref<128x512xbf16, #tpu.memory_space<vmem>>, vector<128x512xbf16>
    %cst_59 = arith.constant dense<0.000000e+00> : vector<8x512xf32>
    %161 = tpu.matmul %151, %160, %cst_59 {dimension_numbers = #tpu.dot_dimension_numbers<[1], [0], [0], [1], [0, 0, 1, 1], [], []>} : vector<8x128xbf16>, vector<128x512xbf16>, vector<8x512xf32> -> vector<8x512xf32>
    %162 = arith.addf %159, %161 : vector<8x512xf32>
    %163 = vector.extract_strided_slice %162 {offsets = [0, 0], sizes = [8, 384], strides = [1, 1]} : vector<8x512xf32> to vector<8x384xf32>
    %164 = arith.negf %163 : vector<8x384xf32>
    %165 = math.exp %164 : vector<8x384xf32>
    %cst_60 = arith.constant 1.000000e+00 : f32
    %166 = vector.broadcast %cst_60 : f32 to vector<8x384xf32>
    %167 = arith.addf %166, %165 : vector<8x384xf32>
    %168 = arith.divf %166, %167 : vector<8x384xf32>
    %169 = vector.extract_strided_slice %168 {offsets = [0, 0], sizes = [8, 128], strides = [1, 1]} : vector<8x384xf32> to vector<8x128xf32>
    %170 = vector.extract_strided_slice %168 {offsets = [0, 128], sizes = [8, 128], strides = [1, 1]} : vector<8x384xf32> to vector<8x128xf32>
    %171 = vector.extract_strided_slice %168 {offsets = [0, 256], sizes = [8, 128], strides = [1, 1]} : vector<8x384xf32> to vector<8x128xf32>
    %172 = vector.extract_strided_slice %162 {offsets = [0, 384], sizes = [8, 128], strides = [1, 1]} : vector<8x512xf32> to vector<8x128xf32>
    %173 = math.tanh %172 : vector<8x128xf32>
    %174 = arith.mulf %170, %148 : vector<8x128xf32>
    %175 = arith.mulf %169, %173 : vector<8x128xf32>
    %176 = arith.addf %174, %175 : vector<8x128xf32>
    %177 = math.tanh %176 : vector<8x128xf32>
    %178 = arith.mulf %171, %177 : vector<8x128xf32>
    %179 = arith.truncf %178 : vector<8x128xf32> to vector<8x128xbf16>
    %180 = arith.index_cast %c5_i32 : i32 to index
    %c0_61 = arith.constant 0 : index
    %c0_62 = arith.constant 0 : index
    %181 = vector.load %arg16[%180, %c0_61, %c0_62] : memref<8x8x128xbf16, #tpu.memory_space<vmem>>, vector<1x8x128xbf16>
    %182 = vector.shape_cast %181 : vector<1x8x128xbf16> to vector<8x128xbf16>
    %183 = vector.shape_cast %179 : vector<8x128xbf16> to vector<1x8x128xbf16>
    tpu.vector_store %arg16[%180, %c0_61, %c0_62], %183 {strides = array<i32>} : memref<8x8x128xbf16, #tpu.memory_space<vmem>>, vector<1x8x128xbf16>,
    %c6_i32 = arith.constant 6 : i32
    %184 = arith.index_cast %c6_i32 : i32 to index
    %c0_63 = arith.constant 0 : index
    %c0_64 = arith.constant 0 : index
    %185 = vector.load %arg15[%184, %c0_63, %c0_64] : memref<8x8x512xbf16, #tpu.memory_space<vmem>>, vector<1x8x512xbf16>
    %186 = vector.shape_cast %185 : vector<1x8x512xbf16> to vector<8x512xbf16>
    %187 = arith.extf %186 : vector<8x512xbf16> to vector<8x512xf32>
    %c0_65 = arith.constant 0 : index
    %c0_66 = arith.constant 0 : index
    %188 = vector.load %arg3[%c0_65, %c0_66] : memref<128x512xbf16, #tpu.memory_space<vmem>>, vector<128x512xbf16>
    %cst_67 = arith.constant dense<0.000000e+00> : vector<8x512xf32>
    %189 = tpu.matmul %179, %188, %cst_67 {dimension_numbers = #tpu.dot_dimension_numbers<[1], [0], [0], [1], [0, 0, 1, 1], [], []>} : vector<8x128xbf16>, vector<128x512xbf16>, vector<8x512xf32> -> vector<8x512xf32>
    %190 = arith.addf %187, %189 : vector<8x512xf32>
    %191 = vector.extract_strided_slice %190 {offsets = [0, 0], sizes = [8, 384], strides = [1, 1]} : vector<8x512xf32> to vector<8x384xf32>
    %192 = arith.negf %191 : vector<8x384xf32>
    %193 = math.exp %192 : vector<8x384xf32>
    %cst_68 = arith.constant 1.000000e+00 : f32
    %194 = vector.broadcast %cst_68 : f32 to vector<8x384xf32>
    %195 = arith.addf %194, %193 : vector<8x384xf32>
    %196 = arith.divf %194, %195 : vector<8x384xf32>
    %197 = vector.extract_strided_slice %196 {offsets = [0, 0], sizes = [8, 128], strides = [1, 1]} : vector<8x384xf32> to vector<8x128xf32>
    %198 = vector.extract_strided_slice %196 {offsets = [0, 128], sizes = [8, 128], strides = [1, 1]} : vector<8x384xf32> to vector<8x128xf32>
    %199 = vector.extract_strided_slice %196 {offsets = [0, 256], sizes = [8, 128], strides = [1, 1]} : vector<8x384xf32> to vector<8x128xf32>
    %200 = vector.extract_strided_slice %190 {offsets = [0, 384], sizes = [8, 128], strides = [1, 1]} : vector<8x512xf32> to vector<8x128xf32>
    %201 = math.tanh %200 : vector<8x128xf32>
    %202 = arith.mulf %198, %176 : vector<8x128xf32>
    %203 = arith.mulf %197, %201 : vector<8x128xf32>
    %204 = arith.addf %202, %203 : vector<8x128xf32>
    %205 = math.tanh %204 : vector<8x128xf32>
    %206 = arith.mulf %199, %205 : vector<8x128xf32>
    %207 = arith.truncf %206 : vector<8x128xf32> to vector<8x128xbf16>
    %208 = arith.index_cast %c6_i32 : i32 to index
    %c0_69 = arith.constant 0 : index
    %c0_70 = arith.constant 0 : index
    %209 = vector.load %arg16[%208, %c0_69, %c0_70] : memref<8x8x128xbf16, #tpu.memory_space<vmem>>, vector<1x8x128xbf16>
    %210 = vector.shape_cast %209 : vector<1x8x128xbf16> to vector<8x128xbf16>
    %211 = vector.shape_cast %207 : vector<8x128xbf16> to vector<1x8x128xbf16>
    tpu.vector_store %arg16[%208, %c0_69, %c0_70], %211 {strides = array<i32>} : memref<8x8x128xbf16, #tpu.memory_space<vmem>>, vector<1x8x128xbf16>,
    %c7_i32 = arith.constant 7 : i32
    %212 = arith.index_cast %c7_i32 : i32 to index
    %c0_71 = arith.constant 0 : index
    %c0_72 = arith.constant 0 : index
    %213 = vector.load %arg15[%212, %c0_71, %c0_72] : memref<8x8x512xbf16, #tpu.memory_space<vmem>>, vector<1x8x512xbf16>
    %214 = vector.shape_cast %213 : vector<1x8x512xbf16> to vector<8x512xbf16>
    %215 = arith.extf %214 : vector<8x512xbf16> to vector<8x512xf32>
    %c0_73 = arith.constant 0 : index
    %c0_74 = arith.constant 0 : index
    %216 = vector.load %arg3[%c0_73, %c0_74] : memref<128x512xbf16, #tpu.memory_space<vmem>>, vector<128x512xbf16>
    %cst_75 = arith.constant dense<0.000000e+00> : vector<8x512xf32>
    %217 = tpu.matmul %207, %216, %cst_75 {dimension_numbers = #tpu.dot_dimension_numbers<[1], [0], [0], [1], [0, 0, 1, 1], [], []>} : vector<8x128xbf16>, vector<128x512xbf16>, vector<8x512xf32> -> vector<8x512xf32>
    %218 = arith.addf %215, %217 : vector<8x512xf32>
    %219 = vector.extract_strided_slice %218 {offsets = [0, 0], sizes = [8, 384], strides = [1, 1]} : vector<8x512xf32> to vector<8x384xf32>
    %220 = arith.negf %219 : vector<8x384xf32>
    %221 = math.exp %220 : vector<8x384xf32>
    %cst_76 = arith.constant 1.000000e+00 : f32
    %222 = vector.broadcast %cst_76 : f32 to vector<8x384xf32>
    %223 = arith.addf %222, %221 : vector<8x384xf32>
    %224 = arith.divf %222, %223 : vector<8x384xf32>
    %225 = vector.extract_strided_slice %224 {offsets = [0, 0], sizes = [8, 128], strides = [1, 1]} : vector<8x384xf32> to vector<8x128xf32>
    %226 = vector.extract_strided_slice %224 {offsets = [0, 128], sizes = [8, 128], strides = [1, 1]} : vector<8x384xf32> to vector<8x128xf32>
    %227 = vector.extract_strided_slice %224 {offsets = [0, 256], sizes = [8, 128], strides = [1, 1]} : vector<8x384xf32> to vector<8x128xf32>
    %228 = vector.extract_strided_slice %218 {offsets = [0, 384], sizes = [8, 128], strides = [1, 1]} : vector<8x512xf32> to vector<8x128xf32>
    %229 = math.tanh %228 : vector<8x128xf32>
    %230 = arith.mulf %226, %204 : vector<8x128xf32>
    %231 = arith.mulf %225, %229 : vector<8x128xf32>
    %232 = arith.addf %230, %231 : vector<8x128xf32>
    %233 = math.tanh %232 : vector<8x128xf32>
    %234 = arith.mulf %227, %233 : vector<8x128xf32>
    %235 = arith.truncf %234 : vector<8x128xf32> to vector<8x128xbf16>
    %236 = arith.index_cast %c7_i32 : i32 to index
    %c0_77 = arith.constant 0 : index
    %c0_78 = arith.constant 0 : index
    %237 = vector.load %arg16[%236, %c0_77, %c0_78] : memref<8x8x128xbf16, #tpu.memory_space<vmem>>, vector<1x8x128xbf16>
    %238 = vector.shape_cast %237 : vector<1x8x128xbf16> to vector<8x128xbf16>
    %239 = vector.shape_cast %235 : vector<8x128xbf16> to vector<1x8x128xbf16>
    tpu.vector_store %arg16[%236, %c0_77, %c0_78], %239 {strides = array<i32>} : memref<8x8x128xbf16, #tpu.memory_space<vmem>>, vector<1x8x128xbf16>,
    %c8_i32 = arith.constant 8 : i32
    %c0_79 = arith.constant 0 : index
    %c0_80 = arith.constant 0 : index
    %c0_81 = arith.constant 0 : index
    %240 = vector.load %arg13[%c0_79, %c0_80, %c0_81] : memref<2x8x128xf32, #tpu.memory_space<vmem>>, vector<1x8x128xf32>
    %241 = vector.shape_cast %240 : vector<1x8x128xf32> to vector<8x128xf32>
    %242 = vector.shape_cast %234 : vector<8x128xf32> to vector<1x8x128xf32>
    tpu.vector_store %arg13[%c0_79, %c0_80, %c0_81], %242 {strides = array<i32>} : memref<2x8x128xf32, #tpu.memory_space<vmem>>, vector<1x8x128xf32>,
    %c0_82 = arith.constant 0 : index
    %c0_83 = arith.constant 0 : index
    %c0_84 = arith.constant 0 : index
    %243 = vector.load %arg14[%c0_82, %c0_83, %c0_84] : memref<2x8x128xf32, #tpu.memory_space<vmem>>, vector<1x8x128xf32>
    %244 = vector.shape_cast %243 : vector<1x8x128xf32> to vector<8x128xf32>
    %245 = vector.shape_cast %232 : vector<8x128xf32> to vector<1x8x128xf32>
    tpu.vector_store %arg14[%c0_82, %c0_83, %c0_84], %245 {strides = array<i32>} : memref<2x8x128xf32, #tpu.memory_space<vmem>>, vector<1x8x128xf32>,
    %c0_85 = arith.constant 0 : index
    %c0_86 = arith.constant 0 : index
    %246 = vector.load %arg7[%c0_85, %c0_86] : memref<1x512xf32, #tpu.memory_space<vmem>>, vector<1x512xf32>
    %c0_87 = arith.constant 0 : index
    %c0_88 = arith.constant 0 : index
    %c0_89 = arith.constant 0 : index
    %247 = vector.load %arg16[%c0_87, %c0_88, %c0_89] : memref<8x8x128xbf16, #tpu.memory_space<vmem>>, vector<8x8x128xbf16>
    %248 = vector.shape_cast %247 : vector<8x8x128xbf16> to vector<64x128xbf16>
    %c0_90 = arith.constant 0 : index
    %c0_91 = arith.constant 0 : index
    %249 = vector.load %arg5[%c0_90, %c0_91] : memref<128x512xbf16, #tpu.memory_space<vmem>>, vector<128x512xbf16>
    %cst_92 = arith.constant dense<0.000000e+00> : vector<64x512xf32>
    %250 = tpu.matmul %248, %249, %cst_92 {dimension_numbers = #tpu.dot_dimension_numbers<[1], [0], [0], [1], [0, 0, 1, 1], [], []>} : vector<64x128xbf16>, vector<128x512xbf16>, vector<64x512xf32> -> vector<64x512xf32>
    %251 = vector.shape_cast %250 : vector<64x512xf32> to vector<8x8x512xf32>
    %252 = vector.shape_cast %246 : vector<1x512xf32> to vector<1x1x512xf32>
    %253 = vector.broadcast %252 : vector<1x1x512xf32> to vector<8x8x512xf32>
    %254 = arith.addf %251, %253 : vector<8x8x512xf32>
    %255 = arith.truncf %254 : vector<8x8x512xf32> to vector<8x8x512xbf16>
    %c0_93 = arith.constant 0 : index
    %c0_94 = arith.constant 0 : index
    %c0_95 = arith.constant 0 : index
    %256 = vector.load %arg15[%c0_93, %c0_94, %c0_95] : memref<8x8x512xbf16, #tpu.memory_space<vmem>>, vector<8x8x512xbf16>
    tpu.vector_store %arg15[%c0_93, %c0_94, %c0_95], %255 {strides = array<i32>} : memref<8x8x512xbf16, #tpu.memory_space<vmem>>, vector<8x8x512xbf16>,
    %c1 = arith.constant 1 : index
    %c0_96 = arith.constant 0 : index
    %c0_97 = arith.constant 0 : index
    %257 = vector.load %arg10[%c1, %c0_96, %c0_97] : memref<2x8x128xf32, #tpu.memory_space<vmem>>, vector<1x8x128xf32>
    %258 = vector.shape_cast %257 : vector<1x8x128xf32> to vector<8x128xf32>
    %259 = arith.truncf %258 : vector<8x128xf32> to vector<8x128xbf16>
    %c1_98 = arith.constant 1 : index
    %c0_99 = arith.constant 0 : index
    %c0_100 = arith.constant 0 : index
    %260 = vector.load %arg11[%c1_98, %c0_99, %c0_100] : memref<2x8x128xf32, #tpu.memory_space<vmem>>, vector<1x8x128xf32>
    %261 = vector.shape_cast %260 : vector<1x8x128xf32> to vector<8x128xf32>
    %c0_i32_101 = arith.constant 0 : i32
    %262 = arith.index_cast %c0_i32_101 : i32 to index
    %c0_102 = arith.constant 0 : index
    %c0_103 = arith.constant 0 : index
    %263 = vector.load %arg15[%262, %c0_102, %c0_103] : memref<8x8x512xbf16, #tpu.memory_space<vmem>>, vector<1x8x512xbf16>
    %264 = vector.shape_cast %263 : vector<1x8x512xbf16> to vector<8x512xbf16>
    %265 = arith.extf %264 : vector<8x512xbf16> to vector<8x512xf32>
    %c0_104 = arith.constant 0 : index
    %c0_105 = arith.constant 0 : index
    %266 = vector.load %arg6[%c0_104, %c0_105] : memref<128x512xbf16, #tpu.memory_space<vmem>>, vector<128x512xbf16>
    %cst_106 = arith.constant dense<0.000000e+00> : vector<8x512xf32>
    %267 = tpu.matmul %259, %266, %cst_106 {dimension_numbers = #tpu.dot_dimension_numbers<[1], [0], [0], [1], [0, 0, 1, 1], [], []>} : vector<8x128xbf16>, vector<128x512xbf16>, vector<8x512xf32> -> vector<8x512xf32>
    %268 = arith.addf %265, %267 : vector<8x512xf32>
    %269 = vector.extract_strided_slice %268 {offsets = [0, 0], sizes = [8, 384], strides = [1, 1]} : vector<8x512xf32> to vector<8x384xf32>
    %270 = arith.negf %269 : vector<8x384xf32>
    %271 = math.exp %270 : vector<8x384xf32>
    %cst_107 = arith.constant 1.000000e+00 : f32
    %272 = vector.broadcast %cst_107 : f32 to vector<8x384xf32>
    %273 = arith.addf %272, %271 : vector<8x384xf32>
    %274 = arith.divf %272, %273 : vector<8x384xf32>
    %275 = vector.extract_strided_slice %274 {offsets = [0, 0], sizes = [8, 128], strides = [1, 1]} : vector<8x384xf32> to vector<8x128xf32>
    %276 = vector.extract_strided_slice %274 {offsets = [0, 128], sizes = [8, 128], strides = [1, 1]} : vector<8x384xf32> to vector<8x128xf32>
    %277 = vector.extract_strided_slice %274 {offsets = [0, 256], sizes = [8, 128], strides = [1, 1]} : vector<8x384xf32> to vector<8x128xf32>
    %278 = vector.extract_strided_slice %268 {offsets = [0, 384], sizes = [8, 128], strides = [1, 1]} : vector<8x512xf32> to vector<8x128xf32>
    %279 = math.tanh %278 : vector<8x128xf32>
    %280 = arith.mulf %276, %261 : vector<8x128xf32>
    %281 = arith.mulf %275, %279 : vector<8x128xf32>
    %282 = arith.addf %280, %281 : vector<8x128xf32>
    %283 = math.tanh %282 : vector<8x128xf32>
    %284 = arith.mulf %277, %283 : vector<8x128xf32>
    %285 = arith.truncf %284 : vector<8x128xf32> to vector<8x128xbf16>
    %c1_i32_108 = arith.constant 1 : i32
    %286 = arith.index_cast %c1_i32_108 : i32 to index
    %c0_109 = arith.constant 0 : index
    %c0_110 = arith.constant 0 : index
    %287 = vector.load %arg15[%286, %c0_109, %c0_110] : memref<8x8x512xbf16, #tpu.memory_space<vmem>>, vector<1x8x512xbf16>
    %288 = vector.shape_cast %287 : vector<1x8x512xbf16> to vector<8x512xbf16>
    %289 = arith.extf %288 : vector<8x512xbf16> to vector<8x512xf32>
    %c0_111 = arith.constant 0 : index
    %c0_112 = arith.constant 0 : index
    %290 = vector.load %arg6[%c0_111, %c0_112] : memref<128x512xbf16, #tpu.memory_space<vmem>>, vector<128x512xbf16>
    %cst_113 = arith.constant dense<0.000000e+00> : vector<8x512xf32>
    %291 = tpu.matmul %285, %290, %cst_113 {dimension_numbers = #tpu.dot_dimension_numbers<[1], [0], [0], [1], [0, 0, 1, 1], [], []>} : vector<8x128xbf16>, vector<128x512xbf16>, vector<8x512xf32> -> vector<8x512xf32>
    %292 = arith.addf %289, %291 : vector<8x512xf32>
    %293 = vector.extract_strided_slice %292 {offsets = [0, 0], sizes = [8, 384], strides = [1, 1]} : vector<8x512xf32> to vector<8x384xf32>
    %294 = arith.negf %293 : vector<8x384xf32>
    %295 = math.exp %294 : vector<8x384xf32>
    %cst_114 = arith.constant 1.000000e+00 : f32
    %296 = vector.broadcast %cst_114 : f32 to vector<8x384xf32>
    %297 = arith.addf %296, %295 : vector<8x384xf32>
    %298 = arith.divf %296, %297 : vector<8x384xf32>
    %299 = vector.extract_strided_slice %298 {offsets = [0, 0], sizes = [8, 128], strides = [1, 1]} : vector<8x384xf32> to vector<8x128xf32>
    %300 = vector.extract_strided_slice %298 {offsets = [0, 128], sizes = [8, 128], strides = [1, 1]} : vector<8x384xf32> to vector<8x128xf32>
    %301 = vector.extract_strided_slice %298 {offsets = [0, 256], sizes = [8, 128], strides = [1, 1]} : vector<8x384xf32> to vector<8x128xf32>
    %302 = vector.extract_strided_slice %292 {offsets = [0, 384], sizes = [8, 128], strides = [1, 1]} : vector<8x512xf32> to vector<8x128xf32>
    %303 = math.tanh %302 : vector<8x128xf32>
    %304 = arith.mulf %300, %282 : vector<8x128xf32>
    %305 = arith.mulf %299, %303 : vector<8x128xf32>
    %306 = arith.addf %304, %305 : vector<8x128xf32>
    %307 = math.tanh %306 : vector<8x128xf32>
    %308 = arith.mulf %301, %307 : vector<8x128xf32>
    %309 = arith.truncf %308 : vector<8x128xf32> to vector<8x128xbf16>
    %c2_i32_115 = arith.constant 2 : i32
    %310 = arith.index_cast %c2_i32_115 : i32 to index
    %c0_116 = arith.constant 0 : index
    %c0_117 = arith.constant 0 : index
    %311 = vector.load %arg15[%310, %c0_116, %c0_117] : memref<8x8x512xbf16, #tpu.memory_space<vmem>>, vector<1x8x512xbf16>
    %312 = vector.shape_cast %311 : vector<1x8x512xbf16> to vector<8x512xbf16>
    %313 = arith.extf %312 : vector<8x512xbf16> to vector<8x512xf32>
    %c0_118 = arith.constant 0 : index
    %c0_119 = arith.constant 0 : index
    %314 = vector.load %arg6[%c0_118, %c0_119] : memref<128x512xbf16, #tpu.memory_space<vmem>>, vector<128x512xbf16>
    %cst_120 = arith.constant dense<0.000000e+00> : vector<8x512xf32>
    %315 = tpu.matmul %309, %314, %cst_120 {dimension_numbers = #tpu.dot_dimension_numbers<[1], [0], [0], [1], [0, 0, 1, 1], [], []>} : vector<8x128xbf16>, vector<128x512xbf16>, vector<8x512xf32> -> vector<8x512xf32>
    %316 = arith.addf %313, %315 : vector<8x512xf32>
    %317 = vector.extract_strided_slice %316 {offsets = [0, 0], sizes = [8, 384], strides = [1, 1]} : vector<8x512xf32> to vector<8x384xf32>
    %318 = arith.negf %317 : vector<8x384xf32>
    %319 = math.exp %318 : vector<8x384xf32>
    %cst_121 = arith.constant 1.000000e+00 : f32
    %320 = vector.broadcast %cst_121 : f32 to vector<8x384xf32>
    %321 = arith.addf %320, %319 : vector<8x384xf32>
    %322 = arith.divf %320, %321 : vector<8x384xf32>
    %323 = vector.extract_strided_slice %322 {offsets = [0, 0], sizes = [8, 128], strides = [1, 1]} : vector<8x384xf32> to vector<8x128xf32>
    %324 = vector.extract_strided_slice %322 {offsets = [0, 128], sizes = [8, 128], strides = [1, 1]} : vector<8x384xf32> to vector<8x128xf32>
    %325 = vector.extract_strided_slice %322 {offsets = [0, 256], sizes = [8, 128], strides = [1, 1]} : vector<8x384xf32> to vector<8x128xf32>
    %326 = vector.extract_strided_slice %316 {offsets = [0, 384], sizes = [8, 128], strides = [1, 1]} : vector<8x512xf32> to vector<8x128xf32>
    %327 = math.tanh %326 : vector<8x128xf32>
    %328 = arith.mulf %324, %306 : vector<8x128xf32>
    %329 = arith.mulf %323, %327 : vector<8x128xf32>
    %330 = arith.addf %328, %329 : vector<8x128xf32>
    %331 = math.tanh %330 : vector<8x128xf32>
    %332 = arith.mulf %325, %331 : vector<8x128xf32>
    %333 = arith.truncf %332 : vector<8x128xf32> to vector<8x128xbf16>
    %c3_i32_122 = arith.constant 3 : i32
    %334 = arith.index_cast %c3_i32_122 : i32 to index
    %c0_123 = arith.constant 0 : index
    %c0_124 = arith.constant 0 : index
    %335 = vector.load %arg15[%334, %c0_123, %c0_124] : memref<8x8x512xbf16, #tpu.memory_space<vmem>>, vector<1x8x512xbf16>
    %336 = vector.shape_cast %335 : vector<1x8x512xbf16> to vector<8x512xbf16>
    %337 = arith.extf %336 : vector<8x512xbf16> to vector<8x512xf32>
    %c0_125 = arith.constant 0 : index
    %c0_126 = arith.constant 0 : index
    %338 = vector.load %arg6[%c0_125, %c0_126] : memref<128x512xbf16, #tpu.memory_space<vmem>>, vector<128x512xbf16>
    %cst_127 = arith.constant dense<0.000000e+00> : vector<8x512xf32>
    %339 = tpu.matmul %333, %338, %cst_127 {dimension_numbers = #tpu.dot_dimension_numbers<[1], [0], [0], [1], [0, 0, 1, 1], [], []>} : vector<8x128xbf16>, vector<128x512xbf16>, vector<8x512xf32> -> vector<8x512xf32>
    %340 = arith.addf %337, %339 : vector<8x512xf32>
    %341 = vector.extract_strided_slice %340 {offsets = [0, 0], sizes = [8, 384], strides = [1, 1]} : vector<8x512xf32> to vector<8x384xf32>
    %342 = arith.negf %341 : vector<8x384xf32>
    %343 = math.exp %342 : vector<8x384xf32>
    %cst_128 = arith.constant 1.000000e+00 : f32
    %344 = vector.broadcast %cst_128 : f32 to vector<8x384xf32>
    %345 = arith.addf %344, %343 : vector<8x384xf32>
    %346 = arith.divf %344, %345 : vector<8x384xf32>
    %347 = vector.extract_strided_slice %346 {offsets = [0, 0], sizes = [8, 128], strides = [1, 1]} : vector<8x384xf32> to vector<8x128xf32>
    %348 = vector.extract_strided_slice %346 {offsets = [0, 128], sizes = [8, 128], strides = [1, 1]} : vector<8x384xf32> to vector<8x128xf32>
    %349 = vector.extract_strided_slice %346 {offsets = [0, 256], sizes = [8, 128], strides = [1, 1]} : vector<8x384xf32> to vector<8x128xf32>
    %350 = vector.extract_strided_slice %340 {offsets = [0, 384], sizes = [8, 128], strides = [1, 1]} : vector<8x512xf32> to vector<8x128xf32>
    %351 = math.tanh %350 : vector<8x128xf32>
    %352 = arith.mulf %348, %330 : vector<8x128xf32>
    %353 = arith.mulf %347, %351 : vector<8x128xf32>
    %354 = arith.addf %352, %353 : vector<8x128xf32>
    %355 = math.tanh %354 : vector<8x128xf32>
    %356 = arith.mulf %349, %355 : vector<8x128xf32>
    %357 = arith.truncf %356 : vector<8x128xf32> to vector<8x128xbf16>
    %c4_i32_129 = arith.constant 4 : i32
    %358 = arith.index_cast %c4_i32_129 : i32 to index
    %c0_130 = arith.constant 0 : index
    %c0_131 = arith.constant 0 : index
    %359 = vector.load %arg15[%358, %c0_130, %c0_131] : memref<8x8x512xbf16, #tpu.memory_space<vmem>>, vector<1x8x512xbf16>
    %360 = vector.shape_cast %359 : vector<1x8x512xbf16> to vector<8x512xbf16>
    %361 = arith.extf %360 : vector<8x512xbf16> to vector<8x512xf32>
    %c0_132 = arith.constant 0 : index
    %c0_133 = arith.constant 0 : index
    %362 = vector.load %arg6[%c0_132, %c0_133] : memref<128x512xbf16, #tpu.memory_space<vmem>>, vector<128x512xbf16>
    %cst_134 = arith.constant dense<0.000000e+00> : vector<8x512xf32>
    %363 = tpu.matmul %357, %362, %cst_134 {dimension_numbers = #tpu.dot_dimension_numbers<[1], [0], [0], [1], [0, 0, 1, 1], [], []>} : vector<8x128xbf16>, vector<128x512xbf16>, vector<8x512xf32> -> vector<8x512xf32>
    %364 = arith.addf %361, %363 : vector<8x512xf32>
    %365 = vector.extract_strided_slice %364 {offsets = [0, 0], sizes = [8, 384], strides = [1, 1]} : vector<8x512xf32> to vector<8x384xf32>
    %366 = arith.negf %365 : vector<8x384xf32>
    %367 = math.exp %366 : vector<8x384xf32>
    %cst_135 = arith.constant 1.000000e+00 : f32
    %368 = vector.broadcast %cst_135 : f32 to vector<8x384xf32>
    %369 = arith.addf %368, %367 : vector<8x384xf32>
    %370 = arith.divf %368, %369 : vector<8x384xf32>
    %371 = vector.extract_strided_slice %370 {offsets = [0, 0], sizes = [8, 128], strides = [1, 1]} : vector<8x384xf32> to vector<8x128xf32>
    %372 = vector.extract_strided_slice %370 {offsets = [0, 128], sizes = [8, 128], strides = [1, 1]} : vector<8x384xf32> to vector<8x128xf32>
    %373 = vector.extract_strided_slice %370 {offsets = [0, 256], sizes = [8, 128], strides = [1, 1]} : vector<8x384xf32> to vector<8x128xf32>
    %374 = vector.extract_strided_slice %364 {offsets = [0, 384], sizes = [8, 128], strides = [1, 1]} : vector<8x512xf32> to vector<8x128xf32>
    %375 = math.tanh %374 : vector<8x128xf32>
    %376 = arith.mulf %372, %354 : vector<8x128xf32>
    %377 = arith.mulf %371, %375 : vector<8x128xf32>
    %378 = arith.addf %376, %377 : vector<8x128xf32>
    %379 = math.tanh %378 : vector<8x128xf32>
    %380 = arith.mulf %373, %379 : vector<8x128xf32>
    %381 = arith.truncf %380 : vector<8x128xf32> to vector<8x128xbf16>
    %c5_i32_136 = arith.constant 5 : i32
    %382 = arith.index_cast %c5_i32_136 : i32 to index
    %c0_137 = arith.constant 0 : index
    %c0_138 = arith.constant 0 : index
    %383 = vector.load %arg15[%382, %c0_137, %c0_138] : memref<8x8x512xbf16, #tpu.memory_space<vmem>>, vector<1x8x512xbf16>
    %384 = vector.shape_cast %383 : vector<1x8x512xbf16> to vector<8x512xbf16>
    %385 = arith.extf %384 : vector<8x512xbf16> to vector<8x512xf32>
    %c0_139 = arith.constant 0 : index
    %c0_140 = arith.constant 0 : index
    %386 = vector.load %arg6[%c0_139, %c0_140] : memref<128x512xbf16, #tpu.memory_space<vmem>>, vector<128x512xbf16>
    %cst_141 = arith.constant dense<0.000000e+00> : vector<8x512xf32>
    %387 = tpu.matmul %381, %386, %cst_141 {dimension_numbers = #tpu.dot_dimension_numbers<[1], [0], [0], [1], [0, 0, 1, 1], [], []>} : vector<8x128xbf16>, vector<128x512xbf16>, vector<8x512xf32> -> vector<8x512xf32>
    %388 = arith.addf %385, %387 : vector<8x512xf32>
    %389 = vector.extract_strided_slice %388 {offsets = [0, 0], sizes = [8, 384], strides = [1, 1]} : vector<8x512xf32> to vector<8x384xf32>
    %390 = arith.negf %389 : vector<8x384xf32>
    %391 = math.exp %390 : vector<8x384xf32>
    %cst_142 = arith.constant 1.000000e+00 : f32
    %392 = vector.broadcast %cst_142 : f32 to vector<8x384xf32>
    %393 = arith.addf %392, %391 : vector<8x384xf32>
    %394 = arith.divf %392, %393 : vector<8x384xf32>
    %395 = vector.extract_strided_slice %394 {offsets = [0, 0], sizes = [8, 128], strides = [1, 1]} : vector<8x384xf32> to vector<8x128xf32>
    %396 = vector.extract_strided_slice %394 {offsets = [0, 128], sizes = [8, 128], strides = [1, 1]} : vector<8x384xf32> to vector<8x128xf32>
    %397 = vector.extract_strided_slice %394 {offsets = [0, 256], sizes = [8, 128], strides = [1, 1]} : vector<8x384xf32> to vector<8x128xf32>
    %398 = vector.extract_strided_slice %388 {offsets = [0, 384], sizes = [8, 128], strides = [1, 1]} : vector<8x512xf32> to vector<8x128xf32>
    %399 = math.tanh %398 : vector<8x128xf32>
    %400 = arith.mulf %396, %378 : vector<8x128xf32>
    %401 = arith.mulf %395, %399 : vector<8x128xf32>
    %402 = arith.addf %400, %401 : vector<8x128xf32>
    %403 = math.tanh %402 : vector<8x128xf32>
    %404 = arith.mulf %397, %403 : vector<8x128xf32>
    %405 = arith.truncf %404 : vector<8x128xf32> to vector<8x128xbf16>
    %c6_i32_143 = arith.constant 6 : i32
    %406 = arith.index_cast %c6_i32_143 : i32 to index
    %c0_144 = arith.constant 0 : index
    %c0_145 = arith.constant 0 : index
    %407 = vector.load %arg15[%406, %c0_144, %c0_145] : memref<8x8x512xbf16, #tpu.memory_space<vmem>>, vector<1x8x512xbf16>
    %408 = vector.shape_cast %407 : vector<1x8x512xbf16> to vector<8x512xbf16>
    %409 = arith.extf %408 : vector<8x512xbf16> to vector<8x512xf32>
    %c0_146 = arith.constant 0 : index
    %c0_147 = arith.constant 0 : index
    %410 = vector.load %arg6[%c0_146, %c0_147] : memref<128x512xbf16, #tpu.memory_space<vmem>>, vector<128x512xbf16>
    %cst_148 = arith.constant dense<0.000000e+00> : vector<8x512xf32>
    %411 = tpu.matmul %405, %410, %cst_148 {dimension_numbers = #tpu.dot_dimension_numbers<[1], [0], [0], [1], [0, 0, 1, 1], [], []>} : vector<8x128xbf16>, vector<128x512xbf16>, vector<8x512xf32> -> vector<8x512xf32>
    %412 = arith.addf %409, %411 : vector<8x512xf32>
    %413 = vector.extract_strided_slice %412 {offsets = [0, 0], sizes = [8, 384], strides = [1, 1]} : vector<8x512xf32> to vector<8x384xf32>
    %414 = arith.negf %413 : vector<8x384xf32>
    %415 = math.exp %414 : vector<8x384xf32>
    %cst_149 = arith.constant 1.000000e+00 : f32
    %416 = vector.broadcast %cst_149 : f32 to vector<8x384xf32>
    %417 = arith.addf %416, %415 : vector<8x384xf32>
    %418 = arith.divf %416, %417 : vector<8x384xf32>
    %419 = vector.extract_strided_slice %418 {offsets = [0, 0], sizes = [8, 128], strides = [1, 1]} : vector<8x384xf32> to vector<8x128xf32>
    %420 = vector.extract_strided_slice %418 {offsets = [0, 128], sizes = [8, 128], strides = [1, 1]} : vector<8x384xf32> to vector<8x128xf32>
    %421 = vector.extract_strided_slice %418 {offsets = [0, 256], sizes = [8, 128], strides = [1, 1]} : vector<8x384xf32> to vector<8x128xf32>
    %422 = vector.extract_strided_slice %412 {offsets = [0, 384], sizes = [8, 128], strides = [1, 1]} : vector<8x512xf32> to vector<8x128xf32>
    %423 = math.tanh %422 : vector<8x128xf32>
    %424 = arith.mulf %420, %402 : vector<8x128xf32>
    %425 = arith.mulf %419, %423 : vector<8x128xf32>
    %426 = arith.addf %424, %425 : vector<8x128xf32>
    %427 = math.tanh %426 : vector<8x128xf32>
    %428 = arith.mulf %421, %427 : vector<8x128xf32>
    %429 = arith.truncf %428 : vector<8x128xf32> to vector<8x128xbf16>
    %c7_i32_150 = arith.constant 7 : i32
    %430 = arith.index_cast %c7_i32_150 : i32 to index
    %c0_151 = arith.constant 0 : index
    %c0_152 = arith.constant 0 : index
    %431 = vector.load %arg15[%430, %c0_151, %c0_152] : memref<8x8x512xbf16, #tpu.memory_space<vmem>>, vector<1x8x512xbf16>
    %432 = vector.shape_cast %431 : vector<1x8x512xbf16> to vector<8x512xbf16>
    %433 = arith.extf %432 : vector<8x512xbf16> to vector<8x512xf32>
    %c0_153 = arith.constant 0 : index
    %c0_154 = arith.constant 0 : index
    %434 = vector.load %arg6[%c0_153, %c0_154] : memref<128x512xbf16, #tpu.memory_space<vmem>>, vector<128x512xbf16>
    %cst_155 = arith.constant dense<0.000000e+00> : vector<8x512xf32>
    %435 = tpu.matmul %429, %434, %cst_155 {dimension_numbers = #tpu.dot_dimension_numbers<[1], [0], [0], [1], [0, 0, 1, 1], [], []>} : vector<8x128xbf16>, vector<128x512xbf16>, vector<8x512xf32> -> vector<8x512xf32>
    %436 = arith.addf %433, %435 : vector<8x512xf32>
    %437 = vector.extract_strided_slice %436 {offsets = [0, 0], sizes = [8, 384], strides = [1, 1]} : vector<8x512xf32> to vector<8x384xf32>
    %438 = arith.negf %437 : vector<8x384xf32>
    %439 = math.exp %438 : vector<8x384xf32>
    %cst_156 = arith.constant 1.000000e+00 : f32
    %440 = vector.broadcast %cst_156 : f32 to vector<8x384xf32>
    %441 = arith.addf %440, %439 : vector<8x384xf32>
    %442 = arith.divf %440, %441 : vector<8x384xf32>
    %443 = vector.extract_strided_slice %442 {offsets = [0, 0], sizes = [8, 128], strides = [1, 1]} : vector<8x384xf32> to vector<8x128xf32>
    %444 = vector.extract_strided_slice %442 {offsets = [0, 128], sizes = [8, 128], strides = [1, 1]} : vector<8x384xf32> to vector<8x128xf32>
    %445 = vector.extract_strided_slice %442 {offsets = [0, 256], sizes = [8, 128], strides = [1, 1]} : vector<8x384xf32> to vector<8x128xf32>
    %446 = vector.extract_strided_slice %436 {offsets = [0, 384], sizes = [8, 128], strides = [1, 1]} : vector<8x512xf32> to vector<8x128xf32>
    %447 = math.tanh %446 : vector<8x128xf32>
    %448 = arith.mulf %444, %426 : vector<8x128xf32>
    %449 = arith.mulf %443, %447 : vector<8x128xf32>
    %450 = arith.addf %448, %449 : vector<8x128xf32>
    %451 = math.tanh %450 : vector<8x128xf32>
    %452 = arith.mulf %445, %451 : vector<8x128xf32>
    %453 = arith.truncf %452 : vector<8x128xf32> to vector<8x128xbf16>
    %c8_i32_157 = arith.constant 8 : i32
    %c1_158 = arith.constant 1 : index
    %c0_159 = arith.constant 0 : index
    %c0_160 = arith.constant 0 : index
    %454 = vector.load %arg13[%c1_158, %c0_159, %c0_160] : memref<2x8x128xf32, #tpu.memory_space<vmem>>, vector<1x8x128xf32>
    %455 = vector.shape_cast %454 : vector<1x8x128xf32> to vector<8x128xf32>
    %456 = vector.shape_cast %452 : vector<8x128xf32> to vector<1x8x128xf32>
    tpu.vector_store %arg13[%c1_158, %c0_159, %c0_160], %456 {strides = array<i32>} : memref<2x8x128xf32, #tpu.memory_space<vmem>>, vector<1x8x128xf32>,
    %c1_161 = arith.constant 1 : index
    %c0_162 = arith.constant 0 : index
    %c0_163 = arith.constant 0 : index
    %457 = vector.load %arg14[%c1_161, %c0_162, %c0_163] : memref<2x8x128xf32, #tpu.memory_space<vmem>>, vector<1x8x128xf32>
    %458 = vector.shape_cast %457 : vector<1x8x128xf32> to vector<8x128xf32>
    %459 = vector.shape_cast %450 : vector<8x128xf32> to vector<1x8x128xf32>
    tpu.vector_store %arg14[%c1_161, %c0_162, %c0_163], %459 {strides = array<i32>} : memref<2x8x128xf32, #tpu.memory_space<vmem>>, vector<1x8x128xf32>,
    %c0_164 = arith.constant 0 : index
    %c0_165 = arith.constant 0 : index
    %460 = vector.load %arg8[%c0_164, %c0_165] : memref<128x128xbf16, #tpu.memory_space<vmem>>, vector<128x128xbf16>
    %cst_166 = arith.constant dense<0.000000e+00> : vector<8x128xf32>
    %461 = tpu.matmul %453, %460, %cst_166 {dimension_numbers = #tpu.dot_dimension_numbers<[1], [0], [0], [1], [0, 0, 1, 1], [], []>} : vector<8x128xbf16>, vector<128x128xbf16>, vector<8x128xf32> -> vector<8x128xf32>
    %c0_167 = arith.constant 0 : index
    %c0_168 = arith.constant 0 : index
    %462 = vector.load %arg9[%c0_167, %c0_168] : memref<1x128xf32, #tpu.memory_space<vmem>>, vector<1x128xf32>
    %463 = vector.broadcast %462 : vector<1x128xf32> to vector<8x128xf32>
    %464 = arith.addf %461, %463 : vector<8x128xf32>
    %465 = arith.negf %464 : vector<8x128xf32>
    %466 = math.exp %465 : vector<8x128xf32>
    %cst_169 = arith.constant 1.000000e+00 : f32
    %467 = vector.broadcast %cst_169 : f32 to vector<8x128xf32>
    %468 = arith.addf %467, %466 : vector<8x128xf32>
    %469 = arith.divf %467, %468 : vector<8x128xf32>
    %c0_170 = arith.constant 0 : index
    %c0_171 = arith.constant 0 : index
    %470 = vector.load %arg12[%c0_170, %c0_171] : memref<8x128xf32, #tpu.memory_space<vmem>>, vector<8x128xf32>
    tpu.vector_store %arg12[%c0_170, %c0_171], %469 {strides = array<i32>} : memref<8x128xf32, #tpu.memory_space<vmem>>, vector<8x128xf32>,
    return
  }
  func.func @transform_0(%arg0: i32) -> (i32, i32, i32) {
    %c0_i32 = arith.constant 0 : i32
    %c0_i32_0 = arith.constant 0 : i32
    %c0_i32_1 = arith.constant 0 : i32
    return %c0_i32, %arg0, %c0_i32_0 : i32, i32, i32
  }
  func.func @transform_1(%arg0: i32) -> (i32, i32) {
    %c0_i32 = arith.constant 0 : i32
    %c0_i32_0 = arith.constant 0 : i32
    %c0_i32_1 = arith.constant 0 : i32
    return %c0_i32, %c0_i32_0 : i32, i32
  }
  func.func @transform_2(%arg0: i32) -> (i32, i32) {
    %c0_i32 = arith.constant 0 : i32
    %c0_i32_0 = arith.constant 0 : i32
    %c0_i32_1 = arith.constant 0 : i32
    return %c0_i32, %c0_i32_0 : i32, i32
  }
  func.func @transform_3(%arg0: i32) -> (i32, i32) {
    %c0_i32 = arith.constant 0 : i32
    %c0_i32_0 = arith.constant 0 : i32
    %c0_i32_1 = arith.constant 0 : i32
    return %c0_i32, %c0_i32_0 : i32, i32
  }
  func.func @transform_4(%arg0: i32) -> (i32, i32) {
    %c0_i32 = arith.constant 0 : i32
    %c0_i32_0 = arith.constant 0 : i32
    %c0_i32_1 = arith.constant 0 : i32
    return %c0_i32, %c0_i32_0 : i32, i32
  }
  func.func @transform_5(%arg0: i32) -> (i32, i32) {
    %c0_i32 = arith.constant 0 : i32
    %c0_i32_0 = arith.constant 0 : i32
    %c0_i32_1 = arith.constant 0 : i32
    return %c0_i32, %c0_i32_0 : i32, i32
  }
  func.func @transform_6(%arg0: i32) -> (i32, i32) {
    %c0_i32 = arith.constant 0 : i32
    %c0_i32_0 = arith.constant 0 : i32
    %c0_i32_1 = arith.constant 0 : i32
    return %c0_i32, %c0_i32_0 : i32, i32
  }
  func.func @transform_7(%arg0: i32) -> (i32, i32) {
    %c0_i32 = arith.constant 0 : i32
    %c0_i32_0 = arith.constant 0 : i32
    %c0_i32_1 = arith.constant 0 : i32
    return %c0_i32, %c0_i32_0 : i32, i32
  }
  func.func @transform_8(%arg0: i32) -> (i32, i32) {
    %c0_i32 = arith.constant 0 : i32
    %c0_i32_0 = arith.constant 0 : i32
    %c0_i32_1 = arith.constant 0 : i32
    return %c0_i32, %c0_i32_0 : i32, i32
  }
  func.func @transform_9(%arg0: i32) -> (i32, i32, i32) {
    %c0_i32 = arith.constant 0 : i32
    %c0_i32_0 = arith.constant 0 : i32
    %c0_i32_1 = arith.constant 0 : i32
    return %c0_i32, %arg0, %c0_i32_0 : i32, i32, i32
  }
  func.func @transform_10(%arg0: i32) -> (i32, i32, i32) {
    %c0_i32 = arith.constant 0 : i32
    %c0_i32_0 = arith.constant 0 : i32
    %c0_i32_1 = arith.constant 0 : i32
    return %c0_i32, %arg0, %c0_i32_0 : i32, i32, i32
  }
  func.func @transform_11(%arg0: i32) -> (i32, i32) {
    %c0_i32 = arith.constant 0 : i32
    %c0_i32_0 = arith.constant 0 : i32
    return %arg0, %c0_i32 : i32, i32
  }
  func.func @transform_12(%arg0: i32) -> (i32, i32, i32) {
    %c0_i32 = arith.constant 0 : i32
    %c0_i32_0 = arith.constant 0 : i32
    %c0_i32_1 = arith.constant 0 : i32
    return %c0_i32, %arg0, %c0_i32_0 : i32, i32, i32
  }
  func.func @transform_13(%arg0: i32) -> (i32, i32, i32) {
    %c0_i32 = arith.constant 0 : i32
    %c0_i32_0 = arith.constant 0 : i32
    %c0_i32_1 = arith.constant 0 : i32
    return %c0_i32, %arg0, %c0_i32_0 : i32, i32, i32
  }
}

</mosaic_0001>

<bundles_post_ra>
// kernel: tpu_custom_call.1
= control target key start
LH: loop header
LB: loop body
LE: loop exit
PB: predicated region body
PF: predicated region fallthrough
CT: control target
= control target key end

     0   :  { %19 = vsyncpa [#allocation5], 0  ;;  %s7805_s0 = inlined_call_operand.hbm [shape: bf16[8,8,128], index: 0, kind: input, shape index: {}]   ;;  %s7806_s1 = inlined_call_operand.hbm [shape: bf16[128,512], index: 1, kind: input, shape index: {}]   ;;  %s7807_s2 = inlined_call_operand.hbm [shape: bf16[128,512], index: 2, kind: input, shape index: {}]   ;;  %s7808_s3 = inlined_call_operand.hbm [shape: f32[1,512], index: 3, kind: input, shape index: {}]   ;;  %s7809_s4 = inlined_call_operand.hbm [shape: bf16[128,512], index: 4, kind: input, shape index: {}]   ;;  %s7810_s5 = inlined_call_operand.hbm [shape: bf16[128,512], index: 5, kind: input, shape index: {}]   ;;  %s7811_s6 = inlined_call_operand.hbm [shape: f32[1,512], index: 6, kind: input, shape index: {}]   ;;  %s7812_s7 = inlined_call_operand.hbm [shape: bf16[128,128], index: 7, kind: input, shape index: {}]   ;;  %s7813_s8 = inlined_call_operand.vmem [shape: f32[1,128], index: 8, kind: input, shape index: {}]   ;;  %s7814_s9 = inlined_call_operand.vmem [shape: f32[2,8,128], index: 9, kind: input, shape index: {}]   ;;  %s7815_s10 = inlined_call_operand.vmem [shape: f32[2,8,128], index: 10, kind: input, shape index: {}]   ;;  %s7816_s11 = inlined_call_operand.hbm [shape: f32[8,128], index: 11, kind: output, shape index: {0}]   ;;  %s7817_s12 = inlined_call_operand.hbm [shape: f32[2,8,128], index: 12, kind: output, shape index: {1}]   ;;  %s7818_s13 = inlined_call_operand.hbm [shape: f32[2,8,128], index: 13, kind: output, shape index: {2}]  }
   0x1   :  { %20 = vsyncpa [#allocation8], 0 }
   0x2   :  { %21 = vsyncpa [#allocation11], 0 }
   0x3   :  { %22 = vsyncpa [#allocation14], 0 }
   0x4   :  { %23 = vsyncpa [#allocation17], 0 }
   0x5   :  { %24 = vsyncpa [#allocation6], 0 }
   0x6   :  { %25 = vsyncpa [#allocation20], 0  ;;  %s6450_s25 = smov [#allocation7]   ;;  %s6194_s29 = scalar_lea.hbm %s7806_s1, 4096 }
   0x7   :  { %s43_s26 = sshll.u32 %s6450_s25, 4  ;;  %p6195_p0 = scmp.ne.s32.totalorder %s7806_s1, %s6194_s29  ;;  %s44_s26 = int_to_ptr.vmem [resolvable:$true] %s43_s26 }
   0x8   :  { %p6198_p1 = scmp.lt.u32.totalorder %s6194_s29, %s7806_s1 }
   0xa   :  { %p6200_p2 = pnand %p6198_p1, %p6195_p0 }
   0xc   :  { %6203 = shalt.err (!%p6200_p2)
}
   0xd   :  { %s6204_s17 = scalar_lea.vmem %s44_s26, 4096  ;;  %p6209_p4 = scmp.lt.s32.totalorder %s44_s26, %s44_s26 }
   0xe   :  { %p6205_p3 = scmp.ne.s32.totalorder %s44_s26, %s6204_s17  ;;  %p6210_p5 = scmp.lt.s32.totalorder %s6204_s17, %s6204_s17 }
  0x10   :  { %p6211_p6 = por %p6210_p5, %p6209_p4 }
  0x12   :  { %p6212_p7 = pnand %p6211_p6, %p6205_p3 }
  0x14   :  { %6215 = shalt.err (!%p6212_p7)
}
  0x15   :  { %s6451_s18 = smov 256   ;;  %s6452_s19 = smov 16  }
  0x16   :  { %49 = dma.hbm_to_vmem [thread:$0]  %s7806_s1, 4096, %s44_s26, [#allocation8], %s6451_s18, %s6451_s18, %s6452_s19  }
  0x17   :  { %s6453_s22 = smov [#allocation10]   ;;  %s6454_s24 = smov [#allocation13]  }
  0x18   :  { %s68_s23 = sshll.u32 %s6453_s22, 4  ;;  %s89_s25 = sshll.u32 %s6454_s24, 4  ;;  %s69_s23 = int_to_ptr.vmem [resolvable:$true] %s68_s23  ;;  %s90_s25 = int_to_ptr.vmem [resolvable:$true] %s89_s25 }
  0x19   :  { %s6216_s29 = scalar_lea.hbm %s7808_s3, 64 }
  0x1a   :  { %p6217_p8 = scmp.ne.s32.totalorder %s7808_s3, %s6216_s29  ;;  %p6220_p9 = scmp.lt.u32.totalorder %s6216_s29, %s7808_s3 }
  0x1c   :  { %p6222_p10 = pnand %p6220_p9, %p6217_p8 }
  0x1e   :  { %6225 = shalt.err (!%p6222_p10)
}
  0x1f   :  { %s6226_s1 = scalar_lea.vmem %s69_s23, 64  ;;  %p6231_p12 = scmp.lt.s32.totalorder %s69_s23, %s69_s23 }
  0x20   :  { %p6227_p11 = scmp.ne.s32.totalorder %s69_s23, %s6226_s1  ;;  %p6232_p13 = scmp.lt.s32.totalorder %s6226_s1, %s6226_s1 }
  0x22   :  { %p6233_p0 = por %p6232_p13, %p6231_p12 }
  0x24   :  { %p6234_p1 = pnand %p6233_p0, %p6227_p11 }
  0x26   :  { %6237 = shalt.err (!%p6234_p1)
}
  0x27   :  { %71 = dma.hbm_to_vmem [thread:$0]  %s7808_s3, 64, %s69_s23, [#allocation11]  }
  0x28   :  { %s6238_s22 = scalar_lea.hbm %s7810_s5, 4096 }
  0x29   :  { %p6239_p2 = scmp.ne.s32.totalorder %s7810_s5, %s6238_s22  ;;  %p6242_p3 = scmp.lt.u32.totalorder %s6238_s22, %s7810_s5 }
  0x2b   :  { %p6244_p4 = pnand %p6242_p3, %p6239_p2 }
  0x2d   :  { %6247 = shalt.err (!%p6244_p4)
}
  0x2e   :  { %s6248_s30 = scalar_lea.vmem %s90_s25, 4096  ;;  %p6253_p6 = scmp.lt.s32.totalorder %s90_s25, %s90_s25 }
  0x2f   :  { %p6249_p5 = scmp.ne.s32.totalorder %s90_s25, %s6248_s30  ;;  %p6254_p7 = scmp.lt.s32.totalorder %s6248_s30, %s6248_s30 }
  0x31   :  { %p6255_p8 = por %p6254_p7, %p6253_p6 }
  0x33   :  { %p6256_p9 = pnand %p6255_p8, %p6249_p5 }
  0x35   :  { %6259 = shalt.err (!%p6256_p9)
}
  0x36   :  { %95 = dma.hbm_to_vmem [thread:$0]  %s7810_s5, 4096, %s90_s25, [#allocation14], %s6451_s18, %s6451_s18, %s6452_s19  }
  0x37   :  { %s6455_s14 = smov [#allocation4]   ;;  %s6260_s26 = scalar_lea.hbm %s7805_s0, 512 }
  0x38   :  { %s31_s15 = sshll.u32 %s6455_s14, 4  ;;  %p6261_p10 = scmp.ne.s32.totalorder %s7805_s0, %s6260_s26  ;;  %s32_s15 = int_to_ptr.vmem [resolvable:$true] %s31_s15 }
  0x39   :  { %p6264_p11 = scmp.lt.u32.totalorder %s6260_s26, %s7805_s0 }
  0x3b   :  { %p6266_p12 = pnand %p6264_p11, %p6261_p10 }
  0x3d   :  { %6269 = shalt.err (!%p6266_p12)
}
  0x3e   :  { %s6270_s24 = scalar_lea.vmem %s32_s15, 512  ;;  %p6275_p0 = scmp.lt.s32.totalorder %s32_s15, %s32_s15 }
  0x3f   :  { %p6271_p13 = scmp.ne.s32.totalorder %s32_s15, %s6270_s24  ;;  %p6276_p1 = scmp.lt.s32.totalorder %s6270_s24, %s6270_s24 }
  0x41   :  { %p6277_p2 = por %p6276_p1, %p6275_p0 }
  0x43   :  { %p6278_p3 = pnand %p6277_p2, %p6271_p13 }
  0x45   :  { %6281 = shalt.err (!%p6278_p3)
}
  0x46   :  { %s6456_s5 = smov 64   ;;  %s6457_s25 = smov 4  }
  0x47   :  { %37 = dma.hbm_to_vmem [thread:$0]  %s7805_s0, 512, %s32_s15, [#allocation5], %s6456_s5, %s6456_s5, %s6457_s25  }
  0x48   :  { %s6458_s29 = smov [#allocation9]   ;;  %s6459_s3 = smov [#allocation12]  }
  0x49   :  { %s55_s30 = sshll.u32 %s6458_s29, 4  ;;  %s77_s23 = sshll.u32 %s6459_s3, 4  ;;  %s56_s30 = int_to_ptr.vmem [resolvable:$true] %s55_s30  ;;  %s6597_s23 = int_to_ptr.vmem [resolvable:$true] %s77_s23 }
  0x4a   :  { %s6282_s1 = scalar_lea.hbm %s7807_s2, 4096 }
  0x4b   :  { %p6283_p4 = scmp.ne.s32.totalorder %s7807_s2, %s6282_s1  ;;  %p6286_p5 = scmp.lt.u32.totalorder %s6282_s1, %s7807_s2 }
  0x4d   :  { %p6288_p6 = pnand %p6286_p5, %p6283_p4 }
  0x4f   :  { %6291 = shalt.err (!%p6288_p6)
}
  0x50   :  { %s6292_s0 = scalar_lea.vmem %s56_s30, 4096  ;;  %p6297_p8 = scmp.lt.s32.totalorder %s56_s30, %s56_s30 }
  0x51   :  { %p6293_p7 = scmp.ne.s32.totalorder %s56_s30, %s6292_s0  ;;  %p6298_p9 = scmp.lt.s32.totalorder %s6292_s0, %s6292_s0 }
  0x53   :  { %p6299_p10 = por %p6298_p9, %p6297_p8 }
  0x55   :  { %p6300_p11 = pnand %p6299_p10, %p6293_p7 }
  0x57   :  { %6303 = shalt.err (!%p6300_p11)
}
  0x58   :  { %61 = dma.hbm_to_vmem [thread:$0]  %s7807_s2, 4096, %s56_s30, [#allocation8], %s6451_s18, %s6451_s18, %s6452_s19  }
  0x59   :  { %s6304_s28 = scalar_lea.hbm %s7809_s4, 4096 }
  0x5a   :  { %p6305_p12 = scmp.ne.s32.totalorder %s7809_s4, %s6304_s28  ;;  %p6308_p13 = scmp.lt.u32.totalorder %s6304_s28, %s7809_s4 }
  0x5c   :  { %p6310_p0 = pnand %p6308_p13, %p6305_p12 }
  0x5e   :  { %6313 = shalt.err (!%p6310_p0)
}
  0x5f   :  { %s6314_s1 = scalar_lea.vmem %s6597_s23, 4096  ;;  %p6319_p2 = scmp.lt.s32.totalorder %s6597_s23, %s6597_s23 }
  0x60   :  { %p6315_p1 = scmp.ne.s32.totalorder %s6597_s23, %s6314_s1  ;;  %p6320_p3 = scmp.lt.s32.totalorder %s6314_s1, %s6314_s1 }
  0x62   :  { %p6321_p4 = por %p6320_p3, %p6319_p2 }
  0x64   :  { %p6322_p5 = pnand %p6321_p4, %p6315_p1 }
  0x66   :  { %6325 = shalt.err (!%p6322_p5)
}
  0x67   :  { %83 = dma.hbm_to_vmem [thread:$0]  %s7809_s4, 4096, %s6597_s23, [#allocation11], %s6451_s18, %s6451_s18, %s6452_s19  }
  0x68   :  { %s6460_s26 = smov [#allocation15]   ;;  %s6461_s20 = smov [#allocation16]  }
  0x69   :  { %s102_s17 = sshll.u32 %s6460_s26, 4  ;;  %s111_s21 = sshll.u32 %s6461_s20, 4  ;;  %s103_s17 = int_to_ptr.vmem [resolvable:$true] %s102_s17  ;;  %s6634_s21 = int_to_ptr.vmem [resolvable:$true] %s111_s21 }
  0x6a   :  { %s6326_s22 = scalar_lea.hbm %s7811_s6, 64 }
  0x6b   :  { %p6327_p6 = scmp.ne.s32.totalorder %s7811_s6, %s6326_s22  ;;  %p6330_p7 = scmp.lt.u32.totalorder %s6326_s22, %s7811_s6 }
  0x6d   :  { %p6332_p8 = pnand %p6330_p7, %p6327_p6 }
  0x6f   :  { %6335 = shalt.err (!%p6332_p8)
}
  0x70   :  { %s6336_s4 = scalar_lea.vmem %s103_s17, 64  ;;  %p6341_p10 = scmp.lt.s32.totalorder %s103_s17, %s103_s17 }
  0x71   :  { %p6337_p9 = scmp.ne.s32.totalorder %s103_s17, %s6336_s4  ;;  %p6342_p11 = scmp.lt.s32.totalorder %s6336_s4, %s6336_s4 }
  0x73   :  { %p6343_p12 = por %p6342_p11, %p6341_p10 }
  0x75   :  { %p6344_p13 = pnand %p6343_p12, %p6337_p9 }
  0x77   :  { %6347 = shalt.err (!%p6344_p13)
}
  0x78   :  { %105 = dma.hbm_to_vmem [thread:$0]  %s7811_s6, 64, %s103_s17, [#allocation14]  }
  0x79   :  { %s6348_s14 = scalar_lea.hbm %s7812_s7, 1024 }
  0x7a   :  { %p6349_p0 = scmp.ne.s32.totalorder %s7812_s7, %s6348_s14  ;;  %p6352_p1 = scmp.lt.u32.totalorder %s6348_s14, %s7812_s7 }
  0x7c   :  { %p6354_p2 = pnand %p6352_p1, %p6349_p0 }
  0x7e   :  { %6357 = shalt.err (!%p6354_p2)
}
  0x7f   :  { %s6358_s26 = scalar_lea.vmem %s6634_s21, 1024  ;;  %p6363_p4 = scmp.lt.s32.totalorder %s6634_s21, %s6634_s21 }
  0x80   :  { %p6359_p3 = scmp.ne.s32.totalorder %s6634_s21, %s6358_s26  ;;  %p6364_p5 = scmp.lt.s32.totalorder %s6358_s26, %s6358_s26 }
  0x82   :  { %p6365_p6 = por %p6364_p5, %p6363_p4 }
  0x84   :  { %p6366_p7 = pnand %p6365_p6, %p6359_p3 }
  0x86   :  { %6369 = shalt.err (!%p6366_p7)
}
  0x87   :  { %117 = dma.hbm_to_vmem [thread:$0]  %s7812_s7, 1024, %s6634_s21, [#allocation17], %s6456_s5, %s6456_s5, %s6457_s25  }
  0x88   :  { %6436 = dma.done.wait [#allocation5], 512  }
  0x89   :  { %6437 = vsyncadd [#allocation5], 4294966784 }
  0x8a   :  { %6438 = dma.done.wait [#allocation8], 8192  }
  0x8b   :  { %6439 = vsyncadd [#allocation8], 4294959104 }
  0x8c   :  { %6440 = dma.done.wait [#allocation11], 4160  }
  0x8d   :  { %6441 = vsyncadd [#allocation11], 4294963136 }
  0x8e   :  { %6442 = dma.done.wait [#allocation14], 4160  }
  0x8f   :  { %6443 = vsyncadd [#allocation14], 4294963136 }
  0x90   :  { %6444 = dma.done.wait [#allocation17], 1024  }
  0x91   :  { %6445 = vsyncadd [#allocation17], 4294966272  ;;  %v7823_v0 = vmov 0   ;;  %v5622_v1 = vld [vmem:[#allocation7 + $0x4] ss:$16 sps:$4 sm:$0xff]   ;;  %v5683_v44 = vld [vmem:[#allocation4 + $0x8] sm:$0xff]  }
  0x92   :  { %406 = vmatprep.mubr.bf16.mxu0 %v7823_v0  ;;  %479 = vmatprep.mubr.bf16.mxu1 %v7823_v0  ;;  %v5624_v2 = vld [vmem:[#allocation7 + $0xc] ss:$16 sps:$4 sm:$0xff]   ;;  %v5626_v3 = vld [vmem:[#allocation7] ss:$16 sps:$4 sm:$0xff]   ;;  %v5627_v4 = vld [vmem:[#allocation7 + $0x8] ss:$16 sps:$4 sm:$0xff]  }
  0x93   :  { %374 = vmatprep.subr.bf16.mxu0 %v5622_v1  ;;  %447 = vmatprep.subr.bf16.mxu1 %v5624_v2  ;;  %v5628_v5 = vld [vmem:[#allocation7 + $0x24] ss:$16 sps:$4 sm:$0xff]   ;;  %v5630_v6 = vld [vmem:[#allocation7 + $0x2c] ss:$16 sps:$4 sm:$0xff]   ;;  %v5632_v7 = vld [vmem:[#allocation7 + $0x20] ss:$16 sps:$4 sm:$0xff]  }
  0x94   :  { %375 = vmatpush1.bf16.msra.mxu0 %v5626_v3  ;;  %448 = vmatpush1.bf16.msra.mxu1 %v5627_v4  ;;  %v5633_v8 = vld [vmem:[#allocation7 + $0x28] ss:$16 sps:$4 sm:$0xff]   ;;  %v5634_v9 = vld [vmem:[#allocation7 + $0x44] ss:$16 sps:$4 sm:$0xff]   ;;  %v5636_v10 = vld [vmem:[#allocation7 + $0x4c] ss:$16 sps:$4 sm:$0xff]  }
  0x95   :  { %376 = vmatprep.subr.bf16.mxu0 %v5628_v5  ;;  %449 = vmatprep.subr.bf16.mxu1 %v5630_v6  ;;  %v5638_v11 = vld [vmem:[#allocation7 + $0x40] ss:$16 sps:$4 sm:$0xff]   ;;  %v5639_v12 = vld [vmem:[#allocation7 + $0x48] ss:$16 sps:$4 sm:$0xff]   ;;  %v5640_v13 = vld [vmem:[#allocation7 + $0x64] ss:$16 sps:$4 sm:$0xff]  }
  0x96   :  { %v5642_v14 = vld [vmem:[#allocation7 + $0x6c] ss:$16 sps:$4 sm:$0xff]   ;;  %v5644_v15 = vld [vmem:[#allocation7 + $0x60] ss:$16 sps:$4 sm:$0xff]   ;;  %v5645_v16 = vld [vmem:[#allocation7 + $0x68] ss:$16 sps:$4 sm:$0xff]  }
  0x97   :  { %v5646_v17 = vld [vmem:[#allocation7 + $0x84] ss:$16 sps:$4 sm:$0xff]   ;;  %v5648_v18 = vld [vmem:[#allocation7 + $0x8c] ss:$16 sps:$4 sm:$0xff]   ;;  %v5650_v19 = vld [vmem:[#allocation7 + $0x80] ss:$16 sps:$4 sm:$0xff]  }
  0x98   :  { %377 = vmatpush1.bf16.msra.mxu0 %v5632_v7  ;;  %450 = vmatpush1.bf16.msra.mxu1 %v5633_v8  ;;  %v5651_v20 = vld [vmem:[#allocation7 + $0x88] ss:$16 sps:$4 sm:$0xff]   ;;  %v5652_v21 = vld [vmem:[#allocation7 + $0xa4] ss:$16 sps:$4 sm:$0xff]   ;;  %v5654_v22 = vld [vmem:[#allocation7 + $0xac] ss:$16 sps:$4 sm:$0xff]   ;;  %v521_v8 = vlaneseq }
  0x99   :  { %378 = vmatprep.subr.bf16.mxu0 %v5634_v9  ;;  %451 = vmatprep.subr.bf16.mxu1 %v5636_v10  ;;  %v5656_v23 = vld [vmem:[#allocation7 + $0xa0] ss:$16 sps:$4 sm:$0xff]   ;;  %v5657_v24 = vld [vmem:[#allocation7 + $0xa8] ss:$16 sps:$4 sm:$0xff]   ;;  %v5658_v25 = vld [vmem:[#allocation7 + $0xc4] ss:$16 sps:$4 sm:$0xff]  }
  0x9a   :  { %v5660_v26 = vld [vmem:[#allocation7 + $0xcc] ss:$16 sps:$4 sm:$0xff]   ;;  %v5662_v27 = vld [vmem:[#allocation7 + $0xc0] ss:$16 sps:$4 sm:$0xff]   ;;  %v5663_v28 = vld [vmem:[#allocation7 + $0xc8] ss:$16 sps:$4 sm:$0xff]  }
  0x9b   :  { %v5664_v29 = vld [vmem:[#allocation7 + $0xe4] ss:$16 sps:$4 sm:$0xff]   ;;  %v5666_v30 = vld [vmem:[#allocation7 + $0xec] ss:$16 sps:$4 sm:$0xff]   ;;  %v5668_v31 = vld [vmem:[#allocation7 + $0xe0] ss:$16 sps:$4 sm:$0xff]  }
  0x9c   :  { %379 = vmatpush1.bf16.msra.mxu0 %v5638_v11  ;;  %452 = vmatpush1.bf16.msra.mxu1 %v5639_v12  ;;  %v5669_v32 = vld [vmem:[#allocation7 + $0xe8] ss:$16 sps:$4 sm:$0xff]   ;;  %v6670_v33 = vld [vmem:[#allocation9 + $0x4] ss:$16 sps:$4 sm:$0xff]   ;;  %v6672_v34 = vld [vmem:[#allocation9 + $0xc] ss:$16 sps:$4 sm:$0xff]  }
  0x9d   :  { %380 = vmatprep.subr.bf16.mxu0 %v5640_v13  ;;  %453 = vmatprep.subr.bf16.mxu1 %v5642_v14  ;;  %v5670_v35 = vld [vmem:[#allocation4] sm:$0xff]   ;;  %v6676_v37 = vld [vmem:[#allocation9 + $0x8] ss:$16 sps:$4 sm:$0xff]   ;;  %v6682_v39 = vld [vmem:[#allocation9 + $0x2c] ss:$16 sps:$4 sm:$0xff]   ;;  %v6813_v9 = vshrl.u32 %v521_v8, 7 }
  0x9e   :  { %v6674_v36 = vld [vmem:[#allocation9] ss:$16 sps:$4 sm:$0xff]   ;;  %v6680_v38 = vld [vmem:[#allocation9 + $0x24] ss:$16 sps:$4 sm:$0xff]   ;;  %v6688_v41 = vld [vmem:[#allocation9 + $0x28] ss:$16 sps:$4 sm:$0xff]  }
  0x9f   :  { %v6684_v40 = vld [vmem:[#allocation9 + $0x20] ss:$16 sps:$4 sm:$0xff]   ;;  %v6692_v42 = vld [vmem:[#allocation9 + $0x44] ss:$16 sps:$4 sm:$0xff]   ;;  %v6694_v43 = vld [vmem:[#allocation9 + $0x4c] ss:$16 sps:$4 sm:$0xff]  }
  0xa0   :  { %381 = vmatpush1.bf16.msra.mxu0 %v5644_v15  ;;  %454 = vmatpush1.bf16.msra.mxu1 %v5645_v16  ;;  %v6698_v45 = vld [vmem:[#allocation9 + $0x40] ss:$16 sps:$4 sm:$0xff]   ;;  %v6700_v46 = vld [vmem:[#allocation9 + $0x48] ss:$16 sps:$4 sm:$0xff]   ;;  %v6704_v47 = vld [vmem:[#allocation9 + $0x64] ss:$16 sps:$4 sm:$0xff]  }
  0xa1   :  { %382 = vmatprep.subr.bf16.mxu0 %v5646_v17  ;;  %455 = vmatprep.subr.bf16.mxu1 %v5648_v18  ;;  %v6708_v48 = vld [vmem:[#allocation9 + $0x6c] ss:$16 sps:$4 sm:$0xff]   ;;  %v6710_v49 = vld [vmem:[#allocation9 + $0x60] ss:$16 sps:$4 sm:$0xff]   ;;  %v6712_v50 = vld [vmem:[#allocation9 + $0x68] ss:$16 sps:$4 sm:$0xff]  }
  0xa2   :  { %v6716_v51 = vld [vmem:[#allocation9 + $0x84] ss:$16 sps:$4 sm:$0xff]   ;;  %v6720_v52 = vld [vmem:[#allocation9 + $0x8c] ss:$16 sps:$4 sm:$0xff]   ;;  %v6724_v54 = vld [vmem:[#allocation9 + $0x80] ss:$16 sps:$4 sm:$0xff]  }
  0xa3   :  { %v5696_v53 = vld [vmem:[#allocation4 + $0x10] sm:$0xff]   ;;  %v6726_v55 = vld [vmem:[#allocation9 + $0x88] ss:$16 sps:$4 sm:$0xff]   ;;  %v6730_v57 = vld [vmem:[#allocation9 + $0xac] ss:$16 sps:$4 sm:$0xff]   ;;  %7836 = vst [vmem:[#allocation29_spill] sm:$0xff] %v6813_v9 }
  0xa4   :  { %383 = vmatpush1.bf16.msra.mxu0 %v5650_v19  ;;  %456 = vmatpush1.bf16.msra.mxu1 %v5651_v20  ;;  %v6728_v56 = vld [vmem:[#allocation9 + $0xa4] ss:$16 sps:$4 sm:$0xff]   ;;  %v6736_v58 = vld [vmem:[#allocation9 + $0xa0] ss:$16 sps:$4 sm:$0xff]   ;;  %v6738_v59 = vld [vmem:[#allocation9 + $0xa8] ss:$16 sps:$4 sm:$0xff]  }
  0xa5   :  { %384 = vmatprep.subr.bf16.mxu0 %v5652_v21  ;;  %457 = vmatprep.subr.bf16.mxu1 %v5654_v22  ;;  %v6740_v60 = vld [vmem:[#allocation9 + $0xc4] ss:$16 sps:$4 sm:$0xff]   ;;  %v6742_v61 = vld [vmem:[#allocation9 + $0xcc] ss:$16 sps:$4 sm:$0xff]   ;;  %v6750_v63 = vld [vmem:[#allocation9 + $0xc0] ss:$16 sps:$4 sm:$0xff]  }
  0xa6   :  { %v5709_v62 = vld [vmem:[#allocation4 + $0x18] sm:$0xff]   ;;  %v6754_v2 = vld [vmem:[#allocation9 + $0xe4] ss:$16 sps:$4 sm:$0xff]   ;;  %v6762_v4 = vld [vmem:[#allocation9 + $0xe0] ss:$16 sps:$4 sm:$0xff]   ;;  %v7822_v10 = vsub.s32 0, %v6813_v9 }
  0xa7   :  { %v6752_v1 = vld [vmem:[#allocation9 + $0xc8] ss:$16 sps:$4 sm:$0xff]   ;;  %v6756_v3 = vld [vmem:[#allocation9 + $0xec] ss:$16 sps:$4 sm:$0xff]   ;;  %v717_v6 = vld [vmem:[%s7814_s9] sm:$0xff]  ;;  %v7821_v11 = vsub.s32 2, %v6813_v9 }
  0xa8   :  { %385 = vmatpush1.bf16.msra.mxu0 %v5656_v23  ;;  %458 = vmatpush1.bf16.msra.mxu1 %v5657_v24  ;;  %v6764_v5 = vld [vmem:[#allocation9 + $0xe8] ss:$16 sps:$4 sm:$0xff]   ;;  %v718_v7 = vpack.c.bf16 %v717_v6, %v717_v6  ;;  %v149_v12 = vld [vmem:[#allocation10] sm:$0xf]  ;;  %v7820_v13 = vsub.s32 1, %v6813_v9  ;;  %v7819_v14 = vsub.s32 3, %v6813_v9 }
  0xa9   :  { %386 = vmatprep.subr.bf16.mxu0 %v5658_v25  ;;  %459 = vmatprep.subr.bf16.mxu1 %v5660_v26  ;;  %v6821_v15 = vrot.slane %v149_v12, %v7822_v10  ;;  %v6825_v16 = vrot.slane %v149_v12, %v7821_v11  ;;  %vm6464_vm0 = vmmov 0  }
  0xaa   :  { %v6829_v17 = vrot.slane %v149_v12, %v7820_v13  ;;  %v6833_v18 = vrot.slane %v149_v12, %v7819_v14 }
  0xac   :  { %387 = vmatpush1.bf16.msra.mxu0 %v5662_v27  ;;  %460 = vmatpush1.bf16.msra.mxu1 %v5663_v28 }
  0xad   :  { %388 = vmatprep.subr.bf16.mxu0 %v5664_v29  ;;  %461 = vmatprep.subr.bf16.mxu1 %v5666_v30 }
  0xb0   :  { %389 = vmatpush1.bf16.msra.mxu0 %v5668_v31  ;;  %462 = vmatpush1.bf16.msra.mxu1 %v5669_v32 }
  0xb1   :  { %918 = vmatprep.subr.bf16.mxu0 %v6670_v33  ;;  %959 = vmatprep.subr.bf16.mxu1 %v6672_v34 }
  0xb3   :  { %407 = vmatmul.mubr.bf16.vlgmr.msra.gmra.mrb[0].mxu0 %v5670_v35  ;;  %480 = vmatmul.mubr.bf16.vlgmr.msra.gmra.mrb[0].mxu1 %v5670_v35 }
  0xb4   :  { %919 = vmatpush1.bf16.msra.mxu0 %v6674_v36  ;;  %960 = vmatpush1.bf16.msra.mxu1 %v6676_v37 }
  0xb5   :  { %920 = vmatprep.subr.bf16.mxu0 %v6680_v38  ;;  %961 = vmatprep.subr.bf16.mxu1 %v6682_v39 }
  0xb6   :  { %416 = vmatprep.mubr.bf16.mxu0 %v7823_v0  ;;  %489 = vmatprep.mubr.bf16.mxu1 %v7823_v0 }
  0xb8   :  { %921 = vmatpush1.bf16.msra.mxu0 %v6684_v40  ;;  %962 = vmatpush1.bf16.msra.mxu1 %v6688_v41 }
  0xb9   :  { %922 = vmatprep.subr.bf16.mxu0 %v6692_v42  ;;  %963 = vmatprep.subr.bf16.mxu1 %v6694_v43 }
  0xbb   :  { %417 = vmatmul.mubr.bf16.gmra.mrb[4].mxu0 %v5683_v44  ;;  %490 = vmatmul.mubr.bf16.gmra.mrb[4].mxu1 %v5683_v44 }
  0xbc   :  { %923 = vmatpush1.bf16.msra.mxu0 %v6698_v45  ;;  %964 = vmatpush1.bf16.msra.mxu1 %v6700_v46 }
  0xbd   :  { %924 = vmatprep.subr.bf16.mxu0 %v6704_v47  ;;  %965 = vmatprep.subr.bf16.mxu1 %v6708_v48 }
  0xbe   :  { %426 = vmatprep.mubr.bf16.mxu0 %v7823_v0  ;;  %499 = vmatprep.mubr.bf16.mxu1 %v7823_v0 }
  0xc0   :  { %925 = vmatpush1.bf16.msra.mxu0 %v6710_v49  ;;  %966 = vmatpush1.bf16.msra.mxu1 %v6712_v50 }
  0xc1   :  { %926 = vmatprep.subr.bf16.mxu0 %v6716_v51  ;;  %967 = vmatprep.subr.bf16.mxu1 %v6720_v52 }
  0xc3   :  { %427 = vmatmul.mubr.bf16.gmra.mrb[8].mxu0 %v5696_v53  ;;  %500 = vmatmul.mubr.bf16.gmra.mrb[8].mxu1 %v5696_v53 }
  0xc4   :  { %927 = vmatpush1.bf16.msra.mxu0 %v6724_v54  ;;  %968 = vmatpush1.bf16.msra.mxu1 %v6726_v55 }
  0xc5   :  { %928 = vmatprep.subr.bf16.mxu0 %v6728_v56  ;;  %969 = vmatprep.subr.bf16.mxu1 %v6730_v57 }
  0xc6   :  { %436 = vmatprep.mubr.bf16.mxu0 %v7823_v0  ;;  %509 = vmatprep.mubr.bf16.mxu1 %v7823_v0 }
  0xc8   :  { %929 = vmatpush1.bf16.msra.mxu0 %v6736_v58  ;;  %970 = vmatpush1.bf16.msra.mxu1 %v6738_v59 }
  0xc9   :  { %930 = vmatprep.subr.bf16.mxu0 %v6740_v60  ;;  %971 = vmatprep.subr.bf16.mxu1 %v6742_v61 }
  0xcb   :  { %437 = vmatmul.mubr.bf16.gmra.mrb[12].mxu0 %v5709_v62  ;;  %510 = vmatmul.mubr.bf16.gmra.mrb[12].mxu1 %v5709_v62 }
  0xcc   :  { %931 = vmatpush1.bf16.msra.mxu0 %v6750_v63  ;;  %972 = vmatpush1.bf16.msra.mxu1 %v6752_v1 }
  0xcd   :  { %932 = vmatprep.subr.bf16.mxu0 %v6754_v2  ;;  %973 = vmatprep.subr.bf16.mxu1 %v6756_v3 }
  0xce   :  { %950 = vmatprep.mubr.bf16.mxu0 %v7823_v0  ;;  %991 = vmatprep.mubr.bf16.mxu1 %v7823_v0 }
  0xd0   :  { %933 = vmatpush1.bf16.msra.mxu0 %v6762_v4  ;;  %974 = vmatpush1.bf16.msra.mxu1 %v6764_v5 }
  0xd1   :  { %1229 = vmatprep.subr.bf16.mxu0 %v6670_v33  ;;  %1270 = vmatprep.subr.bf16.mxu1 %v6672_v34 }
  0xd3   :  { %951 = vmatmul.mubr.bf16.vlgmr.msra.gmra.mrb[16].mxu0 %v718_v7  ;;  %992 = vmatmul.mubr.bf16.vlgmr.msra.gmra.mrb[16].mxu1 %v718_v7 }
  0xd4   :  { %1230 = vmatpush1.bf16.msra.mxu0 %v6674_v36  ;;  %1271 = vmatpush1.bf16.msra.mxu1 %v6676_v37 }
  0xd5   :  { %1231 = vmatprep.subr.bf16.mxu0 %v6680_v38  ;;  %1272 = vmatprep.subr.bf16.mxu1 %v6682_v39 }
  0xd6   :  { %1261 = vmatprep.mubr.bf16.mxu0 %v7823_v0  ;;  %1302 = vmatprep.mubr.bf16.mxu1 %v7823_v0 }
  0xd8   :  { %1232 = vmatpush1.bf16.msra.mxu0 %v6684_v40  ;;  %1273 = vmatpush1.bf16.msra.mxu1 %v6688_v41 }
  0xd9   :  { %1233 = vmatprep.subr.bf16.mxu0 %v6692_v42  ;;  %1274 = vmatprep.subr.bf16.mxu1 %v6694_v43 }
  0xdc   :  { %1234 = vmatpush1.bf16.msra.mxu0 %v6698_v45  ;;  %1275 = vmatpush1.bf16.msra.mxu1 %v6700_v46 }
  0xdd   :  { %1235 = vmatprep.subr.bf16.mxu0 %v6704_v47  ;;  %1276 = vmatprep.subr.bf16.mxu1 %v6708_v48 }
  0xe0   :  { %1236 = vmatpush1.bf16.msra.mxu0 %v6710_v49  ;;  %1277 = vmatpush1.bf16.msra.mxu1 %v6712_v50 }
  0xe1   :  { %1237 = vmatprep.subr.bf16.mxu0 %v6716_v51  ;;  %1278 = vmatprep.subr.bf16.mxu1 %v6720_v52 }
  0xe4   :  { %1238 = vmatpush1.bf16.msra.mxu0 %v6724_v54  ;;  %1279 = vmatpush1.bf16.msra.mxu1 %v6726_v55 }
  0xe5   :  { %1239 = vmatprep.subr.bf16.mxu0 %v6728_v56  ;;  %1280 = vmatprep.subr.bf16.mxu1 %v6730_v57 }
  0xe8   :  { %1240 = vmatpush1.bf16.msra.mxu0 %v6736_v58  ;;  %1281 = vmatpush1.bf16.msra.mxu1 %v6738_v59 }
  0xe9   :  { %1241 = vmatprep.subr.bf16.mxu0 %v6740_v60  ;;  %1282 = vmatprep.subr.bf16.mxu1 %v6742_v61 }
  0xec   :  { %1242 = vmatpush1.bf16.msra.mxu0 %v6750_v63  ;;  %1283 = vmatpush1.bf16.msra.mxu1 %v6752_v1 }
  0xed   :  { %1243 = vmatprep.subr.bf16.mxu0 %v6754_v2  ;;  %1284 = vmatprep.subr.bf16.mxu1 %v6756_v3 }
  0xf0   :  { %1244 = vmatpush1.bf16.msra.mxu0 %v6762_v4  ;;  %1285 = vmatpush1.bf16.msra.mxu1 %v6764_v5 }
  0xf1   :  { %1541 = vmatprep.subr.bf16.mxu0 %v6670_v33  ;;  %1582 = vmatprep.subr.bf16.mxu1 %v6672_v34 }
 0x186   :  { %v408_v19 = vpop.f32.mrb[0].mxu0  ;;  %v481_v20 = vpop.f32.mrb[0].mxu1 }
 0x187   :  { %v541_v21 = vadd.f32 %v6821_v15, %v408_v19  ;;  %v410_v22 = vpop.f32.mrb[1].mxu0  ;;  %v543_v23 = vadd.f32 %v6825_v16, %v481_v20  ;;  %v483_v24 = vpop.f32.mrb[1].mxu1 }
 0x188   :  { %v542_v25 = vadd.f32 %v6829_v17, %v410_v22  ;;  %v412_v26 = vpop.f32.mrb[2].mxu0  ;;  %v544_v27 = vadd.f32 %v6833_v18, %v483_v24  ;;  %v485_v28 = vpop.f32.mrb[2].mxu1 }
 0x189   :  { %v545_v29 = vadd.f32 %v6821_v15, %v412_v26  ;;  %v414_v30 = vpop.f32.mrb[3].mxu0  ;;  %v547_v31 = vadd.f32 %v6825_v16, %v485_v28  ;;  %v487_v32 = vpop.f32.mrb[3].mxu1 }
 0x18a   :  { %v6841_v33 = vpack.c.bf16 %v542_v25, %v541_v21  ;;  %v546_v34 = vadd.f32 %v6829_v17, %v414_v30  ;;  %v6844_v35 = vpack.c.bf16 %v544_v27, %v543_v23  ;;  %v548_v44 = vadd.f32 %v6833_v18, %v487_v32 }
 0x18c   :  { %v6847_v53 = vpack.c.bf16 %v546_v34, %v545_v29  ;;  %v6849_v62 = vpack.c.bf16 %v548_v44, %v547_v31 }
 0x18e   :  { %v418_v6 = vpop.f32.mrb[4].mxu0  ;;  %v491_v7 = vpop.f32.mrb[4].mxu1 }
 0x18f   :  { %v549_v8 = vadd.f32 %v6821_v15, %v418_v6  ;;  %v420_v12 = vpop.f32.mrb[5].mxu0  ;;  %v551_v19 = vadd.f32 %v6825_v16, %v491_v7  ;;  %v493_v20 = vpop.f32.mrb[5].mxu1 }
 0x190   :  { %v550_v21 = vadd.f32 %v6829_v17, %v420_v12  ;;  %v422_v22 = vpop.f32.mrb[6].mxu0  ;;  %v552_v23 = vadd.f32 %v6833_v18, %v493_v20  ;;  %v495_v24 = vpop.f32.mrb[6].mxu1 }
 0x191   :  { %v553_v25 = vadd.f32 %v6821_v15, %v422_v22  ;;  %v424_v26 = vpop.f32.mrb[7].mxu0  ;;  %v555_v27 = vadd.f32 %v6825_v16, %v495_v24  ;;  %v497_v28 = vpop.f32.mrb[7].mxu1 }
 0x192   :  { %v6857_v29 = vpack.c.bf16 %v550_v21, %v549_v8  ;;  %v554_v30 = vadd.f32 %v6829_v17, %v424_v26  ;;  %v6860_v31 = vpack.c.bf16 %v552_v23, %v551_v19  ;;  %v556_v32 = vadd.f32 %v6833_v18, %v497_v28 }
 0x194   :  { %v6863_v34 = vpack.c.bf16 %v554_v30, %v553_v25  ;;  %v6865_v44 = vpack.c.bf16 %v556_v32, %v555_v27 }
 0x196   :  { %v428_v6 = vpop.f32.mrb[8].mxu0  ;;  %v501_v7 = vpop.f32.mrb[8].mxu1 }
 0x197   :  { %v557_v12 = vadd.f32 %v6821_v15, %v428_v6  ;;  %v430_v20 = vpop.f32.mrb[9].mxu0  ;;  %v559_v22 = vadd.f32 %v6825_v16, %v501_v7  ;;  %v503_v24 = vpop.f32.mrb[9].mxu1 }
 0x198   :  { %v558_v8 = vadd.f32 %v6829_v17, %v430_v20  ;;  %v432_v21 = vpop.f32.mrb[10].mxu0  ;;  %v560_v19 = vadd.f32 %v6833_v18, %v503_v24  ;;  %v505_v23 = vpop.f32.mrb[10].mxu1 }
 0x199   :  { %v561_v26 = vadd.f32 %v6821_v15, %v432_v21  ;;  %v434_v25 = vpop.f32.mrb[11].mxu0  ;;  %v563_v27 = vadd.f32 %v6825_v16, %v505_v23  ;;  %v507_v28 = vpop.f32.mrb[11].mxu1 }
 0x19a   :  { %v6873_v30 = vpack.c.bf16 %v558_v8, %v557_v12  ;;  %v562_v32 = vadd.f32 %v6829_v17, %v434_v25  ;;  %v6876_v6 = vpack.c.bf16 %v560_v19, %v559_v22  ;;  %v564_v7 = vadd.f32 %v6833_v18, %v507_v28 }
 0x19c   :  { %v6879_v14 = vpack.c.bf16 %v562_v32, %v561_v26  ;;  %v6881_v20 = vpack.c.bf16 %v564_v7, %v563_v27 }
 0x19e   :  { %v438_v24 = vpop.f32.mrb[12].mxu0  ;;  %v511_v13 = vpop.f32.mrb[12].mxu1 }
 0x19f   :  { %v565_v21 = vadd.f32 %v6821_v15, %v438_v24  ;;  %v440_v11 = vpop.f32.mrb[13].mxu0  ;;  %v567_v23 = vadd.f32 %v6825_v16, %v511_v13  ;;  %v513_v10 = vpop.f32.mrb[13].mxu1 }
 0x1a0   :  { %v566_v12 = vadd.f32 %v6829_v17, %v440_v11  ;;  %v442_v8 = vpop.f32.mrb[14].mxu0  ;;  %v568_v22 = vadd.f32 %v6833_v18, %v513_v10  ;;  %v515_v19 = vpop.f32.mrb[14].mxu1  ;;  %v722_v10 = vunpack.c.l.bf16 %v6841_v33 }
 0x1a1   :  { %v569_v25 = vadd.f32 %v6821_v15, %v442_v8  ;;  %v444_v26 = vpop.f32.mrb[15].mxu0  ;;  %v571_v27 = vadd.f32 %v6825_v16, %v515_v19  ;;  %v517_v28 = vpop.f32.mrb[15].mxu1  ;;  %v724_v15 = vunpack.c.l.bf16 %v6844_v35  ;;  %v723_v16 = vunpack.c.h.bf16 %v6841_v33 }
 0x1a2   :  { %v6889_v32 = vpack.c.bf16 %v566_v12, %v565_v21  ;;  %v570_v7 = vadd.f32 %v6829_v17, %v444_v26  ;;  %v6892_v24 = vpack.c.bf16 %v568_v22, %v567_v23  ;;  %v572_v13 = vadd.f32 %v6833_v18, %v517_v28 }
 0x1a3   :  { %v725_v21 = vunpack.c.h.bf16 %v6844_v35 }
 0x1a4   :  { %7837 = vst [vmem:[#allocation30_spill] sm:$0xff] %v6892_v24  ;;  %v6895_v0 = vpack.c.bf16 %v570_v7, %v569_v25  ;;  %v6897_v11 = vpack.c.bf16 %v572_v13, %v571_v27 }
 0x1a6   :  { %7838 = vst [vmem:[#allocation31_spill] sm:$0xff] %v6895_v0  ;;  %7839 = vst [vmem:[#allocation32_spill] sm:$0xff] %v6897_v11  ;;  %v952_v8 = vpop.f32.mrb[16].mxu0  ;;  %v993_v9 = vpop.f32.mrb[16].mxu1 }
 0x1a7   :  { %v1000_v12 = vadd.f32 %v952_v8, %v722_v10  ;;  %v1002_v17 = vadd.f32 %v993_v9, %v724_v15  ;;  %v954_v23 = vpop.f32.mrb[17].mxu0  ;;  %v995_v22 = vpop.f32.mrb[17].mxu1  ;;  %v719_v8 = vld [vmem:[%s7815_s10] sm:$0xff] }
 0x1a8   :  { %v1001_v19 = vadd.f32 %v954_v23, %v723_v16  ;;  %v1003_v18 = vadd.f32 %v995_v22, %v725_v21  ;;  %v956_v25 = vpop.f32.mrb[18].mxu0  ;;  %v997_v26 = vpop.f32.mrb[18].mxu1 }
 0x1a9   :  { %v5173_v27 = vmul.f32 -1.442695, %v1000_v12  ;;  %v957_v28 = vpop.f32.mrb[19].mxu0  ;;  %v998_v7 = vpop.f32.mrb[19].mxu1  ;;  %v5175_v11 = vmul.f32 -1.442695, %v1002_v17 }
 0x1aa   :  { %v5174_v13 = vmul.f32 -1.442695, %v1001_v19  ;;  %v7840_v19 = vmov 0  }
 0x1ab   :  { %5902 = vpow2.f32 %v5173_v27 }
 0x1ac   :  { %5904 = vpow2.f32 %v5174_v13 }
 0x1ad   :  { %5906 = vtanh.f32 %v1003_v18 }
 0x1ae   :  { %5908 = vpow2.f32 %v5175_v11 }
 0x1b5   :  { %v5903_v0 = vpop.eup %5902 }
 0x1b6   :  { %v1013_v24 = vadd.f32 1.0, %v5903_v0  ;;  %v5905_v33 = vpop.eup %5904 }
 0x1b7   :  { %v1014_v9 = vadd.f32 1.0, %v5905_v33  ;;  %v5907_v35 = vpop.eup %5906 }
 0x1b8   :  { %5910 = vrcp.f32 %v1013_v24  ;;  %v5909_v10 = vpop.eup %5908 }
 0x1b9   :  { %5912 = vrcp.f32 %v1014_v9  ;;  %v1015_v12 = vadd.f32 1.0, %v5909_v10 }
 0x1bb   :  { %5914 = vrcp.f32 %v1015_v12 }
 0x1c2   :  { %v5911_v15 = vpop.eup %5910 }
 0x1c3   :  { %v1024_v16 = vmul.f32 %v5911_v15, %v5907_v35  ;;  %v5913_v21 = vpop.eup %5912 }
 0x1c4   :  { %v1023_v23 = vmul.f32 %v5913_v21, %v719_v8 }
 0x1c5   :  { %v5915_v0 = vpop.eup %5914 }
 0x1c6   :  { %v6906_v17 = vadd.f32 %v1024_v16, %v1023_v23 }
 0x1c8   :  { %5916 = vtanh.f32 %v6906_v17 }
 0x1d2   :  { %v5917_v24 = vpop.eup %5916 }
 0x1d3   :  { %v1027_v11 = vmul.f32 %v5917_v24, %v5915_v0 }
 0x1d5   :  { %v1028_v22 = vpack.c.bf16 %v1027_v11, %v1027_v11  ;;  %v6951_v11 = vld [vmem:[#allocation9 + $0x4] ss:$16 sps:$4 sm:$0xff]  }
 0x1d7   :  { %1029 = vst [vmem:[#allocation3] sm:$0xf] %v1028_v22  ;;  %1262 = vmatmul.mubr.bf16.vlgmr.msra.gmra.mrb[20].mxu0 %v1028_v22  ;;  %1303 = vmatmul.mubr.bf16.vlgmr.msra.gmra.mrb[20].mxu1 %v1028_v22  ;;  %v6953_v22 = vld [vmem:[#allocation9 + $0xc] ss:$16 sps:$4 sm:$0xff]  }
 0x1d8   :  { %1542 = vmatpush1.bf16.msra.mxu0 %v6674_v36  ;;  %1583 = vmatpush1.bf16.msra.mxu1 %v6676_v37  ;;  %v1033_v36 = vunpack.c.l.bf16 %v6847_v53  ;;  %v1035_v37 = vunpack.c.l.bf16 %v6849_v62 }
 0x1d9   :  { %1543 = vmatprep.subr.bf16.mxu0 %v6680_v38  ;;  %1584 = vmatprep.subr.bf16.mxu1 %v6682_v39 }
 0x1da   :  { %1573 = vmatprep.mubr.bf16.mxu0 %v7840_v19  ;;  %1614 = vmatprep.mubr.bf16.mxu1 %v7840_v19 }
 0x1dc   :  { %1544 = vmatpush1.bf16.msra.mxu0 %v6684_v40  ;;  %1585 = vmatpush1.bf16.msra.mxu1 %v6688_v41  ;;  %v1034_v40 = vunpack.c.h.bf16 %v6847_v53  ;;  %v1036_v41 = vunpack.c.h.bf16 %v6849_v62 }
 0x1dd   :  { %1545 = vmatprep.subr.bf16.mxu0 %v6692_v42  ;;  %1586 = vmatprep.subr.bf16.mxu1 %v6694_v43 }
 0x1e0   :  { %1546 = vmatpush1.bf16.msra.mxu0 %v6698_v45  ;;  %1587 = vmatpush1.bf16.msra.mxu1 %v6700_v46 }
 0x1e1   :  { %1547 = vmatprep.subr.bf16.mxu0 %v6704_v47  ;;  %1588 = vmatprep.subr.bf16.mxu1 %v6708_v48 }
 0x1e4   :  { %1548 = vmatpush1.bf16.msra.mxu0 %v6710_v49  ;;  %1589 = vmatpush1.bf16.msra.mxu1 %v6712_v50 }
 0x1e5   :  { %1549 = vmatprep.subr.bf16.mxu0 %v6716_v51  ;;  %1590 = vmatprep.subr.bf16.mxu1 %v6720_v52 }
 0x1e8   :  { %1550 = vmatpush1.bf16.msra.mxu0 %v6724_v54  ;;  %1591 = vmatpush1.bf16.msra.mxu1 %v6726_v55 }
 0x1e9   :  { %1551 = vmatprep.subr.bf16.mxu0 %v6728_v56  ;;  %1592 = vmatprep.subr.bf16.mxu1 %v6730_v57 }
 0x1ec   :  { %1552 = vmatpush1.bf16.msra.mxu0 %v6736_v58  ;;  %1593 = vmatpush1.bf16.msra.mxu1 %v6738_v59 }
 0x1ed   :  { %1553 = vmatprep.subr.bf16.mxu0 %v6740_v60  ;;  %1594 = vmatprep.subr.bf16.mxu1 %v6742_v61 }
 0x1f0   :  { %1554 = vmatpush1.bf16.msra.mxu0 %v6750_v63  ;;  %1595 = vmatpush1.bf16.msra.mxu1 %v6752_v1 }
 0x1f1   :  { %1555 = vmatprep.subr.bf16.mxu0 %v6754_v2  ;;  %1596 = vmatprep.subr.bf16.mxu1 %v6756_v3 }
 0x1f4   :  { %1556 = vmatpush1.bf16.msra.mxu0 %v6762_v4  ;;  %1597 = vmatpush1.bf16.msra.mxu1 %v6764_v5 }
 0x1f5   :  { %1853 = vmatprep.subr.bf16.mxu0 %v6951_v11  ;;  %1894 = vmatprep.subr.bf16.mxu1 %v6953_v22 }
 0x2aa   :  { %v1263_v38 = vpop.f32.mrb[20].mxu0  ;;  %v1304_v39 = vpop.f32.mrb[20].mxu1 }
 0x2ab   :  { %v1311_v42 = vadd.f32 %v1263_v38, %v1033_v36  ;;  %v1313_v43 = vadd.f32 %v1304_v39, %v1035_v37  ;;  %v1265_v45 = vpop.f32.mrb[21].mxu0  ;;  %v1306_v46 = vpop.f32.mrb[21].mxu1  ;;  %v6957_v36 = vld [vmem:[#allocation9 + $0x8] ss:$16 sps:$4 sm:$0xff]   ;;  %v6963_v37 = vld [vmem:[#allocation9 + $0x24] ss:$16 sps:$4 sm:$0xff]  }
 0x2ac   :  { %v1312_v47 = vadd.f32 %v1265_v45, %v1034_v40  ;;  %v1314_v48 = vadd.f32 %v1306_v46, %v1036_v41  ;;  %v1267_v49 = vpop.f32.mrb[22].mxu0  ;;  %v1308_v50 = vpop.f32.mrb[22].mxu1  ;;  %v6965_v38 = vld [vmem:[#allocation9 + $0x2c] ss:$16 sps:$4 sm:$0xff]   ;;  %v6967_v39 = vld [vmem:[#allocation9 + $0x20] ss:$16 sps:$4 sm:$0xff]  }
 0x2ad   :  { %v5208_v18 = vmul.f32 -1.442695, %v1311_v42  ;;  %v1268_v25 = vpop.f32.mrb[23].mxu0  ;;  %v1309_v26 = vpop.f32.mrb[23].mxu1  ;;  %v5210_v28 = vmul.f32 -1.442695, %v1313_v43 }
 0x2ae   :  { %v5209_v27 = vmul.f32 -1.442695, %v1312_v47  ;;  %v6969_v40 = vld [vmem:[#allocation9 + $0x28] ss:$16 sps:$4 sm:$0xff]   ;;  %v6975_v41 = vld [vmem:[#allocation9 + $0x44] ss:$16 sps:$4 sm:$0xff]  }
 0x2af   :  { %5918 = vpow2.f32 %v5208_v18  ;;  %v6977_v42 = vld [vmem:[#allocation9 + $0x4c] ss:$16 sps:$4 sm:$0xff]   ;;  %v6979_v43 = vld [vmem:[#allocation9 + $0x40] ss:$16 sps:$4 sm:$0xff]   ;;  %v6981_v45 = vld [vmem:[#allocation9 + $0x48] ss:$16 sps:$4 sm:$0xff]  }
 0x2b0   :  { %5920 = vpow2.f32 %v5209_v27  ;;  %v6987_v46 = vld [vmem:[#allocation9 + $0x64] ss:$16 sps:$4 sm:$0xff]   ;;  %v6989_v47 = vld [vmem:[#allocation9 + $0x6c] ss:$16 sps:$4 sm:$0xff]   ;;  %v6993_v49 = vld [vmem:[#allocation9 + $0x68] ss:$16 sps:$4 sm:$0xff]  }
 0x2b1   :  { %5922 = vtanh.f32 %v1314_v48  ;;  %v6991_v48 = vld [vmem:[#allocation9 + $0x60] ss:$16 sps:$4 sm:$0xff]  }
 0x2b2   :  { %5924 = vpow2.f32 %v5210_v28 }
 0x2b9   :  { %v5919_v7 = vpop.eup %5918 }
 0x2ba   :  { %v1324_v13 = vadd.f32 1.0, %v5919_v7  ;;  %v5921_v53 = vpop.eup %5920 }
 0x2bb   :  { %v1325_v62 = vadd.f32 1.0, %v5921_v53  ;;  %v5923_v33 = vpop.eup %5922 }
 0x2bc   :  { %5926 = vrcp.f32 %v1324_v13  ;;  %v5925_v9 = vpop.eup %5924 }
 0x2bd   :  { %5928 = vrcp.f32 %v1325_v62  ;;  %v1326_v8 = vadd.f32 1.0, %v5925_v9 }
 0x2bf   :  { %5930 = vrcp.f32 %v1326_v8 }
 0x2c6   :  { %v5927_v35 = vpop.eup %5926 }
 0x2c7   :  { %v1335_v10 = vmul.f32 %v5927_v35, %v5923_v33  ;;  %v5929_v15 = vpop.eup %5928 }
 0x2c8   :  { %v1334_v16 = vmul.f32 %v5929_v15, %v6906_v17  ;;  %v6955_v17 = vld [vmem:[#allocation9] ss:$16 sps:$4 sm:$0xff]  }
 0x2c9   :  { %v5931_v12 = vpop.eup %5930 }
 0x2ca   :  { %v6946_v21 = vadd.f32 %v1335_v10, %v1334_v16 }
 0x2cc   :  { %5932 = vtanh.f32 %v6946_v21 }
 0x2d6   :  { %v5933_v23 = vpop.eup %5932 }
 0x2d7   :  { %v1338_v0 = vmul.f32 %v5933_v23, %v5931_v12  ;;  %v7043_v12 = vld [vmem:[#allocation9 + $0x8c] ss:$16 sps:$4 sm:$0xff]   ;;  %v7045_v23 = vld [vmem:[#allocation9 + $0x80] ss:$16 sps:$4 sm:$0xff]  }
 0x2d9   :  { %v1339_v24 = vpack.c.bf16 %v1338_v0, %v1338_v0  ;;  %v7047_v0 = vld [vmem:[#allocation9 + $0x88] ss:$16 sps:$4 sm:$0xff]  }
 0x2db   :  { %1341 = vst [vmem:[#allocation3 + $0x4] sm:$0xf] %v1339_v24  ;;  %1574 = vmatmul.mubr.bf16.vlgmr.msra.gmra.mrb[24].mxu0 %v1339_v24  ;;  %1615 = vmatmul.mubr.bf16.vlgmr.msra.gmra.mrb[24].mxu1 %v1339_v24  ;;  %v7053_v24 = vld [vmem:[#allocation9 + $0xa0] ss:$16 sps:$4 sm:$0xff]  }
 0x2dc   :  { %1885 = vmatprep.mubr.bf16.mxu0 %v7840_v19  ;;  %1926 = vmatprep.mubr.bf16.mxu1 %v7840_v19 }
 0x2dd   :  { %1854 = vmatpush1.bf16.msra.mxu0 %v6955_v17  ;;  %1895 = vmatpush1.bf16.msra.mxu1 %v6957_v36 }
 0x2de   :  { %1855 = vmatprep.subr.bf16.mxu0 %v6963_v37  ;;  %1896 = vmatprep.subr.bf16.mxu1 %v6965_v38 }
 0x2e1   :  { %1856 = vmatpush1.bf16.msra.mxu0 %v6967_v39  ;;  %1897 = vmatpush1.bf16.msra.mxu1 %v6969_v40 }
 0x2e2   :  { %1857 = vmatprep.subr.bf16.mxu0 %v6975_v41  ;;  %1898 = vmatprep.subr.bf16.mxu1 %v6977_v42 }
 0x2e5   :  { %1858 = vmatpush1.bf16.msra.mxu0 %v6979_v43  ;;  %1899 = vmatpush1.bf16.msra.mxu1 %v6981_v45 }
 0x2e6   :  { %1859 = vmatprep.subr.bf16.mxu0 %v6987_v46  ;;  %1900 = vmatprep.subr.bf16.mxu1 %v6989_v47 }
 0x2e9   :  { %1860 = vmatpush1.bf16.msra.mxu0 %v6991_v48  ;;  %1901 = vmatpush1.bf16.msra.mxu1 %v6993_v49 }
 0x2ea   :  { %1861 = vmatprep.subr.bf16.mxu0 %v6716_v51  ;;  %1902 = vmatprep.subr.bf16.mxu1 %v6720_v52  ;;  %v1345_v51 = vunpack.c.l.bf16 %v6857_v29  ;;  %v1347_v52 = vunpack.c.l.bf16 %v6860_v31 }
 0x2ed   :  { %1862 = vmatpush1.bf16.msra.mxu0 %v6724_v54  ;;  %1903 = vmatpush1.bf16.msra.mxu1 %v6726_v55 }
 0x2ee   :  { %1863 = vmatprep.subr.bf16.mxu0 %v6728_v56  ;;  %1904 = vmatprep.subr.bf16.mxu1 %v6730_v57  ;;  %v1346_v56 = vunpack.c.h.bf16 %v6857_v29  ;;  %v1348_v57 = vunpack.c.h.bf16 %v6860_v31 }
 0x2f1   :  { %1864 = vmatpush1.bf16.msra.mxu0 %v6736_v58  ;;  %1905 = vmatpush1.bf16.msra.mxu1 %v6738_v59 }
 0x2f2   :  { %1865 = vmatprep.subr.bf16.mxu0 %v6740_v60  ;;  %1906 = vmatprep.subr.bf16.mxu1 %v6742_v61 }
 0x2f5   :  { %1866 = vmatpush1.bf16.msra.mxu0 %v6750_v63  ;;  %1907 = vmatpush1.bf16.msra.mxu1 %v6752_v1 }
 0x2f6   :  { %1867 = vmatprep.subr.bf16.mxu0 %v6754_v2  ;;  %1908 = vmatprep.subr.bf16.mxu1 %v6756_v3 }
 0x2f9   :  { %1868 = vmatpush1.bf16.msra.mxu0 %v6762_v4  ;;  %1909 = vmatpush1.bf16.msra.mxu1 %v6764_v5 }
 0x2fa   :  { %2165 = vmatprep.subr.bf16.mxu0 %v6951_v11  ;;  %2206 = vmatprep.subr.bf16.mxu1 %v6953_v22 }
 0x3ae   :  { %v1575_v54 = vpop.f32.mrb[24].mxu0  ;;  %v1616_v55 = vpop.f32.mrb[24].mxu1 }
 0x3af   :  { %v1623_v58 = vadd.f32 %v1575_v54, %v1345_v51  ;;  %v1625_v59 = vadd.f32 %v1616_v55, %v1347_v52  ;;  %v1577_v60 = vpop.f32.mrb[25].mxu0  ;;  %v1618_v61 = vpop.f32.mrb[25].mxu1  ;;  %v7055_v51 = vld [vmem:[#allocation9 + $0xa4] ss:$16 sps:$4 sm:$0xff]   ;;  %v7057_v52 = vld [vmem:[#allocation9 + $0xa8] ss:$16 sps:$4 sm:$0xff]  }
 0x3b0   :  { %v1624_v63 = vadd.f32 %v1577_v60, %v1346_v56  ;;  %v1626_v1 = vadd.f32 %v1618_v61, %v1348_v57  ;;  %v1579_v2 = vpop.f32.mrb[26].mxu0  ;;  %v1620_v3 = vpop.f32.mrb[26].mxu1  ;;  %v7059_v54 = vld [vmem:[#allocation9 + $0xac] ss:$16 sps:$4 sm:$0xff]   ;;  %v7061_v55 = vld [vmem:[#allocation9 + $0xc4] ss:$16 sps:$4 sm:$0xff]  }
 0x3b1   :  { %v5243_v4 = vmul.f32 -1.442695, %v1623_v58  ;;  %v1580_v5 = vpop.f32.mrb[27].mxu0  ;;  %v1621_v50 = vpop.f32.mrb[27].mxu1  ;;  %v5245_v25 = vmul.f32 -1.442695, %v1625_v59  ;;  %v1659_v2 = vunpack.c.l.bf16 %v6865_v44 }
 0x3b2   :  { %v5244_v18 = vmul.f32 -1.442695, %v1624_v63  ;;  %v7064_v56 = vld [vmem:[#allocation9 + $0xcc] ss:$16 sps:$4 sm:$0xff]   ;;  %v7069_v57 = vld [vmem:[#allocation9 + $0xc0] ss:$16 sps:$4 sm:$0xff]   ;;  %v1658_v5 = vunpack.c.h.bf16 %v6863_v34  ;;  %v1660_v50 = vunpack.c.h.bf16 %v6865_v44 }
 0x3b3   :  { %5934 = vpow2.f32 %v5243_v4  ;;  %v7071_v58 = vld [vmem:[#allocation9 + $0xc8] ss:$16 sps:$4 sm:$0xff]   ;;  %v7075_v59 = vld [vmem:[#allocation9 + $0xe4] ss:$16 sps:$4 sm:$0xff]   ;;  %v7077_v60 = vld [vmem:[#allocation9 + $0xec] ss:$16 sps:$4 sm:$0xff]  }
 0x3b4   :  { %5936 = vpow2.f32 %v5244_v18  ;;  %v7081_v61 = vld [vmem:[#allocation9 + $0xe0] ss:$16 sps:$4 sm:$0xff]   ;;  %v7083_v63 = vld [vmem:[#allocation9 + $0xe8] ss:$16 sps:$4 sm:$0xff]  }
 0x3b5   :  { %5938 = vtanh.f32 %v1626_v1  ;;  %v1657_v1 = vunpack.c.l.bf16 %v6863_v34 }
 0x3b6   :  { %5940 = vpow2.f32 %v5245_v25 }
 0x3bd   :  { %v5935_v26 = vpop.eup %5934 }
 0x3be   :  { %v1636_v27 = vadd.f32 1.0, %v5935_v26  ;;  %v5937_v29 = vpop.eup %5936 }
 0x3bf   :  { %v1637_v31 = vadd.f32 1.0, %v5937_v29  ;;  %v5939_v28 = vpop.eup %5938 }
 0x3c0   :  { %5942 = vrcp.f32 %v1636_v27  ;;  %v5941_v7 = vpop.eup %5940 }
 0x3c1   :  { %5944 = vrcp.f32 %v1637_v31  ;;  %v1638_v33 = vadd.f32 1.0, %v5941_v7 }
 0x3c3   :  { %5946 = vrcp.f32 %v1638_v33 }
 0x3ca   :  { %v5943_v13 = vpop.eup %5942 }
 0x3cb   :  { %v1647_v53 = vmul.f32 %v5943_v13, %v5939_v28  ;;  %v5945_v62 = vpop.eup %5944 }
 0x3cc   :  { %v1646_v9 = vmul.f32 %v5945_v62, %v6946_v21  ;;  %v7041_v21 = vld [vmem:[#allocation9 + $0x84] ss:$16 sps:$4 sm:$0xff]  }
 0x3cd   :  { %v5947_v10 = vpop.eup %5946 }
 0x3ce   :  { %v7022_v35 = vadd.f32 %v1647_v53, %v1646_v9 }
 0x3d0   :  { %5948 = vtanh.f32 %v7022_v35 }
 0x3da   :  { %v5949_v15 = vpop.eup %5948 }
 0x3db   :  { %v1650_v8 = vmul.f32 %v5949_v15, %v5947_v10 }
 0x3dd   :  { %v1651_v16 = vpack.c.bf16 %v1650_v8, %v1650_v8 }
 0x3df   :  { %1653 = vst [vmem:[#allocation3 + $0x8] sm:$0xf] %v1651_v16  ;;  %1886 = vmatmul.mubr.bf16.vlgmr.msra.gmra.mrb[28].mxu0 %v1651_v16  ;;  %1927 = vmatmul.mubr.bf16.vlgmr.msra.gmra.mrb[28].mxu1 %v1651_v16 }
 0x3e0   :  { %2166 = vmatpush1.bf16.msra.mxu0 %v6955_v17  ;;  %2207 = vmatpush1.bf16.msra.mxu1 %v6957_v36 }
 0x3e1   :  { %2167 = vmatprep.subr.bf16.mxu0 %v6963_v37  ;;  %2208 = vmatprep.subr.bf16.mxu1 %v6965_v38 }
 0x3e2   :  { %2197 = vmatprep.mubr.bf16.mxu0 %v7840_v19  ;;  %2238 = vmatprep.mubr.bf16.mxu1 %v7840_v19 }
 0x3e4   :  { %2168 = vmatpush1.bf16.msra.mxu0 %v6967_v39  ;;  %2209 = vmatpush1.bf16.msra.mxu1 %v6969_v40 }
 0x3e5   :  { %2169 = vmatprep.subr.bf16.mxu0 %v6975_v41  ;;  %2210 = vmatprep.subr.bf16.mxu1 %v6977_v42 }
 0x3e8   :  { %2170 = vmatpush1.bf16.msra.mxu0 %v6979_v43  ;;  %2211 = vmatpush1.bf16.msra.mxu1 %v6981_v45 }
 0x3e9   :  { %2171 = vmatprep.subr.bf16.mxu0 %v6987_v46  ;;  %2212 = vmatprep.subr.bf16.mxu1 %v6989_v47 }
 0x3ec   :  { %2172 = vmatpush1.bf16.msra.mxu0 %v6991_v48  ;;  %2213 = vmatpush1.bf16.msra.mxu1 %v6993_v49 }
 0x3ed   :  { %2173 = vmatprep.subr.bf16.mxu0 %v7041_v21  ;;  %2214 = vmatprep.subr.bf16.mxu1 %v7043_v12 }
 0x3f0   :  { %2174 = vmatpush1.bf16.msra.mxu0 %v7045_v23  ;;  %2215 = vmatpush1.bf16.msra.mxu1 %v7047_v0 }
 0x3f1   :  { %2175 = vmatprep.subr.bf16.mxu0 %v7055_v51  ;;  %2216 = vmatprep.subr.bf16.mxu1 %v7059_v54 }
 0x3f4   :  { %2176 = vmatpush1.bf16.msra.mxu0 %v7053_v24  ;;  %2217 = vmatpush1.bf16.msra.mxu1 %v7057_v52 }
 0x3f5   :  { %2177 = vmatprep.subr.bf16.mxu0 %v7061_v55  ;;  %2218 = vmatprep.subr.bf16.mxu1 %v7064_v56 }
 0x3f8   :  { %2178 = vmatpush1.bf16.msra.mxu0 %v7069_v57  ;;  %2219 = vmatpush1.bf16.msra.mxu1 %v7071_v58 }
 0x3f9   :  { %2179 = vmatprep.subr.bf16.mxu0 %v7075_v59  ;;  %2220 = vmatprep.subr.bf16.mxu1 %v7077_v60 }
 0x3fc   :  { %2180 = vmatpush1.bf16.msra.mxu0 %v7081_v61  ;;  %2221 = vmatpush1.bf16.msra.mxu1 %v7083_v63 }
 0x3fd   :  { %2477 = vmatprep.subr.bf16.mxu0 %v6951_v11  ;;  %2518 = vmatprep.subr.bf16.mxu1 %v6953_v22 }
 0x4b2   :  { %v1887_v3 = vpop.f32.mrb[28].mxu0  ;;  %v1928_v4 = vpop.f32.mrb[28].mxu1 }
 0x4b3   :  { %v1935_v18 = vadd.f32 %v1887_v3, %v1657_v1  ;;  %v1937_v25 = vadd.f32 %v1928_v4, %v1659_v2  ;;  %v1889_v26 = vpop.f32.mrb[29].mxu0  ;;  %v1930_v27 = vpop.f32.mrb[29].mxu1 }
 0x4b4   :  { %v1936_v29 = vadd.f32 %v1889_v26, %v1658_v5  ;;  %v1938_v31 = vadd.f32 %v1930_v27, %v1660_v50  ;;  %v1891_v28 = vpop.f32.mrb[30].mxu0  ;;  %v1932_v7 = vpop.f32.mrb[30].mxu1 }
 0x4b5   :  { %v5278_v13 = vmul.f32 -1.442695, %v1935_v18  ;;  %v1892_v53 = vpop.f32.mrb[31].mxu0  ;;  %v1933_v62 = vpop.f32.mrb[31].mxu1  ;;  %v5280_v9 = vmul.f32 -1.442695, %v1937_v25  ;;  %v1970_v7 = vunpack.c.h.bf16 %v6873_v30 }
 0x4b6   :  { %v5279_v33 = vmul.f32 -1.442695, %v1936_v29  ;;  %v1971_v29 = vunpack.c.l.bf16 %v6876_v6 }
 0x4b7   :  { %5950 = vpow2.f32 %v5278_v13  ;;  %v1972_v13 = vunpack.c.h.bf16 %v6876_v6 }
 0x4b8   :  { %5952 = vpow2.f32 %v5279_v33 }
 0x4b9   :  { %5954 = vtanh.f32 %v1938_v31 }
 0x4ba   :  { %5956 = vpow2.f32 %v5280_v9 }
 0x4c1   :  { %v5951_v10 = vpop.eup %5950 }
 0x4c2   :  { %v1948_v15 = vadd.f32 1.0, %v5951_v10  ;;  %v5953_v34 = vpop.eup %5952 }
 0x4c3   :  { %v1949_v44 = vadd.f32 1.0, %v5953_v34  ;;  %v5955_v8 = vpop.eup %5954 }
 0x4c4   :  { %5958 = vrcp.f32 %v1948_v15  ;;  %v5957_v16 = vpop.eup %5956 }
 0x4c5   :  { %5960 = vrcp.f32 %v1949_v44  ;;  %v1950_v4 = vadd.f32 1.0, %v5957_v16 }
 0x4c7   :  { %5962 = vrcp.f32 %v1950_v4 }
 0x4ce   :  { %v5959_v1 = vpop.eup %5958 }
 0x4cf   :  { %v1959_v2 = vmul.f32 %v5959_v1, %v5955_v8  ;;  %v5961_v3 = vpop.eup %5960 }
 0x4d0   :  { %v1958_v5 = vmul.f32 %v5961_v3, %v7022_v35  ;;  %v1969_v35 = vunpack.c.l.bf16 %v6873_v30 }
 0x4d1   :  { %v5963_v18 = vpop.eup %5962 }
 0x4d2   :  { %v7096_v50 = vadd.f32 %v1959_v2, %v1958_v5 }
 0x4d4   :  { %5964 = vtanh.f32 %v7096_v50 }
 0x4de   :  { %v5965_v25 = vpop.eup %5964 }
 0x4df   :  { %v1962_v26 = vmul.f32 %v5965_v25, %v5963_v18 }
 0x4e1   :  { %v1963_v27 = vpack.c.bf16 %v1962_v26, %v1962_v26 }
 0x4e3   :  { %1965 = vst [vmem:[#allocation3 + $0xc] sm:$0xf] %v1963_v27  ;;  %2198 = vmatmul.mubr.bf16.vlgmr.msra.gmra.mrb[32].mxu0 %v1963_v27  ;;  %2239 = vmatmul.mubr.bf16.vlgmr.msra.gmra.mrb[32].mxu1 %v1963_v27 }
 0x4e4   :  { %2478 = vmatpush1.bf16.msra.mxu0 %v6955_v17  ;;  %2519 = vmatpush1.bf16.msra.mxu1 %v6957_v36 }
 0x4e5   :  { %2479 = vmatprep.subr.bf16.mxu0 %v6963_v37  ;;  %2520 = vmatprep.subr.bf16.mxu1 %v6965_v38 }
 0x4e6   :  { %2509 = vmatprep.mubr.bf16.mxu0 %v7840_v19  ;;  %2550 = vmatprep.mubr.bf16.mxu1 %v7840_v19 }
 0x4e8   :  { %2480 = vmatpush1.bf16.msra.mxu0 %v6967_v39  ;;  %2521 = vmatpush1.bf16.msra.mxu1 %v6969_v40 }
 0x4e9   :  { %2481 = vmatprep.subr.bf16.mxu0 %v6975_v41  ;;  %2522 = vmatprep.subr.bf16.mxu1 %v6977_v42 }
 0x4ec   :  { %2482 = vmatpush1.bf16.msra.mxu0 %v6979_v43  ;;  %2523 = vmatpush1.bf16.msra.mxu1 %v6981_v45 }
 0x4ed   :  { %2483 = vmatprep.subr.bf16.mxu0 %v6987_v46  ;;  %2524 = vmatprep.subr.bf16.mxu1 %v6989_v47 }
 0x4f0   :  { %2484 = vmatpush1.bf16.msra.mxu0 %v6991_v48  ;;  %2525 = vmatpush1.bf16.msra.mxu1 %v6993_v49 }
 0x4f1   :  { %2485 = vmatprep.subr.bf16.mxu0 %v7041_v21  ;;  %2526 = vmatprep.subr.bf16.mxu1 %v7043_v12 }
 0x4f4   :  { %2486 = vmatpush1.bf16.msra.mxu0 %v7045_v23  ;;  %2527 = vmatpush1.bf16.msra.mxu1 %v7047_v0 }
 0x4f5   :  { %2487 = vmatprep.subr.bf16.mxu0 %v7055_v51  ;;  %2528 = vmatprep.subr.bf16.mxu1 %v7059_v54 }
 0x4f8   :  { %2488 = vmatpush1.bf16.msra.mxu0 %v7053_v24  ;;  %2529 = vmatpush1.bf16.msra.mxu1 %v7057_v52 }
 0x4f9   :  { %2489 = vmatprep.subr.bf16.mxu0 %v7061_v55  ;;  %2530 = vmatprep.subr.bf16.mxu1 %v7064_v56 }
 0x4fc   :  { %2490 = vmatpush1.bf16.msra.mxu0 %v7069_v57  ;;  %2531 = vmatpush1.bf16.msra.mxu1 %v7071_v58 }
 0x4fd   :  { %2491 = vmatprep.subr.bf16.mxu0 %v7075_v59  ;;  %2532 = vmatprep.subr.bf16.mxu1 %v7077_v60 }
 0x500   :  { %2492 = vmatpush1.bf16.msra.mxu0 %v7081_v61  ;;  %2533 = vmatpush1.bf16.msra.mxu1 %v7083_v63 }
 0x501   :  { %2789 = vmatprep.subr.bf16.mxu0 %v6951_v11  ;;  %2830 = vmatprep.subr.bf16.mxu1 %v6953_v22 }
 0x5b6   :  { %v2199_v31 = vpop.f32.mrb[32].mxu0  ;;  %v2240_v28 = vpop.f32.mrb[32].mxu1 }
 0x5b7   :  { %v2247_v53 = vadd.f32 %v2199_v31, %v1969_v35  ;;  %v2249_v62 = vadd.f32 %v2240_v28, %v1971_v29  ;;  %v2201_v33 = vpop.f32.mrb[33].mxu0  ;;  %v2242_v9 = vpop.f32.mrb[33].mxu1 }
 0x5b8   :  { %v2248_v10 = vadd.f32 %v2201_v33, %v1970_v7  ;;  %v2250_v15 = vadd.f32 %v2242_v9, %v1972_v13  ;;  %v2203_v34 = vpop.f32.mrb[34].mxu0  ;;  %v2244_v11 = vpop.f32.mrb[34].mxu1 }
 0x5b9   :  { %v5313_v44 = vmul.f32 -1.442695, %v2247_v53  ;;  %v2204_v22 = vpop.f32.mrb[35].mxu0  ;;  %v2245_v8 = vpop.f32.mrb[35].mxu1  ;;  %v5315_v1 = vmul.f32 -1.442695, %v2249_v62 }
 0x5ba   :  { %v5314_v16 = vmul.f32 -1.442695, %v2248_v10 }
 0x5bb   :  { %5966 = vpow2.f32 %v5313_v44 }
 0x5bc   :  { %5968 = vpow2.f32 %v5314_v16 }
 0x5bd   :  { %5970 = vtanh.f32 %v2250_v15 }
 0x5be   :  { %5972 = vpow2.f32 %v5315_v1 }
 0x5c5   :  { %v5967_v2 = vpop.eup %5966 }
 0x5c6   :  { %v2260_v3 = vadd.f32 1.0, %v5967_v2  ;;  %v5969_v30 = vpop.eup %5968 }
 0x5c7   :  { %v2261_v6 = vadd.f32 1.0, %v5969_v30  ;;  %v5971_v4 = vpop.eup %5970 }
 0x5c8   :  { %5974 = vrcp.f32 %v2260_v3  ;;  %v5973_v5 = vpop.eup %5972 }
 0x5c9   :  { %5976 = vrcp.f32 %v2261_v6  ;;  %v2262_v27 = vadd.f32 1.0, %v5973_v5  ;;  %v5772_v5 = vld [vmem:[#allocation9 + $0x4] ss:$16 sps:$4 sm:$0xff]  }
 0x5cb   :  { %5978 = vrcp.f32 %v2262_v27  ;;  %v5778_v27 = vld [vmem:[#allocation9 + $0x24] ss:$16 sps:$4 sm:$0xff]  }
 0x5d2   :  { %v5975_v18 = vpop.eup %5974 }
 0x5d3   :  { %v2271_v25 = vmul.f32 %v5975_v18, %v5971_v4  ;;  %v5977_v26 = vpop.eup %5976  ;;  %v5775_v18 = vld [vmem:[#allocation9 + $0xc] ss:$16 sps:$4 sm:$0xff]  }
 0x5d4   :  { %v2270_v35 = vmul.f32 %v5977_v26, %v7096_v50  ;;  %v5773_v26 = vld [vmem:[#allocation9 + $0x8] ss:$16 sps:$4 sm:$0xff]  }
 0x5d5   :  { %v5979_v31 = vpop.eup %5978 }
 0x5d6   :  { %v7138_v29 = vadd.f32 %v2271_v25, %v2270_v35  ;;  %v5770_v25 = vld [vmem:[#allocation9] ss:$16 sps:$4 sm:$0xff]   ;;  %v5781_v35 = vld [vmem:[#allocation9 + $0x2c] ss:$16 sps:$4 sm:$0xff]  }
 0x5d8   :  { %5980 = vtanh.f32 %v7138_v29 }
 0x5e2   :  { %v5981_v28 = vpop.eup %5980 }
 0x5e3   :  { %v2274_v7 = vmul.f32 %v5981_v28, %v5979_v31  ;;  %v5779_v31 = vld [vmem:[#allocation9 + $0x28] ss:$16 sps:$4 sm:$0xff]   ;;  %v5784_v28 = vld [vmem:[#allocation9 + $0x44] ss:$16 sps:$4 sm:$0xff]  }
 0x5e5   :  { %v2275_v13 = vpack.c.bf16 %v2274_v7, %v2274_v7  ;;  %v5787_v7 = vld [vmem:[#allocation9 + $0x4c] ss:$16 sps:$4 sm:$0xff]  }
 0x5e7   :  { %2277 = vst [vmem:[#allocation3 + $0x10] sm:$0xf] %v2275_v13  ;;  %2510 = vmatmul.mubr.bf16.vlgmr.msra.gmra.mrb[36].mxu0 %v2275_v13  ;;  %2551 = vmatmul.mubr.bf16.vlgmr.msra.gmra.mrb[36].mxu1 %v2275_v13  ;;  %v5782_v13 = vld [vmem:[#allocation9 + $0x40] ss:$16 sps:$4 sm:$0xff]  }
 0x5e8   :  { %2790 = vmatpush1.bf16.msra.mxu0 %v6955_v17  ;;  %2831 = vmatpush1.bf16.msra.mxu1 %v6957_v36  ;;  %v2281_v17 = vunpack.c.l.bf16 %v6879_v14  ;;  %v2283_v36 = vunpack.c.l.bf16 %v6881_v20 }
 0x5e9   :  { %2791 = vmatprep.subr.bf16.mxu0 %v6963_v37  ;;  %2832 = vmatprep.subr.bf16.mxu1 %v6965_v38 }
 0x5ea   :  { %2821 = vmatprep.mubr.bf16.mxu0 %v7840_v19  ;;  %2862 = vmatprep.mubr.bf16.mxu1 %v7840_v19 }
 0x5ec   :  { %2792 = vmatpush1.bf16.msra.mxu0 %v6967_v39  ;;  %2833 = vmatpush1.bf16.msra.mxu1 %v6969_v40  ;;  %v2282_v39 = vunpack.c.h.bf16 %v6879_v14  ;;  %v2284_v40 = vunpack.c.h.bf16 %v6881_v20 }
 0x5ed   :  { %2793 = vmatprep.subr.bf16.mxu0 %v6975_v41  ;;  %2834 = vmatprep.subr.bf16.mxu1 %v6977_v42 }
 0x5f0   :  { %2794 = vmatpush1.bf16.msra.mxu0 %v6979_v43  ;;  %2835 = vmatpush1.bf16.msra.mxu1 %v6981_v45 }
 0x5f1   :  { %2795 = vmatprep.subr.bf16.mxu0 %v6987_v46  ;;  %2836 = vmatprep.subr.bf16.mxu1 %v6989_v47 }
 0x5f4   :  { %2796 = vmatpush1.bf16.msra.mxu0 %v6991_v48  ;;  %2837 = vmatpush1.bf16.msra.mxu1 %v6993_v49 }
 0x5f5   :  { %2797 = vmatprep.subr.bf16.mxu0 %v7041_v21  ;;  %2838 = vmatprep.subr.bf16.mxu1 %v7043_v12 }
 0x5f8   :  { %2798 = vmatpush1.bf16.msra.mxu0 %v7045_v23  ;;  %2839 = vmatpush1.bf16.msra.mxu1 %v7047_v0 }
 0x5f9   :  { %2799 = vmatprep.subr.bf16.mxu0 %v7055_v51  ;;  %2840 = vmatprep.subr.bf16.mxu1 %v7059_v54 }
 0x5fc   :  { %2800 = vmatpush1.bf16.msra.mxu0 %v7053_v24  ;;  %2841 = vmatpush1.bf16.msra.mxu1 %v7057_v52 }
 0x5fd   :  { %2801 = vmatprep.subr.bf16.mxu0 %v7061_v55  ;;  %2842 = vmatprep.subr.bf16.mxu1 %v7064_v56 }
 0x600   :  { %2802 = vmatpush1.bf16.msra.mxu0 %v7069_v57  ;;  %2843 = vmatpush1.bf16.msra.mxu1 %v7071_v58 }
 0x601   :  { %2803 = vmatprep.subr.bf16.mxu0 %v7075_v59  ;;  %2844 = vmatprep.subr.bf16.mxu1 %v7077_v60 }
 0x604   :  { %2804 = vmatpush1.bf16.msra.mxu0 %v7081_v61  ;;  %2845 = vmatpush1.bf16.msra.mxu1 %v7083_v63 }
 0x605   :  { %3101 = vmatprep.subr.bf16.mxu0 %v5772_v5  ;;  %3142 = vmatprep.subr.bf16.mxu1 %v5775_v18  ;;  %v5809_v5 = vld [vmem:[#allocation12 + $0x48] ss:$16 sps:$4 sm:$0xff]   ;;  %v5814_v18 = vld [vmem:[#allocation12 + $0x64] ss:$16 sps:$4 sm:$0xff]  }
 0x6ba   :  { %v2511_v37 = vpop.f32.mrb[36].mxu0  ;;  %v2552_v38 = vpop.f32.mrb[36].mxu1 }
 0x6bb   :  { %v2559_v41 = vadd.f32 %v2511_v37, %v2281_v17  ;;  %v2561_v42 = vadd.f32 %v2552_v38, %v2283_v36  ;;  %v2513_v43 = vpop.f32.mrb[37].mxu0  ;;  %v2554_v45 = vpop.f32.mrb[37].mxu1  ;;  %v5785_v17 = vld [vmem:[#allocation9 + $0x48] ss:$16 sps:$4 sm:$0xff]   ;;  %v5790_v36 = vld [vmem:[#allocation9 + $0x64] ss:$16 sps:$4 sm:$0xff]  }
 0x6bc   :  { %v2560_v46 = vadd.f32 %v2513_v43, %v2282_v39  ;;  %v2562_v47 = vadd.f32 %v2554_v45, %v2284_v40  ;;  %v2515_v48 = vpop.f32.mrb[38].mxu0  ;;  %v2556_v49 = vpop.f32.mrb[38].mxu1  ;;  %v5793_v37 = vld [vmem:[#allocation9 + $0x6c] ss:$16 sps:$4 sm:$0xff]   ;;  %v5788_v38 = vld [vmem:[#allocation9 + $0x60] ss:$16 sps:$4 sm:$0xff]  }
 0x6bd   :  { %v5348_v50 = vmul.f32 -1.442695, %v2559_v41  ;;  %v2516_v53 = vpop.f32.mrb[39].mxu0  ;;  %v2557_v62 = vpop.f32.mrb[39].mxu1  ;;  %v5350_v9 = vmul.f32 -1.442695, %v2561_v42 }
 0x6be   :  { %v5349_v33 = vmul.f32 -1.442695, %v2560_v46  ;;  %v5791_v39 = vld [vmem:[#allocation9 + $0x68] ss:$16 sps:$4 sm:$0xff]  }
 0x6bf   :  { %5982 = vpow2.f32 %v5348_v50 }
 0x6c0   :  { %5984 = vpow2.f32 %v5349_v33 }
 0x6c1   :  { %5986 = vtanh.f32 %v2562_v47 }
 0x6c2   :  { %5988 = vpow2.f32 %v5350_v9 }
 0x6c9   :  { %v5983_v10 = vpop.eup %5982 }
 0x6ca   :  { %v2572_v15 = vadd.f32 1.0, %v5983_v10  ;;  %v5985_v14 = vpop.eup %5984 }
 0x6cb   :  { %v2573_v20 = vadd.f32 1.0, %v5985_v14  ;;  %v5987_v34 = vpop.eup %5986 }
 0x6cc   :  { %5990 = vrcp.f32 %v2572_v15  ;;  %v5989_v11 = vpop.eup %5988 }
 0x6cd   :  { %5992 = vrcp.f32 %v2573_v20  ;;  %v2574_v16 = vadd.f32 1.0, %v5989_v11 }
 0x6cf   :  { %5994 = vrcp.f32 %v2574_v16  ;;  %v5802_v16 = vld [vmem:[#allocation12 + $0x24] ss:$16 sps:$4 sm:$0xff]  }
 0x6d6   :  { %v5991_v44 = vpop.eup %5990 }
 0x6d7   :  { %v2583_v22 = vmul.f32 %v5991_v44, %v5987_v34  ;;  %v5993_v8 = vpop.eup %5992  ;;  %v5794_v44 = vld [vmem:[#allocation12] ss:$16 sps:$4 sm:$0xff]  }
 0x6d8   :  { %v2582_v1 = vmul.f32 %v5993_v8, %v7138_v29  ;;  %v5776_v29 = vld [vmem:[#allocation9 + $0x20] ss:$16 sps:$4 sm:$0xff]  }
 0x6d9   :  { %v5995_v3 = vpop.eup %5994 }
 0x6da   :  { %v7178_v2 = vadd.f32 %v2583_v22, %v2582_v1  ;;  %v5797_v22 = vld [vmem:[#allocation12 + $0x8] ss:$16 sps:$4 sm:$0xff]   ;;  %v5805_v1 = vld [vmem:[#allocation12 + $0x2c] ss:$16 sps:$4 sm:$0xff]  }
 0x6dc   :  { %5996 = vtanh.f32 %v7178_v2 }
 0x6e6   :  { %v5997_v30 = vpop.eup %5996 }
 0x6e7   :  { %v2586_v6 = vmul.f32 %v5997_v30, %v5995_v3  ;;  %v5800_v3 = vld [vmem:[#allocation12 + $0x20] ss:$16 sps:$4 sm:$0xff]   ;;  %v5808_v30 = vld [vmem:[#allocation12 + $0x44] ss:$16 sps:$4 sm:$0xff]  }
 0x6e9   :  { %v2587_v4 = vpack.c.bf16 %v2586_v6, %v2586_v6  ;;  %v5811_v6 = vld [vmem:[#allocation12 + $0x4c] ss:$16 sps:$4 sm:$0xff]  }
 0x6eb   :  { %2589 = vst [vmem:[#allocation3 + $0x14] sm:$0xf] %v2587_v4  ;;  %2822 = vmatmul.mubr.bf16.vlgmr.msra.gmra.mrb[40].mxu0 %v2587_v4  ;;  %2863 = vmatmul.mubr.bf16.vlgmr.msra.gmra.mrb[40].mxu1 %v2587_v4  ;;  %v5806_v4 = vld [vmem:[#allocation12 + $0x40] ss:$16 sps:$4 sm:$0xff]  }
 0x6ec   :  { %3133 = vmatprep.mubr.bf16.mxu0 %v7840_v19  ;;  %3174 = vmatprep.mubr.bf16.mxu1 %v7840_v19 }
 0x6ed   :  { %3102 = vmatpush1.bf16.msra.mxu0 %v5770_v25  ;;  %3143 = vmatpush1.bf16.msra.mxu1 %v5773_v26  ;;  %v5817_v25 = vld [vmem:[#allocation12 + $0x6c] ss:$16 sps:$4 sm:$0xff]   ;;  %v5812_v26 = vld [vmem:[#allocation12 + $0x60] ss:$16 sps:$4 sm:$0xff]  }
 0x6ee   :  { %3103 = vmatprep.subr.bf16.mxu0 %v5778_v27  ;;  %3144 = vmatprep.subr.bf16.mxu1 %v5781_v35  ;;  %v5815_v27 = vld [vmem:[#allocation12 + $0x68] ss:$16 sps:$4 sm:$0xff]   ;;  %v5820_v35 = vld [vmem:[#allocation12 + $0x84] ss:$16 sps:$4 sm:$0xff]  }
 0x6f1   :  { %3104 = vmatpush1.bf16.msra.mxu0 %v5776_v29  ;;  %3145 = vmatpush1.bf16.msra.mxu1 %v5779_v31  ;;  %v5823_v29 = vld [vmem:[#allocation12 + $0x8c] ss:$16 sps:$4 sm:$0xff]   ;;  %v5818_v31 = vld [vmem:[#allocation12 + $0x80] ss:$16 sps:$4 sm:$0xff]  }
 0x6f2   :  { %3105 = vmatprep.subr.bf16.mxu0 %v5784_v28  ;;  %3146 = vmatprep.subr.bf16.mxu1 %v5787_v7  ;;  %v5821_v28 = vld [vmem:[#allocation12 + $0x88] ss:$16 sps:$4 sm:$0xff]   ;;  %v5826_v7 = vld [vmem:[#allocation12 + $0xa4] ss:$16 sps:$4 sm:$0xff]  }
 0x6f5   :  { %3106 = vmatpush1.bf16.msra.mxu0 %v5782_v13  ;;  %3147 = vmatpush1.bf16.msra.mxu1 %v5785_v17  ;;  %v5829_v13 = vld [vmem:[#allocation12 + $0xac] ss:$16 sps:$4 sm:$0xff]   ;;  %v5824_v17 = vld [vmem:[#allocation12 + $0xa0] ss:$16 sps:$4 sm:$0xff]  }
 0x6f6   :  { %3107 = vmatprep.subr.bf16.mxu0 %v5790_v36  ;;  %3148 = vmatprep.subr.bf16.mxu1 %v5793_v37  ;;  %v5827_v36 = vld [vmem:[#allocation12 + $0xa8] ss:$16 sps:$4 sm:$0xff]   ;;  %v5832_v37 = vld [vmem:[#allocation12 + $0xc4] ss:$16 sps:$4 sm:$0xff]  }
 0x6f9   :  { %3108 = vmatpush1.bf16.msra.mxu0 %v5788_v38  ;;  %3149 = vmatpush1.bf16.msra.mxu1 %v5791_v39  ;;  %v5835_v38 = vld [vmem:[#allocation12 + $0xcc] ss:$16 sps:$4 sm:$0xff]   ;;  %v5830_v39 = vld [vmem:[#allocation12 + $0xc0] ss:$16 sps:$4 sm:$0xff]  }
 0x6fa   :  { %3109 = vmatprep.subr.bf16.mxu0 %v7041_v21  ;;  %3150 = vmatprep.subr.bf16.mxu1 %v7043_v12  ;;  %v5796_v21 = vld [vmem:[#allocation12 + $0x4] ss:$16 sps:$4 sm:$0xff]   ;;  %v5799_v12 = vld [vmem:[#allocation12 + $0xc] ss:$16 sps:$4 sm:$0xff]  }
 0x6fd   :  { %3110 = vmatpush1.bf16.msra.mxu0 %v7045_v23  ;;  %3151 = vmatpush1.bf16.msra.mxu1 %v7047_v0  ;;  %v2593_v23 = vunpack.c.l.bf16 %v6889_v32  ;;  %v7841_v0 = vld [vmem:[#allocation30_spill] sm:$0xff] }
 0x6fe   :  { %3111 = vmatprep.subr.bf16.mxu0 %v7055_v51  ;;  %3152 = vmatprep.subr.bf16.mxu1 %v7059_v54  ;;  %v2594_v54 = vunpack.c.h.bf16 %v6889_v32 }
 0x701   :  { %3112 = vmatpush1.bf16.msra.mxu0 %v7053_v24  ;;  %3153 = vmatpush1.bf16.msra.mxu1 %v7057_v52  ;;  %v2595_v24 = vunpack.c.l.bf16 %v7841_v0 }
 0x702   :  { %3113 = vmatprep.subr.bf16.mxu0 %v7061_v55  ;;  %3154 = vmatprep.subr.bf16.mxu1 %v7064_v56  ;;  %v2596_v55 = vunpack.c.h.bf16 %v7841_v0  ;;  %v5836_v0 = vld [vmem:[#allocation12 + $0xe0] ss:$16 sps:$4 sm:$0xff]  }
 0x705   :  { %3114 = vmatpush1.bf16.msra.mxu0 %v7069_v57  ;;  %3155 = vmatpush1.bf16.msra.mxu1 %v7071_v58 }
 0x706   :  { %3115 = vmatprep.subr.bf16.mxu0 %v7075_v59  ;;  %3156 = vmatprep.subr.bf16.mxu1 %v7077_v60 }
 0x709   :  { %3116 = vmatpush1.bf16.msra.mxu0 %v7081_v61  ;;  %3157 = vmatpush1.bf16.msra.mxu1 %v7083_v63 }
 0x70a   :  { %3441 = vmatprep.subr.bf16.mxu0 %v5796_v21  ;;  %3514 = vmatprep.subr.bf16.mxu1 %v5799_v12  ;;  %v5833_v21 = vld [vmem:[#allocation12 + $0xc8] ss:$16 sps:$4 sm:$0xff]   ;;  %v5838_v12 = vld [vmem:[#allocation12 + $0xe4] ss:$16 sps:$4 sm:$0xff]  }
 0x7be   :  { %v2823_v51 = vpop.f32.mrb[40].mxu0  ;;  %v2864_v52 = vpop.f32.mrb[40].mxu1 }
 0x7bf   :  { %v2871_v56 = vadd.f32 %v2823_v51, %v2593_v23  ;;  %v2873_v57 = vadd.f32 %v2864_v52, %v2595_v24  ;;  %v2825_v58 = vpop.f32.mrb[41].mxu0  ;;  %v2866_v59 = vpop.f32.mrb[41].mxu1  ;;  %v5841_v23 = vld [vmem:[#allocation12 + $0xec] ss:$16 sps:$4 sm:$0xff]   ;;  %v5839_v24 = vld [vmem:[#allocation12 + $0xe8] ss:$16 sps:$4 sm:$0xff]  }
 0x7c0   :  { %v2872_v60 = vadd.f32 %v2825_v58, %v2594_v54  ;;  %v2874_v61 = vadd.f32 %v2866_v59, %v2596_v55  ;;  %v2827_v40 = vpop.f32.mrb[42].mxu0  ;;  %v2868_v63 = vpop.f32.mrb[42].mxu1  ;;  %v5842_v51 = vld [vmem:[#allocation3] sm:$0xff]   ;;  %v5843_v52 = vld [vmem:[#allocation3 + $0x8] sm:$0xff]   ;;  %v5844_v54 = vld [vmem:[#allocation3 + $0x10] sm:$0xff]  }
 0x7c1   :  { %v5383_v41 = vmul.f32 -1.442695, %v2871_v56  ;;  %v2828_v42 = vpop.f32.mrb[43].mxu0  ;;  %v2869_v43 = vpop.f32.mrb[43].mxu1  ;;  %v5385_v46 = vmul.f32 -1.442695, %v2873_v57 }
 0x7c2   :  { %v5384_v45 = vmul.f32 -1.442695, %v2872_v60  ;;  %v7215_v55 = vld [vmem:[#allocation13 + $0x4] ss:$16 sps:$4 sm:$0xff]   ;;  %v7217_v56 = vld [vmem:[#allocation13 + $0xc] ss:$16 sps:$4 sm:$0xff]  }
 0x7c3   :  { %5998 = vpow2.f32 %v5383_v41  ;;  %v7219_v57 = vld [vmem:[#allocation13] ss:$16 sps:$4 sm:$0xff]   ;;  %v7221_v58 = vld [vmem:[#allocation13 + $0x8] ss:$16 sps:$4 sm:$0xff]   ;;  %v7227_v59 = vld [vmem:[#allocation13 + $0x24] ss:$16 sps:$4 sm:$0xff]  }
 0x7c4   :  { %6000 = vpow2.f32 %v5384_v45  ;;  %v7229_v60 = vld [vmem:[#allocation13 + $0x2c] ss:$16 sps:$4 sm:$0xff]   ;;  %v7233_v40 = vld [vmem:[#allocation13 + $0x28] ss:$16 sps:$4 sm:$0xff]   ;;  %v7239_v63 = vld [vmem:[#allocation13 + $0x44] ss:$16 sps:$4 sm:$0xff]  }
 0x7c5   :  { %6002 = vtanh.f32 %v2874_v61  ;;  %v7231_v61 = vld [vmem:[#allocation13 + $0x20] ss:$16 sps:$4 sm:$0xff]   ;;  %v7241_v41 = vld [vmem:[#allocation13 + $0x4c] ss:$16 sps:$4 sm:$0xff]   ;;  %v7245_v43 = vld [vmem:[#allocation13 + $0x48] ss:$16 sps:$4 sm:$0xff]  }
 0x7c6   :  { %6004 = vpow2.f32 %v5385_v46  ;;  %v7243_v42 = vld [vmem:[#allocation13 + $0x40] ss:$16 sps:$4 sm:$0xff]   ;;  %v7251_v45 = vld [vmem:[#allocation13 + $0x64] ss:$16 sps:$4 sm:$0xff]   ;;  %v7253_v46 = vld [vmem:[#allocation13 + $0x6c] ss:$16 sps:$4 sm:$0xff]  }
 0x7cd   :  { %v5999_v47 = vpop.eup %5998 }
 0x7ce   :  { %v2884_v48 = vadd.f32 1.0, %v5999_v47  ;;  %v6001_v32 = vpop.eup %6000  ;;  %v7255_v47 = vld [vmem:[#allocation13 + $0x60] ss:$16 sps:$4 sm:$0xff]  }
 0x7cf   :  { %v2885_v49 = vadd.f32 1.0, %v6001_v32  ;;  %v6003_v50 = vpop.eup %6002  ;;  %v7263_v32 = vld [vmem:[#allocation13 + $0x84] ss:$16 sps:$4 sm:$0xff]  }
 0x7d0   :  { %6006 = vrcp.f32 %v2884_v48  ;;  %v6005_v53 = vpop.eup %6004  ;;  %v7257_v48 = vld [vmem:[#allocation13 + $0x68] ss:$16 sps:$4 sm:$0xff]  }
 0x7d1   :  { %6008 = vrcp.f32 %v2885_v49  ;;  %v2886_v10 = vadd.f32 1.0, %v6005_v53  ;;  %v7265_v49 = vld [vmem:[#allocation13 + $0x8c] ss:$16 sps:$4 sm:$0xff]   ;;  %v7269_v53 = vld [vmem:[#allocation13 + $0x88] ss:$16 sps:$4 sm:$0xff]  }
 0x7d3   :  { %6010 = vrcp.f32 %v2886_v10  ;;  %v7281_v10 = vld [vmem:[#allocation13 + $0xa8] ss:$16 sps:$4 sm:$0xff]  }
 0x7da   :  { %v6007_v62 = vpop.eup %6006 }
 0x7db   :  { %v2895_v33 = vmul.f32 %v6007_v62, %v6003_v50  ;;  %v6009_v9 = vpop.eup %6008  ;;  %v7267_v50 = vld [vmem:[#allocation13 + $0x80] ss:$16 sps:$4 sm:$0xff]   ;;  %v7275_v62 = vld [vmem:[#allocation13 + $0xa4] ss:$16 sps:$4 sm:$0xff]  }
 0x7dc   :  { %v2894_v15 = vmul.f32 %v6009_v9, %v7178_v2  ;;  %v5803_v2 = vld [vmem:[#allocation12 + $0x28] ss:$16 sps:$4 sm:$0xff]   ;;  %v7279_v9 = vld [vmem:[#allocation13 + $0xa0] ss:$16 sps:$4 sm:$0xff]  }
 0x7dd   :  { %v6011_v20 = vpop.eup %6010 }
 0x7de   :  { %v7204_v14 = vadd.f32 %v2895_v33, %v2894_v15  ;;  %v7277_v33 = vld [vmem:[#allocation13 + $0xac] ss:$16 sps:$4 sm:$0xff]   ;;  %v7287_v15 = vld [vmem:[#allocation13 + $0xc4] ss:$16 sps:$4 sm:$0xff]  }
 0x7e0   :  { %6012 = vtanh.f32 %v7204_v14 }
 0x7ea   :  { %v6013_v34 = vpop.eup %6012 }
 0x7eb   :  { %v2898_v11 = vmul.f32 %v6013_v34, %v6011_v20  ;;  %v7289_v20 = vld [vmem:[#allocation13 + $0xcc] ss:$16 sps:$4 sm:$0xff]   ;;  %v7291_v34 = vld [vmem:[#allocation13 + $0xc0] ss:$16 sps:$4 sm:$0xff]  }
 0x7ed   :  { %v2899_v8 = vpack.c.bf16 %v2898_v11, %v2898_v11  ;;  %v7293_v11 = vld [vmem:[#allocation13 + $0xc8] ss:$16 sps:$4 sm:$0xff]  }
 0x7ef   :  { %2901 = vst [vmem:[#allocation3 + $0x18] sm:$0xf] %v2899_v8  ;;  %3134 = vmatmul.mubr.bf16.vlgmr.msra.gmra.mrb[44].mxu0 %v2899_v8  ;;  %3175 = vmatmul.mubr.bf16.vlgmr.msra.gmra.mrb[44].mxu1 %v2899_v8  ;;  %v7303_v8 = vld [vmem:[#allocation13 + $0xe0] ss:$16 sps:$4 sm:$0xff]  }
 0x7f0   :  { %3442 = vmatpush1.bf16.msra.mxu0 %v5794_v44  ;;  %3515 = vmatpush1.bf16.msra.mxu1 %v5797_v22  ;;  %v7297_v44 = vld [vmem:[#allocation13 + $0xe4] ss:$16 sps:$4 sm:$0xff]   ;;  %v7299_v22 = vld [vmem:[#allocation13 + $0xec] ss:$16 sps:$4 sm:$0xff]  }
 0x7f1   :  { %3443 = vmatprep.subr.bf16.mxu0 %v5802_v16  ;;  %3516 = vmatprep.subr.bf16.mxu1 %v5805_v1  ;;  %v7305_v16 = vld [vmem:[#allocation13 + $0xe8] ss:$16 sps:$4 sm:$0xff]   ;;  %v7842_v1 = vld [vmem:[#allocation31_spill] sm:$0xff] }
 0x7f2   :  { %3473 = vmatprep.mubr.bf16.mxu0 %v7840_v19  ;;  %3546 = vmatprep.mubr.bf16.mxu1 %v7840_v19 }
 0x7f4   :  { %3444 = vmatpush1.bf16.msra.mxu0 %v5800_v3  ;;  %3517 = vmatpush1.bf16.msra.mxu1 %v5803_v2  ;;  %v2905_v3 = vunpack.c.l.bf16 %v7842_v1  ;;  %v7843_v2 = vld [vmem:[#allocation32_spill] sm:$0xff] }
 0x7f5   :  { %3445 = vmatprep.subr.bf16.mxu0 %v5808_v30  ;;  %3518 = vmatprep.subr.bf16.mxu1 %v5811_v6  ;;  %v2907_v30 = vunpack.c.l.bf16 %v7843_v2 }
 0x7f8   :  { %3446 = vmatpush1.bf16.msra.mxu0 %v5806_v4  ;;  %3519 = vmatpush1.bf16.msra.mxu1 %v5809_v5  ;;  %v2906_v5 = vunpack.c.h.bf16 %v7842_v1  ;;  %v7844_v1 = vld [vmem:[#allocation29_spill] sm:$0xff] }
 0x7f9   :  { %3447 = vmatprep.subr.bf16.mxu0 %v5814_v18  ;;  %3520 = vmatprep.subr.bf16.mxu1 %v5817_v25  ;;  %v2908_v18 = vunpack.c.h.bf16 %v7843_v2 }
 0x7fc   :  { %3448 = vmatpush1.bf16.msra.mxu0 %v5812_v26  ;;  %3521 = vmatpush1.bf16.msra.mxu1 %v5815_v27 }
 0x7fd   :  { %3449 = vmatprep.subr.bf16.mxu0 %v5820_v35  ;;  %3522 = vmatprep.subr.bf16.mxu1 %v5823_v29 }
 0x800   :  { %3450 = vmatpush1.bf16.msra.mxu0 %v5818_v31  ;;  %3523 = vmatpush1.bf16.msra.mxu1 %v5821_v28 }
 0x801   :  { %3451 = vmatprep.subr.bf16.mxu0 %v5826_v7  ;;  %3524 = vmatprep.subr.bf16.mxu1 %v5829_v13 }
 0x804   :  { %3452 = vmatpush1.bf16.msra.mxu0 %v5824_v17  ;;  %3525 = vmatpush1.bf16.msra.mxu1 %v5827_v36 }
 0x805   :  { %3453 = vmatprep.subr.bf16.mxu0 %v5832_v37  ;;  %3526 = vmatprep.subr.bf16.mxu1 %v5835_v38 }
 0x808   :  { %3454 = vmatpush1.bf16.msra.mxu0 %v5830_v39  ;;  %3527 = vmatpush1.bf16.msra.mxu1 %v5833_v21 }
 0x809   :  { %3455 = vmatprep.subr.bf16.mxu0 %v5838_v12  ;;  %3528 = vmatprep.subr.bf16.mxu1 %v5841_v23 }
 0x80c   :  { %3456 = vmatpush1.bf16.msra.mxu0 %v5836_v0  ;;  %3529 = vmatpush1.bf16.msra.mxu1 %v5839_v24  ;;  %v3216_v24 = vld [vmem:[#allocation15] sm:$0xf] }
 0x80d   :  { %3987 = vmatprep.subr.bf16.mxu0 %v7215_v55  ;;  %4028 = vmatprep.subr.bf16.mxu1 %v7217_v56 }
 0x80f   :  { %3474 = vmatmul.mubr.bf16.vlgmr.msra.gmra.mrb[48].mxu0 %v5842_v51  ;;  %3547 = vmatmul.mubr.bf16.vlgmr.msra.gmra.mrb[48].mxu1 %v5842_v51 }
 0x810   :  { %3483 = vmatprep.mubr.bf16.mxu0 %v7840_v19  ;;  %3556 = vmatprep.mubr.bf16.mxu1 %v7840_v19 }
 0x811   :  { %3988 = vmatpush1.bf16.msra.mxu0 %v7219_v57  ;;  %4029 = vmatpush1.bf16.msra.mxu1 %v7221_v58 }
 0x812   :  { %3989 = vmatprep.subr.bf16.mxu0 %v7227_v59  ;;  %4030 = vmatprep.subr.bf16.mxu1 %v7229_v60 }
 0x815   :  { %3990 = vmatpush1.bf16.msra.mxu0 %v7231_v61  ;;  %4031 = vmatpush1.bf16.msra.mxu1 %v7233_v40 }
 0x816   :  { %3991 = vmatprep.subr.bf16.mxu0 %v7239_v63  ;;  %4032 = vmatprep.subr.bf16.mxu1 %v7241_v41 }
 0x817   :  { %3484 = vmatmul.mubr.bf16.gmra.mrb[52].mxu0 %v5843_v52  ;;  %3557 = vmatmul.mubr.bf16.gmra.mrb[52].mxu1 %v5843_v52 }
 0x818   :  { %3493 = vmatprep.mubr.bf16.mxu0 %v7840_v19  ;;  %3566 = vmatprep.mubr.bf16.mxu1 %v7840_v19 }
 0x819   :  { %3992 = vmatpush1.bf16.msra.mxu0 %v7243_v42  ;;  %4033 = vmatpush1.bf16.msra.mxu1 %v7245_v43 }
 0x81a   :  { %3993 = vmatprep.subr.bf16.mxu0 %v7251_v45  ;;  %4034 = vmatprep.subr.bf16.mxu1 %v7253_v46 }
 0x81d   :  { %3994 = vmatpush1.bf16.msra.mxu0 %v7255_v47  ;;  %4035 = vmatpush1.bf16.msra.mxu1 %v7257_v48 }
 0x81e   :  { %3995 = vmatprep.subr.bf16.mxu0 %v7263_v32  ;;  %4036 = vmatprep.subr.bf16.mxu1 %v7265_v49 }
 0x81f   :  { %3494 = vmatmul.mubr.bf16.gmra.mrb[56].mxu0 %v5844_v54  ;;  %3567 = vmatmul.mubr.bf16.gmra.mrb[56].mxu1 %v5844_v54 }
 0x820   :  { %3503 = vmatprep.mubr.bf16.mxu0 %v7840_v19  ;;  %3576 = vmatprep.mubr.bf16.mxu1 %v7840_v19 }
 0x821   :  { %3996 = vmatpush1.bf16.msra.mxu0 %v7267_v50  ;;  %4037 = vmatpush1.bf16.msra.mxu1 %v7269_v53 }
 0x822   :  { %3997 = vmatprep.subr.bf16.mxu0 %v7275_v62  ;;  %4038 = vmatprep.subr.bf16.mxu1 %v7277_v33 }
 0x825   :  { %3998 = vmatpush1.bf16.msra.mxu0 %v7279_v9  ;;  %4039 = vmatpush1.bf16.msra.mxu1 %v7281_v10 }
 0x826   :  { %3999 = vmatprep.subr.bf16.mxu0 %v7287_v15  ;;  %4040 = vmatprep.subr.bf16.mxu1 %v7289_v20 }
 0x829   :  { %4000 = vmatpush1.bf16.msra.mxu0 %v7291_v34  ;;  %4041 = vmatpush1.bf16.msra.mxu1 %v7293_v11 }
 0x82a   :  { %4001 = vmatprep.subr.bf16.mxu0 %v7297_v44  ;;  %4042 = vmatprep.subr.bf16.mxu1 %v7299_v22 }
 0x82d   :  { %4002 = vmatpush1.bf16.msra.mxu0 %v7303_v8  ;;  %4043 = vmatpush1.bf16.msra.mxu1 %v7305_v16 }
 0x82e   :  { %4104 = vmatprep.subr.bf16.mxu0 %v7215_v55  ;;  %4145 = vmatprep.subr.bf16.mxu1 %v7217_v56 }
 0x8c2   :  { %v3135_v6 = vpop.f32.mrb[44].mxu0  ;;  %v3176_v4 = vpop.f32.mrb[44].mxu1 }
 0x8c3   :  { %v3183_v25 = vadd.f32 %v3135_v6, %v2905_v3  ;;  %v3185_v26 = vadd.f32 %v3176_v4, %v2907_v30  ;;  %v3137_v27 = vpop.f32.mrb[45].mxu0  ;;  %v3178_v35 = vpop.f32.mrb[45].mxu1  ;;  %v7845_v3 = vsub.s32 0, %v7844_v1  ;;  %v7846_v30 = vsub.s32 2, %v7844_v1 }
 0x8c4   :  { %v3184_v29 = vadd.f32 %v3137_v27, %v2906_v5  ;;  %v3186_v31 = vadd.f32 %v3178_v35, %v2908_v18  ;;  %v3139_v28 = vpop.f32.mrb[46].mxu0  ;;  %v3180_v7 = vpop.f32.mrb[46].mxu1  ;;  %v7847_v18 = vsub.s32 1, %v7844_v1 }
 0x8c5   :  { %v5418_v13 = vmul.f32 -1.442695, %v3183_v25  ;;  %v3140_v17 = vpop.f32.mrb[47].mxu0  ;;  %v3181_v36 = vpop.f32.mrb[47].mxu1  ;;  %v5420_v38 = vmul.f32 -1.442695, %v3185_v26  ;;  %v7319_v2 = vrot.slane %v3216_v24, %v7845_v3  ;;  %v7323_v6 = vrot.slane %v3216_v24, %v7846_v30 }
 0x8c6   :  { %v5419_v37 = vmul.f32 -1.442695, %v3184_v29  ;;  %v7327_v25 = vrot.slane %v3216_v24, %v7847_v18  ;;  %v7848_v26 = vsub.s32 3, %v7844_v1 }
 0x8c7   :  { %6014 = vpow2.f32 %v5418_v13 }
 0x8c8   :  { %6016 = vpow2.f32 %v5419_v37  ;;  %v7331_v27 = vrot.slane %v3216_v24, %v7848_v26 }
 0x8c9   :  { %6018 = vtanh.f32 %v3186_v31 }
 0x8ca   :  { %6020 = vpow2.f32 %v5420_v38 }
 0x8d1   :  { %v6015_v39 = vpop.eup %6014 }
 0x8d2   :  { %v3196_v21 = vadd.f32 1.0, %v6015_v39  ;;  %v6017_v12 = vpop.eup %6016 }
 0x8d3   :  { %v3197_v23 = vadd.f32 1.0, %v6017_v12  ;;  %v6019_v0 = vpop.eup %6018 }
 0x8d4   :  { %6022 = vrcp.f32 %v3196_v21  ;;  %v6021_v51 = vpop.eup %6020 }
 0x8d5   :  { %6024 = vrcp.f32 %v3197_v23  ;;  %v3198_v5 = vadd.f32 1.0, %v6021_v51 }
 0x8d7   :  { %6026 = vrcp.f32 %v3198_v5 }
 0x8de   :  { %v6023_v52 = vpop.eup %6022 }
 0x8df   :  { %v3207_v54 = vmul.f32 %v6023_v52, %v6019_v0  ;;  %v6025_v4 = vpop.eup %6024 }
 0x8e0   :  { %v3206_v35 = vmul.f32 %v6025_v4, %v7204_v14 }
 0x8e2   :  { %v3475_v29 = vpop.f32.mrb[48].mxu0  ;;  %v3548_v31 = vpop.f32.mrb[48].mxu1  ;;  %v3208_v28 = vadd.f32 %v3207_v54, %v3206_v35 }
 0x8e3   :  { %v3608_v7 = vadd.f32 %v7319_v2, %v3475_v29  ;;  %v3610_v13 = vadd.f32 %v7323_v6, %v3548_v31  ;;  %v3477_v17 = vpop.f32.mrb[49].mxu0  ;;  %v3550_v36 = vpop.f32.mrb[49].mxu1 }
 0x8e4   :  { %v3609_v37 = vadd.f32 %v7327_v25, %v3477_v17  ;;  %v3611_v38 = vadd.f32 %v7331_v27, %v3550_v36  ;;  %v3479_v39 = vpop.f32.mrb[50].mxu0  ;;  %v3552_v21 = vpop.f32.mrb[50].mxu1  ;;  %6028 = vtanh.f32 %v3208_v28  ;;  %3215 = vst [vmem:[#allocation21] sm:$0xff] %v3208_v28 }
 0x8e5   :  { %v3612_v14 = vadd.f32 %v7319_v2, %v3479_v39  ;;  %v3614_v12 = vadd.f32 %v7323_v6, %v3552_v21  ;;  %v3481_v23 = vpop.f32.mrb[51].mxu0  ;;  %v3554_v0 = vpop.f32.mrb[51].mxu1 }
 0x8e6   :  { %v7340_v24 = vpack.c.bf16 %v3609_v37, %v3608_v7  ;;  %v7342_v51 = vpack.c.bf16 %v3611_v38, %v3610_v13  ;;  %v3613_v52 = vadd.f32 %v7327_v25, %v3481_v23  ;;  %v3615_v54 = vadd.f32 %v7331_v27, %v3554_v0  ;;  %v6027_v38 = vpop.eup %6026 }
 0x8e8   :  { %v7346_v1 = vpack.c.bf16 %v3613_v52, %v3612_v14  ;;  %v7348_v3 = vpack.c.bf16 %v3615_v54, %v3614_v12 }
 0x8ea   :  { %v3485_v30 = vpop.f32.mrb[52].mxu0  ;;  %v3558_v4 = vpop.f32.mrb[52].mxu1 }
 0x8eb   :  { %v3616_v5 = vadd.f32 %v7319_v2, %v3485_v30  ;;  %v3618_v18 = vadd.f32 %v7323_v6, %v3558_v4  ;;  %v3487_v26 = vpop.f32.mrb[53].mxu0  ;;  %v3560_v35 = vpop.f32.mrb[53].mxu1 }
 0x8ec   :  { %v3617_v29 = vadd.f32 %v7327_v25, %v3487_v26  ;;  %v3619_v31 = vadd.f32 %v7331_v27, %v3560_v35  ;;  %v3489_v28 = vpop.f32.mrb[54].mxu0  ;;  %v3562_v7 = vpop.f32.mrb[54].mxu1 }
 0x8ed   :  { %v3620_v13 = vadd.f32 %v7319_v2, %v3489_v28  ;;  %v3622_v17 = vadd.f32 %v7323_v6, %v3562_v7  ;;  %v3491_v36 = vpop.f32.mrb[55].mxu0  ;;  %v3564_v37 = vpop.f32.mrb[55].mxu1 }
 0x8ee   :  { %v7356_v39 = vpack.c.bf16 %v3617_v29, %v3616_v5  ;;  %v7358_v21 = vpack.c.bf16 %v3619_v31, %v3618_v18  ;;  %v3621_v14 = vadd.f32 %v7327_v25, %v3491_v36  ;;  %v3623_v12 = vadd.f32 %v7331_v27, %v3564_v37  ;;  %v6029_v23 = vpop.eup %6028 }
 0x8ef   :  { %v3210_v0 = vmul.f32 %v6029_v23, %v6027_v38 }
 0x8f0   :  { %v7362_v52 = vpack.c.bf16 %v3621_v14, %v3620_v13  ;;  %v7364_v54 = vpack.c.bf16 %v3623_v12, %v3622_v17 }
 0x8f1   :  { %v3211_v30 = vpack.c.bf16 %v3210_v0, %v3210_v0  ;;  %3214 = vst [vmem:[#allocation19] sm:$0xff] %v3210_v0 }
 0x8f2   :  { %v3495_v4 = vpop.f32.mrb[56].mxu0  ;;  %v3568_v26 = vpop.f32.mrb[56].mxu1 }
 0x8f3   :  { %v3624_v35 = vadd.f32 %v7319_v2, %v3495_v4  ;;  %v3626_v5 = vadd.f32 %v7323_v6, %v3568_v26  ;;  %v3497_v18 = vpop.f32.mrb[57].mxu0  ;;  %v3570_v29 = vpop.f32.mrb[57].mxu1  ;;  %3213 = vst [vmem:[#allocation3 + $0x1c] sm:$0xf] %v3211_v30 }
 0x8f4   :  { %v3625_v31 = vadd.f32 %v7327_v25, %v3497_v18  ;;  %v3627_v28 = vadd.f32 %v7331_v27, %v3570_v29  ;;  %v3499_v7 = vpop.f32.mrb[58].mxu0  ;;  %v3572_v13 = vpop.f32.mrb[58].mxu1 }
 0x8f5   :  { %v3628_v17 = vadd.f32 %v7319_v2, %v3499_v7  ;;  %v3630_v36 = vadd.f32 %v7323_v6, %v3572_v13  ;;  %v3501_v37 = vpop.f32.mrb[59].mxu0  ;;  %v3574_v38 = vpop.f32.mrb[59].mxu1 }
 0x8f6   :  { %v7372_v14 = vpack.c.bf16 %v3625_v31, %v3624_v35  ;;  %v7374_v12 = vpack.c.bf16 %v3627_v28, %v3626_v5  ;;  %v3629_v23 = vadd.f32 %v7327_v25, %v3501_v37  ;;  %v3631_v0 = vadd.f32 %v7331_v27, %v3574_v38  ;;  %v5473_v35 = vld [vmem:[%s7814_s9 + $0x8] sm:$0xff] }
 0x8f7   :  { %v3786_v5 = vpack.c.bf16 %v5473_v35, %v5473_v35 }
 0x8f8   :  { %v7378_v30 = vpack.c.bf16 %v3629_v23, %v3628_v17  ;;  %v7380_v4 = vpack.c.bf16 %v3631_v0, %v3630_v36 }
 0x8fa   :  { %7849 = vst [vmem:[#allocation30_spill] sm:$0xff] %v7378_v30  ;;  %7850 = vst [vmem:[#allocation31_spill] sm:$0xff] %v7380_v4  ;;  %v5881_v26 = vld [vmem:[#allocation3 + $0x18] sm:$0xff]  }
 0x8fb   :  { %3504 = vmatmul.mubr.bf16.gmra.mrb[60].mxu0 %v5881_v26  ;;  %3577 = vmatmul.mubr.bf16.gmra.mrb[60].mxu1 %v5881_v26 }
 0x8fc   :  { %4019 = vmatprep.mubr.bf16.mxu0 %v7840_v19  ;;  %4060 = vmatprep.mubr.bf16.mxu1 %v7840_v19 }
 0x903   :  { %4020 = vmatmul.mubr.bf16.vlgmr.msra.gmra.mrb[64].mxu0 %v3786_v5  ;;  %4061 = vmatmul.mubr.bf16.vlgmr.msra.gmra.mrb[64].mxu1 %v3786_v5 }
 0x904   :  { %4105 = vmatpush1.bf16.msra.mxu0 %v7219_v57  ;;  %4146 = vmatpush1.bf16.msra.mxu1 %v7221_v58 }
 0x905   :  { %4106 = vmatprep.subr.bf16.mxu0 %v7227_v59  ;;  %4147 = vmatprep.subr.bf16.mxu1 %v7229_v60 }
 0x906   :  { %4136 = vmatprep.mubr.bf16.mxu0 %v7840_v19  ;;  %4177 = vmatprep.mubr.bf16.mxu1 %v7840_v19 }
 0x908   :  { %4107 = vmatpush1.bf16.msra.mxu0 %v7231_v61  ;;  %4148 = vmatpush1.bf16.msra.mxu1 %v7233_v40 }
 0x909   :  { %4108 = vmatprep.subr.bf16.mxu0 %v7239_v63  ;;  %4149 = vmatprep.subr.bf16.mxu1 %v7241_v41 }
 0x90c   :  { %4109 = vmatpush1.bf16.msra.mxu0 %v7243_v42  ;;  %4150 = vmatpush1.bf16.msra.mxu1 %v7245_v43 }
 0x90d   :  { %4110 = vmatprep.subr.bf16.mxu0 %v7251_v45  ;;  %4151 = vmatprep.subr.bf16.mxu1 %v7253_v46 }
 0x910   :  { %4111 = vmatpush1.bf16.msra.mxu0 %v7255_v47  ;;  %4152 = vmatpush1.bf16.msra.mxu1 %v7257_v48 }
 0x911   :  { %4112 = vmatprep.subr.bf16.mxu0 %v7263_v32  ;;  %4153 = vmatprep.subr.bf16.mxu1 %v7265_v49 }
 0x914   :  { %4113 = vmatpush1.bf16.msra.mxu0 %v7267_v50  ;;  %4154 = vmatpush1.bf16.msra.mxu1 %v7269_v53 }
 0x915   :  { %4114 = vmatprep.subr.bf16.mxu0 %v7275_v62  ;;  %4155 = vmatprep.subr.bf16.mxu1 %v7277_v33 }
 0x918   :  { %4115 = vmatpush1.bf16.msra.mxu0 %v7279_v9  ;;  %4156 = vmatpush1.bf16.msra.mxu1 %v7281_v10 }
 0x919   :  { %4116 = vmatprep.subr.bf16.mxu0 %v7287_v15  ;;  %4157 = vmatprep.subr.bf16.mxu1 %v7289_v20 }
 0x91c   :  { %4117 = vmatpush1.bf16.msra.mxu0 %v7291_v34  ;;  %4158 = vmatpush1.bf16.msra.mxu1 %v7293_v11 }
 0x91d   :  { %4118 = vmatprep.subr.bf16.mxu0 %v7297_v44  ;;  %4159 = vmatprep.subr.bf16.mxu1 %v7299_v22 }
 0x920   :  { %4119 = vmatpush1.bf16.msra.mxu0 %v7303_v8  ;;  %4160 = vmatpush1.bf16.msra.mxu1 %v7305_v16 }
 0x921   :  { %4221 = vmatprep.subr.bf16.mxu0 %v7215_v55  ;;  %4262 = vmatprep.subr.bf16.mxu1 %v7217_v56 }
 0x9ce   :  { %v3505_v18 = vpop.f32.mrb[60].mxu0  ;;  %v3578_v29 = vpop.f32.mrb[60].mxu1 }
 0x9cf   :  { %v3632_v31 = vadd.f32 %v7319_v2, %v3505_v18  ;;  %v3634_v28 = vadd.f32 %v7323_v6, %v3578_v29  ;;  %v3507_v7 = vpop.f32.mrb[61].mxu0  ;;  %v3580_v13 = vpop.f32.mrb[61].mxu1 }
 0x9d0   :  { %v3633_v17 = vadd.f32 %v7327_v25, %v3507_v7  ;;  %v3635_v36 = vadd.f32 %v7331_v27, %v3580_v13  ;;  %v3509_v37 = vpop.f32.mrb[62].mxu0  ;;  %v3582_v38 = vpop.f32.mrb[62].mxu1  ;;  %v3791_v13 = vunpack.c.l.bf16 %v7340_v24 }
 0x9d1   :  { %v3636_v23 = vadd.f32 %v7319_v2, %v3509_v37  ;;  %v3638_v0 = vadd.f32 %v7323_v6, %v3582_v38  ;;  %v3511_v26 = vpop.f32.mrb[63].mxu0  ;;  %v3584_v35 = vpop.f32.mrb[63].mxu1  ;;  %v3793_v2 = vunpack.c.l.bf16 %v7342_v51  ;;  %v3792_v38 = vunpack.c.h.bf16 %v7340_v24 }
 0x9d2   :  { %v7427_v5 = vpack.c.bf16 %v3633_v17, %v3632_v31  ;;  %v7429_v4 = vpack.c.bf16 %v3635_v36, %v3634_v28  ;;  %v3637_v18 = vadd.f32 %v7327_v25, %v3511_v26  ;;  %v3639_v29 = vadd.f32 %v7331_v27, %v3584_v35 }
 0x9d3   :  { %v3794_v31 = vunpack.c.h.bf16 %v7342_v51 }
 0x9d4   :  { %7851 = vst [vmem:[#allocation32_spill] sm:$0xff] %v7427_v5  ;;  %7852 = vst [vmem:[#allocation29_spill] sm:$0xff] %v7429_v4  ;;  %v7433_v30 = vpack.c.bf16 %v3637_v18, %v3636_v23  ;;  %v7435_v7 = vpack.c.bf16 %v3639_v29, %v3638_v0 }
 0x9d6   :  { %7853 = vst [vmem:[#allocation33_spill] sm:$0xff] %v7433_v30  ;;  %7854 = vst [vmem:[#allocation34_spill] sm:$0xff] %v7435_v7  ;;  %v4021_v37 = vpop.f32.mrb[64].mxu0  ;;  %v4062_v6 = vpop.f32.mrb[64].mxu1 }
 0x9d7   :  { %v4069_v28 = vadd.f32 %v4021_v37, %v3791_v13  ;;  %v4071_v17 = vadd.f32 %v4062_v6, %v3793_v2  ;;  %v4023_v36 = vpop.f32.mrb[65].mxu0  ;;  %v4064_v25 = vpop.f32.mrb[65].mxu1  ;;  %v5474_v6 = vld [vmem:[%s7815_s10 + $0x8] sm:$0xff]  ;;  %s6465_s10 = smov [#allocation19]  }
 0x9d8   :  { %v4070_v26 = vadd.f32 %v4023_v36, %v3792_v38  ;;  %v4072_v27 = vadd.f32 %v4064_v25, %v3794_v31  ;;  %v4025_v23 = vpop.f32.mrb[66].mxu0  ;;  %v4066_v35 = vpop.f32.mrb[66].mxu1  ;;  %v4100_v25 = vunpack.c.l.bf16 %v7346_v1  ;;  %s5054_s22 = sshll.u32 %s6465_s10, 4  ;;  %s5055_s22 = int_to_ptr.vmem [resolvable:$true] %s5054_s22 }
 0x9d9   :  { %v5507_v0 = vmul.f32 -1.442695, %v4069_v28  ;;  %v4026_v18 = vpop.f32.mrb[67].mxu0  ;;  %v4067_v29 = vpop.f32.mrb[67].mxu1  ;;  %v5509_v30 = vmul.f32 -1.442695, %v4071_v17  ;;  %v4101_v35 = vunpack.c.h.bf16 %v7346_v1  ;;  %p6375_p9 = scmp.lt.s32.totalorder %s5055_s22, %s5055_s22 }
 0x9da   :  { %v5508_v7 = vmul.f32 -1.442695, %v4070_v26  ;;  %v4102_v26 = vunpack.c.l.bf16 %v7348_v3  ;;  %s6370_s24 = scalar_lea.vmem %s5055_s22, 256 }
 0x9db   :  { %6030 = vpow2.f32 %v5507_v0  ;;  %v4103_v0 = vunpack.c.h.bf16 %v7348_v3  ;;  %p6371_p8 = scmp.ne.s32.totalorder %s5055_s22, %s6370_s24  ;;  %p6376_p10 = scmp.lt.s32.totalorder %s6370_s24, %s6370_s24 }
 0x9dc   :  { %6032 = vpow2.f32 %v5508_v7 }
 0x9dd   :  { %6034 = vtanh.f32 %v4072_v27  ;;  %p6377_p11 = por %p6376_p10, %p6375_p9 }
 0x9de   :  { %6036 = vpow2.f32 %v5509_v30 }
 0x9df   :  { %p6378_p12 = pnand %p6377_p11, %p6371_p8 }
 0x9e5   :  { %v6031_v4 = vpop.eup %6030 }
 0x9e6   :  { %v4082_v5 = vadd.f32 1.0, %v6031_v4  ;;  %v6033_v24 = vpop.eup %6032 }
 0x9e7   :  { %v4083_v51 = vadd.f32 1.0, %v6033_v24  ;;  %v6035_v13 = vpop.eup %6034 }
 0x9e8   :  { %6038 = vrcp.f32 %v4082_v5  ;;  %v6037_v2 = vpop.eup %6036 }
 0x9e9   :  { %6040 = vrcp.f32 %v4083_v51  ;;  %v4084_v28 = vadd.f32 1.0, %v6037_v2 }
 0x9eb   :  { %6042 = vrcp.f32 %v4084_v28 }
 0x9f2   :  { %v6039_v37 = vpop.eup %6038 }
 0x9f3   :  { %v4093_v38 = vmul.f32 %v6039_v37, %v6035_v13  ;;  %v6041_v31 = vpop.eup %6040 }
 0x9f4   :  { %v4092_v7 = vmul.f32 %v6041_v31, %v5474_v6 }
 0x9f5   :  { %v6043_v30 = vpop.eup %6042 }
 0x9f6   :  { %v7444_v17 = vadd.f32 %v4093_v38, %v4092_v7 }
 0x9f8   :  { %6044 = vtanh.f32 %v7444_v17 }
 0xa02   :  { %v6045_v4 = vpop.eup %6044 }
 0xa03   :  { %v4096_v5 = vmul.f32 %v6045_v4, %v6043_v30 }
 0xa05   :  { %v4097_v36 = vpack.c.bf16 %v4096_v5, %v4096_v5 }
 0xa07   :  { %4137 = vmatmul.mubr.bf16.vlgmr.msra.gmra.mrb[68].mxu0 %v4097_v36  ;;  %4178 = vmatmul.mubr.bf16.vlgmr.msra.gmra.mrb[68].mxu1 %v4097_v36 }
 0xa08   :  { %4222 = vmatpush1.bf16.msra.mxu0 %v7219_v57  ;;  %4263 = vmatpush1.bf16.msra.mxu1 %v7221_v58 }
 0xa09   :  { %4223 = vmatprep.subr.bf16.mxu0 %v7227_v59  ;;  %4264 = vmatprep.subr.bf16.mxu1 %v7229_v60 }
 0xa0a   :  { %4253 = vmatprep.mubr.bf16.mxu0 %v7840_v19  ;;  %4294 = vmatprep.mubr.bf16.mxu1 %v7840_v19 }
 0xa0c   :  { %4224 = vmatpush1.bf16.msra.mxu0 %v7231_v61  ;;  %4265 = vmatpush1.bf16.msra.mxu1 %v7233_v40 }
 0xa0d   :  { %4225 = vmatprep.subr.bf16.mxu0 %v7239_v63  ;;  %4266 = vmatprep.subr.bf16.mxu1 %v7241_v41 }
 0xa10   :  { %4226 = vmatpush1.bf16.msra.mxu0 %v7243_v42  ;;  %4267 = vmatpush1.bf16.msra.mxu1 %v7245_v43 }
 0xa11   :  { %4227 = vmatprep.subr.bf16.mxu0 %v7251_v45  ;;  %4268 = vmatprep.subr.bf16.mxu1 %v7253_v46 }
 0xa14   :  { %4228 = vmatpush1.bf16.msra.mxu0 %v7255_v47  ;;  %4269 = vmatpush1.bf16.msra.mxu1 %v7257_v48 }
 0xa15   :  { %4229 = vmatprep.subr.bf16.mxu0 %v7263_v32  ;;  %4270 = vmatprep.subr.bf16.mxu1 %v7265_v49 }
 0xa18   :  { %4230 = vmatpush1.bf16.msra.mxu0 %v7267_v50  ;;  %4271 = vmatpush1.bf16.msra.mxu1 %v7269_v53 }
 0xa19   :  { %4231 = vmatprep.subr.bf16.mxu0 %v7275_v62  ;;  %4272 = vmatprep.subr.bf16.mxu1 %v7277_v33 }
 0xa1c   :  { %4232 = vmatpush1.bf16.msra.mxu0 %v7279_v9  ;;  %4273 = vmatpush1.bf16.msra.mxu1 %v7281_v10 }
 0xa1d   :  { %4233 = vmatprep.subr.bf16.mxu0 %v7287_v15  ;;  %4274 = vmatprep.subr.bf16.mxu1 %v7289_v20 }
 0xa20   :  { %4234 = vmatpush1.bf16.msra.mxu0 %v7291_v34  ;;  %4275 = vmatpush1.bf16.msra.mxu1 %v7293_v11 }
 0xa21   :  { %4235 = vmatprep.subr.bf16.mxu0 %v7297_v44  ;;  %4276 = vmatprep.subr.bf16.mxu1 %v7299_v22 }
 0xa24   :  { %4236 = vmatpush1.bf16.msra.mxu0 %v7303_v8  ;;  %4277 = vmatpush1.bf16.msra.mxu1 %v7305_v16 }
 0xa25   :  { %4338 = vmatprep.subr.bf16.mxu0 %v7215_v55  ;;  %4379 = vmatprep.subr.bf16.mxu1 %v7217_v56 }
 0xada   :  { %v4138_v27 = vpop.f32.mrb[68].mxu0  ;;  %v4179_v23 = vpop.f32.mrb[68].mxu1 }
 0xadb   :  { %v4186_v18 = vadd.f32 %v4138_v27, %v4100_v25  ;;  %v4188_v29 = vadd.f32 %v4179_v23, %v4102_v26  ;;  %v4140_v24 = vpop.f32.mrb[69].mxu0  ;;  %v4181_v51 = vpop.f32.mrb[69].mxu1 }
 0xadc   :  { %v4187_v13 = vadd.f32 %v4140_v24, %v4101_v35  ;;  %v4189_v2 = vadd.f32 %v4181_v51, %v4103_v0  ;;  %v4142_v37 = vpop.f32.mrb[70].mxu0  ;;  %v4183_v6 = vpop.f32.mrb[70].mxu1 }
 0xadd   :  { %v5510_v38 = vmul.f32 -1.442695, %v4186_v18  ;;  %v4143_v31 = vpop.f32.mrb[71].mxu0  ;;  %v4184_v28 = vpop.f32.mrb[71].mxu1  ;;  %v5512_v30 = vmul.f32 -1.442695, %v4188_v29 }
 0xade   :  { %v5511_v7 = vmul.f32 -1.442695, %v4187_v13  ;;  %v4220_v31 = vunpack.c.h.bf16 %v7358_v21 }
 0xadf   :  { %6046 = vpow2.f32 %v5510_v38  ;;  %v4218_v38 = vunpack.c.h.bf16 %v7356_v39 }
 0xae0   :  { %6048 = vpow2.f32 %v5511_v7 }
 0xae1   :  { %6050 = vtanh.f32 %v4189_v2  ;;  %v4219_v2 = vunpack.c.l.bf16 %v7358_v21 }
 0xae2   :  { %6052 = vpow2.f32 %v5512_v30 }
 0xae9   :  { %v6047_v4 = vpop.eup %6046 }
 0xaea   :  { %v4199_v5 = vadd.f32 1.0, %v6047_v4  ;;  %v6049_v1 = vpop.eup %6048 }
 0xaeb   :  { %v4200_v3 = vadd.f32 1.0, %v6049_v1  ;;  %v6051_v36 = vpop.eup %6050 }
 0xaec   :  { %6054 = vrcp.f32 %v4199_v5  ;;  %v6053_v25 = vpop.eup %6052 }
 0xaed   :  { %6056 = vrcp.f32 %v4200_v3  ;;  %v4201_v35 = vadd.f32 1.0, %v6053_v25 }
 0xaef   :  { %6058 = vrcp.f32 %v4201_v35 }
 0xaf6   :  { %v6055_v26 = vpop.eup %6054 }
 0xaf7   :  { %v4210_v27 = vmul.f32 %v6055_v26, %v6051_v36  ;;  %v6057_v23 = vpop.eup %6056 }
 0xaf8   :  { %v4209_v0 = vmul.f32 %v6057_v23, %v7444_v17  ;;  %v4217_v17 = vunpack.c.l.bf16 %v7356_v39 }
 0xaf9   :  { %v6059_v29 = vpop.eup %6058 }
 0xafa   :  { %v7486_v18 = vadd.f32 %v4210_v27, %v4209_v0 }
 0xafc   :  { %6060 = vtanh.f32 %v7486_v18 }
 0xb06   :  { %v6061_v24 = vpop.eup %6060 }
 0xb07   :  { %v4213_v51 = vmul.f32 %v6061_v24, %v6059_v29 }
 0xb09   :  { %v4214_v13 = vpack.c.bf16 %v4213_v51, %v4213_v51 }
 0xb0b   :  { %4254 = vmatmul.mubr.bf16.vlgmr.msra.gmra.mrb[72].mxu0 %v4214_v13  ;;  %4295 = vmatmul.mubr.bf16.vlgmr.msra.gmra.mrb[72].mxu1 %v4214_v13 }
 0xb0c   :  { %4339 = vmatpush1.bf16.msra.mxu0 %v7219_v57  ;;  %4380 = vmatpush1.bf16.msra.mxu1 %v7221_v58 }
 0xb0d   :  { %4340 = vmatprep.subr.bf16.mxu0 %v7227_v59  ;;  %4381 = vmatprep.subr.bf16.mxu1 %v7229_v60 }
 0xb0e   :  { %4370 = vmatprep.mubr.bf16.mxu0 %v7840_v19  ;;  %4411 = vmatprep.mubr.bf16.mxu1 %v7840_v19 }
 0xb10   :  { %4341 = vmatpush1.bf16.msra.mxu0 %v7231_v61  ;;  %4382 = vmatpush1.bf16.msra.mxu1 %v7233_v40 }
 0xb11   :  { %4342 = vmatprep.subr.bf16.mxu0 %v7239_v63  ;;  %4383 = vmatprep.subr.bf16.mxu1 %v7241_v41 }
 0xb14   :  { %4343 = vmatpush1.bf16.msra.mxu0 %v7243_v42  ;;  %4384 = vmatpush1.bf16.msra.mxu1 %v7245_v43 }
 0xb15   :  { %4344 = vmatprep.subr.bf16.mxu0 %v7251_v45  ;;  %4385 = vmatprep.subr.bf16.mxu1 %v7253_v46 }
 0xb18   :  { %4345 = vmatpush1.bf16.msra.mxu0 %v7255_v47  ;;  %4386 = vmatpush1.bf16.msra.mxu1 %v7257_v48 }
 0xb19   :  { %4346 = vmatprep.subr.bf16.mxu0 %v7263_v32  ;;  %4387 = vmatprep.subr.bf16.mxu1 %v7265_v49 }
 0xb1c   :  { %4347 = vmatpush1.bf16.msra.mxu0 %v7267_v50  ;;  %4388 = vmatpush1.bf16.msra.mxu1 %v7269_v53 }
 0xb1d   :  { %4348 = vmatprep.subr.bf16.mxu0 %v7275_v62  ;;  %4389 = vmatprep.subr.bf16.mxu1 %v7277_v33 }
 0xb20   :  { %4349 = vmatpush1.bf16.msra.mxu0 %v7279_v9  ;;  %4390 = vmatpush1.bf16.msra.mxu1 %v7281_v10 }
 0xb21   :  { %4350 = vmatprep.subr.bf16.mxu0 %v7287_v15  ;;  %4391 = vmatprep.subr.bf16.mxu1 %v7289_v20 }
 0xb24   :  { %4351 = vmatpush1.bf16.msra.mxu0 %v7291_v34  ;;  %4392 = vmatpush1.bf16.msra.mxu1 %v7293_v11 }
 0xb25   :  { %4352 = vmatprep.subr.bf16.mxu0 %v7297_v44  ;;  %4393 = vmatprep.subr.bf16.mxu1 %v7299_v22 }
 0xb28   :  { %4353 = vmatpush1.bf16.msra.mxu0 %v7303_v8  ;;  %4394 = vmatpush1.bf16.msra.mxu1 %v7305_v16 }
 0xb29   :  { %4455 = vmatprep.subr.bf16.mxu0 %v7215_v55  ;;  %4496 = vmatprep.subr.bf16.mxu1 %v7217_v56 }
 0xbde   :  { %v4255_v37 = vpop.f32.mrb[72].mxu0  ;;  %v4296_v6 = vpop.f32.mrb[72].mxu1 }
 0xbdf   :  { %v4303_v28 = vadd.f32 %v4255_v37, %v4217_v17  ;;  %v4305_v7 = vadd.f32 %v4296_v6, %v4219_v2  ;;  %v4257_v30 = vpop.f32.mrb[73].mxu0  ;;  %v4298_v4 = vpop.f32.mrb[73].mxu1 }
 0xbe0   :  { %v4304_v5 = vadd.f32 %v4257_v30, %v4218_v38  ;;  %v4306_v1 = vadd.f32 %v4298_v4, %v4220_v31  ;;  %v4259_v3 = vpop.f32.mrb[74].mxu0  ;;  %v4300_v36 = vpop.f32.mrb[74].mxu1 }
 0xbe1   :  { %v5513_v25 = vmul.f32 -1.442695, %v4303_v28  ;;  %v4260_v26 = vpop.f32.mrb[75].mxu0  ;;  %v4301_v27 = vpop.f32.mrb[75].mxu1  ;;  %v5515_v35 = vmul.f32 -1.442695, %v4305_v7 }
 0xbe2   :  { %v5514_v23 = vmul.f32 -1.442695, %v4304_v5 }
 0xbe3   :  { %6062 = vpow2.f32 %v5513_v25 }
 0xbe4   :  { %6064 = vpow2.f32 %v5514_v23 }
 0xbe5   :  { %6066 = vtanh.f32 %v4306_v1 }
 0xbe6   :  { %6068 = vpow2.f32 %v5515_v35 }
 0xbed   :  { %v6063_v0 = vpop.eup %6062 }
 0xbee   :  { %v4316_v29 = vadd.f32 1.0, %v6063_v0  ;;  %v6065_v39 = vpop.eup %6064 }
 0xbef   :  { %v4317_v21 = vadd.f32 1.0, %v6065_v39  ;;  %v6067_v24 = vpop.eup %6066 }
 0xbf0   :  { %6070 = vrcp.f32 %v4316_v29  ;;  %v6069_v51 = vpop.eup %6068 }
 0xbf1   :  { %6072 = vrcp.f32 %v4317_v21  ;;  %v4318_v37 = vadd.f32 1.0, %v6069_v51 }
 0xbf3   :  { %6074 = vrcp.f32 %v4318_v37  ;;  %v7582_v37 = vld [vmem:[#allocation13 + $0x2c] ss:$16 sps:$4 sm:$0xff]  }
 0xbfa   :  { %v6071_v13 = vpop.eup %6070 }
 0xbfb   :  { %v4327_v17 = vmul.f32 %v6071_v13, %v6067_v24  ;;  %v6073_v2 = vpop.eup %6072  ;;  %v7573_v13 = vld [vmem:[#allocation13] ss:$16 sps:$4 sm:$0xff]  }
 0xbfc   :  { %v4326_v6 = vmul.f32 %v6073_v2, %v7486_v18  ;;  %v7579_v2 = vld [vmem:[#allocation13 + $0x24] ss:$16 sps:$4 sm:$0xff]  }
 0xbfd   :  { %v6075_v31 = vpop.eup %6074 }
 0xbfe   :  { %v7528_v38 = vadd.f32 %v4327_v17, %v4326_v6  ;;  %v7576_v17 = vld [vmem:[#allocation13 + $0x8] ss:$16 sps:$4 sm:$0xff]   ;;  %v7587_v6 = vld [vmem:[#allocation13 + $0x20] ss:$16 sps:$4 sm:$0xff]  }
 0xc00   :  { %6076 = vtanh.f32 %v7528_v38 }
 0xc0a   :  { %v6077_v28 = vpop.eup %6076 }
 0xc0b   :  { %v4330_v7 = vmul.f32 %v6077_v28, %v6075_v31  ;;  %v7593_v31 = vld [vmem:[#allocation13 + $0x44] ss:$16 sps:$4 sm:$0xff]   ;;  %v7596_v28 = vld [vmem:[#allocation13 + $0x4c] ss:$16 sps:$4 sm:$0xff]  }
 0xc0d   :  { %v4331_v30 = vpack.c.bf16 %v4330_v7, %v4330_v7  ;;  %v7599_v7 = vld [vmem:[#allocation13 + $0x40] ss:$16 sps:$4 sm:$0xff]  }
 0xc0f   :  { %4371 = vmatmul.mubr.bf16.vlgmr.msra.gmra.mrb[76].mxu0 %v4331_v30  ;;  %4412 = vmatmul.mubr.bf16.vlgmr.msra.gmra.mrb[76].mxu1 %v4331_v30  ;;  %v7602_v30 = vld [vmem:[#allocation13 + $0x48] ss:$16 sps:$4 sm:$0xff]  }
 0xc10   :  { %4456 = vmatpush1.bf16.msra.mxu0 %v7219_v57  ;;  %4497 = vmatpush1.bf16.msra.mxu1 %v7221_v58  ;;  %v4334_v57 = vunpack.c.l.bf16 %v7362_v52  ;;  %v4336_v58 = vunpack.c.l.bf16 %v7364_v54 }
 0xc11   :  { %4457 = vmatprep.subr.bf16.mxu0 %v7227_v59  ;;  %4498 = vmatprep.subr.bf16.mxu1 %v7229_v60 }
 0xc12   :  { %4487 = vmatprep.mubr.bf16.mxu0 %v7840_v19  ;;  %4528 = vmatprep.mubr.bf16.mxu1 %v7840_v19 }
 0xc14   :  { %4458 = vmatpush1.bf16.msra.mxu0 %v7231_v61  ;;  %4499 = vmatpush1.bf16.msra.mxu1 %v7233_v40  ;;  %v4335_v61 = vunpack.c.h.bf16 %v7362_v52  ;;  %v4337_v40 = vunpack.c.h.bf16 %v7364_v54 }
 0xc15   :  { %4459 = vmatprep.subr.bf16.mxu0 %v7239_v63  ;;  %4500 = vmatprep.subr.bf16.mxu1 %v7241_v41 }
 0xc18   :  { %4460 = vmatpush1.bf16.msra.mxu0 %v7243_v42  ;;  %4501 = vmatpush1.bf16.msra.mxu1 %v7245_v43 }
 0xc19   :  { %4461 = vmatprep.subr.bf16.mxu0 %v7251_v45  ;;  %4502 = vmatprep.subr.bf16.mxu1 %v7253_v46 }
 0xc1c   :  { %4462 = vmatpush1.bf16.msra.mxu0 %v7255_v47  ;;  %4503 = vmatpush1.bf16.msra.mxu1 %v7257_v48 }
 0xc1d   :  { %4463 = vmatprep.subr.bf16.mxu0 %v7263_v32  ;;  %4504 = vmatprep.subr.bf16.mxu1 %v7265_v49 }
 0xc20   :  { %4464 = vmatpush1.bf16.msra.mxu0 %v7267_v50  ;;  %4505 = vmatpush1.bf16.msra.mxu1 %v7269_v53 }
 0xc21   :  { %4465 = vmatprep.subr.bf16.mxu0 %v7275_v62  ;;  %4506 = vmatprep.subr.bf16.mxu1 %v7277_v33 }
 0xc24   :  { %4466 = vmatpush1.bf16.msra.mxu0 %v7279_v9  ;;  %4507 = vmatpush1.bf16.msra.mxu1 %v7281_v10 }
 0xc25   :  { %4467 = vmatprep.subr.bf16.mxu0 %v7287_v15  ;;  %4508 = vmatprep.subr.bf16.mxu1 %v7289_v20 }
 0xc28   :  { %4468 = vmatpush1.bf16.msra.mxu0 %v7291_v34  ;;  %4509 = vmatpush1.bf16.msra.mxu1 %v7293_v11 }
 0xc29   :  { %4469 = vmatprep.subr.bf16.mxu0 %v7297_v44  ;;  %4510 = vmatprep.subr.bf16.mxu1 %v7299_v22 }
 0xc2c   :  { %4470 = vmatpush1.bf16.msra.mxu0 %v7303_v8  ;;  %4511 = vmatpush1.bf16.msra.mxu1 %v7305_v16 }
 0xc2d   :  { %4572 = vmatprep.subr.bf16.mxu0 %v7215_v55  ;;  %4613 = vmatprep.subr.bf16.mxu1 %v7217_v56 }
 0xce2   :  { %v4372_v59 = vpop.f32.mrb[76].mxu0  ;;  %v4413_v60 = vpop.f32.mrb[76].mxu1 }
 0xce3   :  { %v4420_v63 = vadd.f32 %v4372_v59, %v4334_v57  ;;  %v4422_v41 = vadd.f32 %v4413_v60, %v4336_v58  ;;  %v4374_v42 = vpop.f32.mrb[77].mxu0  ;;  %v4415_v43 = vpop.f32.mrb[77].mxu1  ;;  %v7605_v57 = vld [vmem:[#allocation13 + $0x64] ss:$16 sps:$4 sm:$0xff]   ;;  %v7608_v58 = vld [vmem:[#allocation13 + $0x6c] ss:$16 sps:$4 sm:$0xff]  }
 0xce4   :  { %v4421_v45 = vadd.f32 %v4374_v42, %v4335_v61  ;;  %v4423_v46 = vadd.f32 %v4415_v43, %v4337_v40  ;;  %v4376_v47 = vpop.f32.mrb[78].mxu0  ;;  %v4417_v55 = vpop.f32.mrb[78].mxu1  ;;  %v7611_v59 = vld [vmem:[#allocation13 + $0x60] ss:$16 sps:$4 sm:$0xff]   ;;  %v7614_v60 = vld [vmem:[#allocation13 + $0x68] ss:$16 sps:$4 sm:$0xff]  }
 0xce5   :  { %v5516_v48 = vmul.f32 -1.442695, %v4420_v63  ;;  %v4377_v56 = vpop.f32.mrb[79].mxu0  ;;  %v4418_v18 = vpop.f32.mrb[79].mxu1  ;;  %v5518_v5 = vmul.f32 -1.442695, %v4422_v41 }
 0xce6   :  { %v5517_v4 = vmul.f32 -1.442695, %v4421_v45 }
 0xce7   :  { %6078 = vpow2.f32 %v5516_v48 }
 0xce8   :  { %6080 = vpow2.f32 %v5517_v4 }
 0xce9   :  { %6082 = vtanh.f32 %v4423_v46 }
 0xcea   :  { %6084 = vpow2.f32 %v5518_v5 }
 0xcf1   :  { %v6079_v1 = vpop.eup %6078 }
 0xcf2   :  { %v4433_v3 = vadd.f32 1.0, %v6079_v1  ;;  %v6081_v52 = vpop.eup %6080 }
 0xcf3   :  { %v4434_v54 = vadd.f32 1.0, %v6081_v52  ;;  %v6083_v36 = vpop.eup %6082 }
 0xcf4   :  { %6086 = vrcp.f32 %v4433_v3  ;;  %v6085_v25 = vpop.eup %6084 }
 0xcf5   :  { %6088 = vrcp.f32 %v4434_v54  ;;  %v4435_v35 = vadd.f32 1.0, %v6085_v25  ;;  %v7666_v25 = vld [vmem:[#allocation13 + $0x8c] ss:$16 sps:$4 sm:$0xff]  }
 0xcf7   :  { %6090 = vrcp.f32 %v4435_v35  ;;  %v7678_v35 = vld [vmem:[#allocation13 + $0xac] ss:$16 sps:$4 sm:$0xff]  }
 0xcfe   :  { %v6087_v26 = vpop.eup %6086 }
 0xcff   :  { %v4444_v27 = vmul.f32 %v6087_v26, %v6083_v36  ;;  %v6089_v23 = vpop.eup %6088  ;;  %v7663_v36 = vld [vmem:[#allocation13 + $0x84] ss:$16 sps:$4 sm:$0xff]   ;;  %v7669_v26 = vld [vmem:[#allocation13 + $0x80] ss:$16 sps:$4 sm:$0xff]  }
 0xd00   :  { %v4443_v0 = vmul.f32 %v6089_v23, %v7528_v38  ;;  %v7590_v38 = vld [vmem:[#allocation13 + $0x28] ss:$16 sps:$4 sm:$0xff]   ;;  %v7675_v23 = vld [vmem:[#allocation13 + $0xa4] ss:$16 sps:$4 sm:$0xff]  }
 0xd01   :  { %v6091_v39 = vpop.eup %6090 }
 0xd02   :  { %v7570_v29 = vadd.f32 %v4444_v27, %v4443_v0  ;;  %v7672_v27 = vld [vmem:[#allocation13 + $0x88] ss:$16 sps:$4 sm:$0xff]   ;;  %v7681_v0 = vld [vmem:[#allocation13 + $0xa0] ss:$16 sps:$4 sm:$0xff]  }
 0xd04   :  { %6092 = vtanh.f32 %v7570_v29 }
 0xd0e   :  { %v6093_v21 = vpop.eup %6092 }
 0xd0f   :  { %v4447_v24 = vmul.f32 %v6093_v21, %v6091_v39  ;;  %v7687_v39 = vld [vmem:[#allocation13 + $0xc4] ss:$16 sps:$4 sm:$0xff]   ;;  %v7690_v21 = vld [vmem:[#allocation13 + $0xcc] ss:$16 sps:$4 sm:$0xff]  }
 0xd11   :  { %v4448_v51 = vpack.c.bf16 %v4447_v24, %v4447_v24  ;;  %v7693_v24 = vld [vmem:[#allocation13 + $0xc0] ss:$16 sps:$4 sm:$0xff]  }
 0xd13   :  { %4488 = vmatmul.mubr.bf16.vlgmr.msra.gmra.mrb[80].mxu0 %v4448_v51  ;;  %4529 = vmatmul.mubr.bf16.vlgmr.msra.gmra.mrb[80].mxu1 %v4448_v51  ;;  %v7696_v51 = vld [vmem:[#allocation13 + $0xc8] ss:$16 sps:$4 sm:$0xff]  }
 0xd14   :  { %4573 = vmatpush1.bf16.msra.mxu0 %v7573_v13  ;;  %4614 = vmatpush1.bf16.msra.mxu1 %v7576_v17 }
 0xd15   :  { %4574 = vmatprep.subr.bf16.mxu0 %v7579_v2  ;;  %4615 = vmatprep.subr.bf16.mxu1 %v7582_v37 }
 0xd16   :  { %4604 = vmatprep.mubr.bf16.mxu0 %v7840_v19  ;;  %4645 = vmatprep.mubr.bf16.mxu1 %v7840_v19 }
 0xd18   :  { %4575 = vmatpush1.bf16.msra.mxu0 %v7587_v6  ;;  %4616 = vmatpush1.bf16.msra.mxu1 %v7590_v38 }
 0xd19   :  { %4576 = vmatprep.subr.bf16.mxu0 %v7593_v31  ;;  %4617 = vmatprep.subr.bf16.mxu1 %v7596_v28 }
 0xd1c   :  { %4577 = vmatpush1.bf16.msra.mxu0 %v7599_v7  ;;  %4618 = vmatpush1.bf16.msra.mxu1 %v7602_v30 }
 0xd1d   :  { %4578 = vmatprep.subr.bf16.mxu0 %v7605_v57  ;;  %4619 = vmatprep.subr.bf16.mxu1 %v7608_v58 }
 0xd20   :  { %4579 = vmatpush1.bf16.msra.mxu0 %v7611_v59  ;;  %4620 = vmatpush1.bf16.msra.mxu1 %v7614_v60 }
 0xd21   :  { %4580 = vmatprep.subr.bf16.mxu0 %v7263_v32  ;;  %4621 = vmatprep.subr.bf16.mxu1 %v7265_v49  ;;  %v7633_v32 = vld [vmem:[#allocation13 + $0x4] ss:$16 sps:$4 sm:$0xff]   ;;  %v7636_v49 = vld [vmem:[#allocation13 + $0xc] ss:$16 sps:$4 sm:$0xff]  }
 0xd24   :  { %4581 = vmatpush1.bf16.msra.mxu0 %v7267_v50  ;;  %4622 = vmatpush1.bf16.msra.mxu1 %v7269_v53  ;;  %v4451_v50 = vunpack.c.l.bf16 %v7372_v14  ;;  %v4453_v53 = vunpack.c.l.bf16 %v7374_v12 }
 0xd25   :  { %4582 = vmatprep.subr.bf16.mxu0 %v7275_v62  ;;  %4623 = vmatprep.subr.bf16.mxu1 %v7277_v33 }
 0xd28   :  { %4583 = vmatpush1.bf16.msra.mxu0 %v7279_v9  ;;  %4624 = vmatpush1.bf16.msra.mxu1 %v7281_v10  ;;  %v4452_v9 = vunpack.c.h.bf16 %v7372_v14  ;;  %v4454_v10 = vunpack.c.h.bf16 %v7374_v12 }
 0xd29   :  { %4584 = vmatprep.subr.bf16.mxu0 %v7287_v15  ;;  %4625 = vmatprep.subr.bf16.mxu1 %v7289_v20 }
 0xd2c   :  { %4585 = vmatpush1.bf16.msra.mxu0 %v7291_v34  ;;  %4626 = vmatpush1.bf16.msra.mxu1 %v7293_v11 }
 0xd2d   :  { %4586 = vmatprep.subr.bf16.mxu0 %v7297_v44  ;;  %4627 = vmatprep.subr.bf16.mxu1 %v7299_v22 }
 0xd30   :  { %4587 = vmatpush1.bf16.msra.mxu0 %v7303_v8  ;;  %4628 = vmatpush1.bf16.msra.mxu1 %v7305_v16 }
 0xd31   :  { %4689 = vmatprep.subr.bf16.mxu0 %v7633_v32  ;;  %4730 = vmatprep.subr.bf16.mxu1 %v7636_v49 }
 0xde6   :  { %v4489_v62 = vpop.f32.mrb[80].mxu0  ;;  %v4530_v33 = vpop.f32.mrb[80].mxu1 }
 0xde7   :  { %v4537_v15 = vadd.f32 %v4489_v62, %v4451_v50  ;;  %v4539_v20 = vadd.f32 %v4530_v33, %v4453_v53  ;;  %v4491_v34 = vpop.f32.mrb[81].mxu0  ;;  %v4532_v11 = vpop.f32.mrb[81].mxu1  ;;  %v7699_v50 = vld [vmem:[#allocation13 + $0xe4] ss:$16 sps:$4 sm:$0xff]   ;;  %v7702_v53 = vld [vmem:[#allocation13 + $0xec] ss:$16 sps:$4 sm:$0xff]  }
 0xde8   :  { %v4538_v44 = vadd.f32 %v4491_v34, %v4452_v9  ;;  %v4540_v22 = vadd.f32 %v4532_v11, %v4454_v10  ;;  %v4493_v8 = vpop.f32.mrb[82].mxu0  ;;  %v4534_v16 = vpop.f32.mrb[82].mxu1  ;;  %v7705_v62 = vld [vmem:[#allocation13 + $0xe0] ss:$16 sps:$4 sm:$0xff]   ;;  %v7708_v33 = vld [vmem:[#allocation13 + $0xe8] ss:$16 sps:$4 sm:$0xff]  }
 0xde9   :  { %v5519_v61 = vmul.f32 -1.442695, %v4537_v15  ;;  %v4494_v40 = vpop.f32.mrb[83].mxu0  ;;  %v4535_v63 = vpop.f32.mrb[83].mxu1  ;;  %v5521_v42 = vmul.f32 -1.442695, %v4539_v20 }
 0xdea   :  { %v5520_v41 = vmul.f32 -1.442695, %v4538_v44  ;;  %v7855_v9 = vld [vmem:[#allocation30_spill] sm:$0xff]  ;;  %v7856_v15 = vld [vmem:[#allocation31_spill] sm:$0xff] }
 0xdeb   :  { %6094 = vpow2.f32 %v5519_v61  ;;  %v4568_v10 = vunpack.c.l.bf16 %v7855_v9  ;;  %v4570_v20 = vunpack.c.l.bf16 %v7856_v15  ;;  %v4569_v44 = vunpack.c.h.bf16 %v7855_v9 }
 0xdec   :  { %6096 = vpow2.f32 %v5520_v41 }
 0xded   :  { %6098 = vtanh.f32 %v4540_v22  ;;  %v4571_v22 = vunpack.c.h.bf16 %v7856_v15 }
 0xdee   :  { %6100 = vpow2.f32 %v5521_v42 }
 0xdf5   :  { %v6095_v43 = vpop.eup %6094 }
 0xdf6   :  { %v4550_v45 = vadd.f32 1.0, %v6095_v43  ;;  %v6097_v14 = vpop.eup %6096 }
 0xdf7   :  { %v4551_v12 = vadd.f32 1.0, %v6097_v14  ;;  %v6099_v46 = vpop.eup %6098 }
 0xdf8   :  { %6102 = vrcp.f32 %v4550_v45  ;;  %v6101_v47 = vpop.eup %6100 }
 0xdf9   :  { %6104 = vrcp.f32 %v4551_v12  ;;  %v4552_v18 = vadd.f32 1.0, %v6101_v47 }
 0xdfb   :  { %6106 = vrcp.f32 %v4552_v18 }
 0xe02   :  { %v6103_v55 = vpop.eup %6102 }
 0xe03   :  { %v4561_v48 = vmul.f32 %v6103_v55, %v6099_v46  ;;  %v6105_v56 = vpop.eup %6104 }
 0xe04   :  { %v4560_v4 = vmul.f32 %v6105_v56, %v7570_v29  ;;  %v7684_v29 = vld [vmem:[#allocation13 + $0xa8] ss:$16 sps:$4 sm:$0xff]  }
 0xe05   :  { %v6107_v1 = vpop.eup %6106 }
 0xe06   :  { %v7644_v5 = vadd.f32 %v4561_v48, %v4560_v4 }
 0xe08   :  { %6108 = vtanh.f32 %v7644_v5 }
 0xe12   :  { %v6109_v3 = vpop.eup %6108 }
 0xe13   :  { %v4564_v52 = vmul.f32 %v6109_v3, %v6107_v1 }
 0xe15   :  { %v4565_v54 = vpack.c.bf16 %v4564_v52, %v4564_v52 }
 0xe17   :  { %4605 = vmatmul.mubr.bf16.vlgmr.msra.gmra.mrb[84].mxu0 %v4565_v54  ;;  %4646 = vmatmul.mubr.bf16.vlgmr.msra.gmra.mrb[84].mxu1 %v4565_v54 }
 0xe18   :  { %4690 = vmatpush1.bf16.msra.mxu0 %v7573_v13  ;;  %4731 = vmatpush1.bf16.msra.mxu1 %v7576_v17 }
 0xe19   :  { %4691 = vmatprep.subr.bf16.mxu0 %v7579_v2  ;;  %4732 = vmatprep.subr.bf16.mxu1 %v7582_v37 }
 0xe1a   :  { %4721 = vmatprep.mubr.bf16.mxu0 %v7840_v19  ;;  %4762 = vmatprep.mubr.bf16.mxu1 %v7840_v19 }
 0xe1c   :  { %4692 = vmatpush1.bf16.msra.mxu0 %v7587_v6  ;;  %4733 = vmatpush1.bf16.msra.mxu1 %v7590_v38 }
 0xe1d   :  { %4693 = vmatprep.subr.bf16.mxu0 %v7593_v31  ;;  %4734 = vmatprep.subr.bf16.mxu1 %v7596_v28 }
 0xe20   :  { %4694 = vmatpush1.bf16.msra.mxu0 %v7599_v7  ;;  %4735 = vmatpush1.bf16.msra.mxu1 %v7602_v30 }
 0xe21   :  { %4695 = vmatprep.subr.bf16.mxu0 %v7605_v57  ;;  %4736 = vmatprep.subr.bf16.mxu1 %v7608_v58 }
 0xe24   :  { %4696 = vmatpush1.bf16.msra.mxu0 %v7611_v59  ;;  %4737 = vmatpush1.bf16.msra.mxu1 %v7614_v60 }
 0xe25   :  { %4697 = vmatprep.subr.bf16.mxu0 %v7663_v36  ;;  %4738 = vmatprep.subr.bf16.mxu1 %v7666_v25 }
 0xe28   :  { %4698 = vmatpush1.bf16.msra.mxu0 %v7669_v26  ;;  %4739 = vmatpush1.bf16.msra.mxu1 %v7672_v27 }
 0xe29   :  { %4699 = vmatprep.subr.bf16.mxu0 %v7675_v23  ;;  %4740 = vmatprep.subr.bf16.mxu1 %v7678_v35 }
 0xe2c   :  { %4700 = vmatpush1.bf16.msra.mxu0 %v7681_v0  ;;  %4741 = vmatpush1.bf16.msra.mxu1 %v7684_v29 }
 0xe2d   :  { %4701 = vmatprep.subr.bf16.mxu0 %v7687_v39  ;;  %4742 = vmatprep.subr.bf16.mxu1 %v7690_v21 }
 0xe30   :  { %4702 = vmatpush1.bf16.msra.mxu0 %v7693_v24  ;;  %4743 = vmatpush1.bf16.msra.mxu1 %v7696_v51 }
 0xe31   :  { %4703 = vmatprep.subr.bf16.mxu0 %v7699_v50  ;;  %4744 = vmatprep.subr.bf16.mxu1 %v7702_v53 }
 0xe34   :  { %4704 = vmatpush1.bf16.msra.mxu0 %v7705_v62  ;;  %4745 = vmatpush1.bf16.msra.mxu1 %v7708_v33 }
 0xe35   :  { %4806 = vmatprep.subr.bf16.mxu0 %v7633_v32  ;;  %4847 = vmatprep.subr.bf16.mxu1 %v7636_v49 }
 0xeea   :  { %v4606_v34 = vpop.f32.mrb[84].mxu0  ;;  %v4647_v11 = vpop.f32.mrb[84].mxu1 }
 0xeeb   :  { %v4654_v8 = vadd.f32 %v4606_v34, %v4568_v10  ;;  %v4656_v16 = vadd.f32 %v4647_v11, %v4570_v20  ;;  %v4608_v61 = vpop.f32.mrb[85].mxu0  ;;  %v4649_v40 = vpop.f32.mrb[85].mxu1 }
 0xeec   :  { %v4655_v63 = vadd.f32 %v4608_v61, %v4569_v44  ;;  %v4657_v41 = vadd.f32 %v4649_v40, %v4571_v22  ;;  %v4610_v42 = vpop.f32.mrb[86].mxu0  ;;  %v4651_v32 = vpop.f32.mrb[86].mxu1  ;;  %v5894_v61 = vld [vmem:[#allocation16] sm:$0xff]   ;;  %v6463_v40 = vmov 0.0  }
 0xeed   :  { %v5522_v43 = vmul.f32 -1.442695, %v4654_v8  ;;  %v4611_v49 = vpop.f32.mrb[87].mxu0  ;;  %v4652_v45 = vpop.f32.mrb[87].mxu1  ;;  %v5524_v12 = vmul.f32 -1.442695, %v4656_v16 }
 0xeee   :  { %v5523_v14 = vmul.f32 -1.442695, %v4655_v63  ;;  %v5895_v63 = vld [vmem:[#allocation16 + $0x8] sm:$0xff]   ;;  %v5897_v42 = vld [vmem:[#allocation16 + $0x18] sm:$0xff]   ;;  %v5898_v32 = vld [vmem:[#allocation16 + $0x20] sm:$0xff]  }
 0xeef   :  { %6110 = vpow2.f32 %v5522_v43  ;;  %v5899_v43 = vld [vmem:[#allocation16 + $0x28] sm:$0xff]   ;;  %v5900_v49 = vld [vmem:[#allocation16 + $0x30] sm:$0xff]   ;;  %v5901_v45 = vld [vmem:[#allocation16 + $0x38] sm:$0xff]  }
 0xef0   :  { %6112 = vpow2.f32 %v5523_v14  ;;  %v7859_v14 = vld [vmem:[#allocation33_spill] sm:$0xff] }
 0xef1   :  { %6114 = vtanh.f32 %v4657_v41  ;;  %v5896_v41 = vld [vmem:[#allocation16 + $0x10] sm:$0xff]  }
 0xef2   :  { %6116 = vpow2.f32 %v5524_v12  ;;  %v4802_v12 = vunpack.c.l.bf16 %v7859_v14 }
 0xef9   :  { %v6111_v46 = vpop.eup %6110 }
 0xefa   :  { %v4667_v47 = vadd.f32 1.0, %v6111_v46  ;;  %v6113_v55 = vpop.eup %6112  ;;  %v7860_v46 = vld [vmem:[#allocation34_spill] sm:$0xff] }
 0xefb   :  { %v4668_v48 = vadd.f32 1.0, %v6113_v55  ;;  %v6115_v56 = vpop.eup %6114 }
 0xefc   :  { %6118 = vrcp.f32 %v4667_v47  ;;  %v6117_v18 = vpop.eup %6116  ;;  %v4804_v47 = vunpack.c.l.bf16 %v7860_v46 }
 0xefd   :  { %6120 = vrcp.f32 %v4668_v48  ;;  %v4669_v52 = vadd.f32 1.0, %v6117_v18  ;;  %v4805_v18 = vunpack.c.h.bf16 %v7860_v46 }
 0xeff   :  { %6122 = vrcp.f32 %v4669_v52 }
 0xf06   :  { %v6119_v4 = vpop.eup %6118 }
 0xf07   :  { %v4678_v1 = vmul.f32 %v6119_v4, %v6115_v56  ;;  %v6121_v3 = vpop.eup %6120  ;;  %v4803_v56 = vunpack.c.h.bf16 %v7859_v14 }
 0xf08   :  { %v4677_v54 = vmul.f32 %v6121_v3, %v7644_v5 }
 0xf09   :  { %v6123_v10 = vpop.eup %6122 }
 0xf0a   :  { %v7718_v9 = vadd.f32 %v4678_v1, %v4677_v54 }
 0xf0c   :  { %6124 = vtanh.f32 %v7718_v9 }
 0xf16   :  { %v6125_v15 = vpop.eup %6124 }
 0xf17   :  { %v4681_v20 = vmul.f32 %v6125_v15, %v6123_v10 }
 0xf19   :  { %v4682_v34 = vpack.c.bf16 %v4681_v20, %v4681_v20 }
 0xf1b   :  { %4722 = vmatmul.mubr.bf16.vlgmr.msra.gmra.mrb[88].mxu0 %v4682_v34  ;;  %4763 = vmatmul.mubr.bf16.vlgmr.msra.gmra.mrb[88].mxu1 %v4682_v34 }
 0xf1c   :  { %4807 = vmatpush1.bf16.msra.mxu0 %v7573_v13  ;;  %4848 = vmatpush1.bf16.msra.mxu1 %v7576_v17  ;;  %v7858_v17 = vld [vmem:[#allocation29_spill] sm:$0xff] }
 0xf1d   :  { %4808 = vmatprep.subr.bf16.mxu0 %v7579_v2  ;;  %4849 = vmatprep.subr.bf16.mxu1 %v7582_v37  ;;  %v4687_v2 = vunpack.c.l.bf16 %v7858_v17 }
 0xf1e   :  { %4838 = vmatprep.mubr.bf16.mxu0 %v7840_v19  ;;  %4879 = vmatprep.mubr.bf16.mxu1 %v7840_v19  ;;  %v7857_v19 = vld [vmem:[#allocation32_spill] sm:$0xff] }
 0xf1f   :  { %v4685_v13 = vunpack.c.l.bf16 %v7857_v19 }
 0xf20   :  { %4809 = vmatpush1.bf16.msra.mxu0 %v7587_v6  ;;  %4850 = vmatpush1.bf16.msra.mxu1 %v7590_v38  ;;  %v4686_v38 = vunpack.c.h.bf16 %v7857_v19 }
 0xf21   :  { %4810 = vmatprep.subr.bf16.mxu0 %v7593_v31  ;;  %4851 = vmatprep.subr.bf16.mxu1 %v7596_v28  ;;  %v4688_v31 = vunpack.c.h.bf16 %v7858_v17 }
 0xf24   :  { %4811 = vmatpush1.bf16.msra.mxu0 %v7599_v7  ;;  %4852 = vmatpush1.bf16.msra.mxu1 %v7602_v30 }
 0xf25   :  { %4812 = vmatprep.subr.bf16.mxu0 %v7605_v57  ;;  %4853 = vmatprep.subr.bf16.mxu1 %v7608_v58 }
 0xf28   :  { %4813 = vmatpush1.bf16.msra.mxu0 %v7611_v59  ;;  %4854 = vmatpush1.bf16.msra.mxu1 %v7614_v60 }
 0xf29   :  { %4814 = vmatprep.subr.bf16.mxu0 %v7663_v36  ;;  %4855 = vmatprep.subr.bf16.mxu1 %v7666_v25 }
 0xf2c   :  { %4815 = vmatpush1.bf16.msra.mxu0 %v7669_v26  ;;  %4856 = vmatpush1.bf16.msra.mxu1 %v7672_v27 }
 0xf2d   :  { %4816 = vmatprep.subr.bf16.mxu0 %v7675_v23  ;;  %4857 = vmatprep.subr.bf16.mxu1 %v7678_v35 }
 0xf30   :  { %4817 = vmatpush1.bf16.msra.mxu0 %v7681_v0  ;;  %4858 = vmatpush1.bf16.msra.mxu1 %v7684_v29 }
 0xf31   :  { %4818 = vmatprep.subr.bf16.mxu0 %v7687_v39  ;;  %4859 = vmatprep.subr.bf16.mxu1 %v7690_v21 }
 0xf34   :  { %4819 = vmatpush1.bf16.msra.mxu0 %v7693_v24  ;;  %4860 = vmatpush1.bf16.msra.mxu1 %v7696_v51 }
 0xf35   :  { %4820 = vmatprep.subr.bf16.mxu0 %v7699_v50  ;;  %4861 = vmatprep.subr.bf16.mxu1 %v7702_v53 }
 0xf38   :  { %4821 = vmatpush1.bf16.msra.mxu0 %v7705_v62  ;;  %4862 = vmatpush1.bf16.msra.mxu1 %v7708_v33 }
 0xf39   :  { %5582 = vmatprep.subr.bf16.mxu0 %v6463_v40 }
 0xfee   :  { %v4723_v37 = vpop.f32.mrb[88].mxu0  ;;  %v4764_v6 = vpop.f32.mrb[88].mxu1 }
 0xfef   :  { %v4771_v28 = vadd.f32 %v4723_v37, %v4685_v13  ;;  %v4773_v7 = vadd.f32 %v4764_v6, %v4687_v2  ;;  %v4725_v30 = vpop.f32.mrb[89].mxu0  ;;  %v4766_v57 = vpop.f32.mrb[89].mxu1 }
 0xff0   :  { %v4772_v58 = vadd.f32 %v4725_v30, %v4686_v38  ;;  %v4774_v59 = vadd.f32 %v4766_v57, %v4688_v31  ;;  %v4727_v60 = vpop.f32.mrb[90].mxu0  ;;  %v4768_v5 = vpop.f32.mrb[90].mxu1 }
 0xff1   :  { %v5525_v36 = vmul.f32 -1.442695, %v4771_v28  ;;  %v4728_v25 = vpop.f32.mrb[91].mxu0  ;;  %v4769_v26 = vpop.f32.mrb[91].mxu1  ;;  %v5527_v23 = vmul.f32 -1.442695, %v4773_v7 }
 0xff2   :  { %v5526_v27 = vmul.f32 -1.442695, %v4772_v58 }
 0xff3   :  { %6126 = vpow2.f32 %v5525_v36 }
 0xff4   :  { %6128 = vpow2.f32 %v5526_v27 }
 0xff5   :  { %6130 = vtanh.f32 %v4774_v59 }
 0xff6   :  { %6132 = vpow2.f32 %v5527_v23 }
 0xffd   :  { %v6127_v35 = vpop.eup %6126 }
 0xffe   :  { %v4784_v0 = vadd.f32 1.0, %v6127_v35  ;;  %v6129_v29 = vpop.eup %6128 }
 0xfff   :  { %v4785_v39 = vadd.f32 1.0, %v6129_v29  ;;  %v6131_v21 = vpop.eup %6130 }
0x1000   :  { %6134 = vrcp.f32 %v4784_v0  ;;  %v6133_v24 = vpop.eup %6132 }
0x1001   :  { %6136 = vrcp.f32 %v4785_v39  ;;  %v4786_v62 = vadd.f32 1.0, %v6133_v24 }
0x1003   :  { %6138 = vrcp.f32 %v4786_v62 }
0x100a   :  { %v6135_v51 = vpop.eup %6134 }
0x100b   :  { %v4795_v50 = vmul.f32 %v6135_v51, %v6131_v21  ;;  %v6137_v53 = vpop.eup %6136 }
0x100c   :  { %v4794_v33 = vmul.f32 %v6137_v53, %v7718_v9 }
0x100d   :  { %v6139_v44 = vpop.eup %6138 }
0x100e   :  { %v7758_v11 = vadd.f32 %v4795_v50, %v4794_v33 }
0x1010   :  { %6140 = vtanh.f32 %v7758_v11 }
0x101a   :  { %v6141_v22 = vpop.eup %6140 }
0x101b   :  { %v4798_v8 = vmul.f32 %v6141_v22, %v6139_v44 }
0x101d   :  { %v4799_v16 = vpack.c.bf16 %v4798_v8, %v4798_v8 }
0x101f   :  { %4839 = vmatmul.mubr.bf16.vlgmr.msra.gmra.mrb[92].mxu0 %v4799_v16  ;;  %4880 = vmatmul.mubr.bf16.vlgmr.msra.gmra.mrb[92].mxu1 %v4799_v16 }
0x1020   :  { %5583 = vmatpush3.bf16.msra.mxu0 %v5894_v61  ;;  %5598 = vmatprep.mubr.msk.bf16.mxu0 %vm6464_vm0, %v6463_v40 }
0x1021   :  { %5584 = vmatprep.subr.bf16.mxu0 %v6463_v40 }
0x1024   :  { %5585 = vmatpush3.bf16.msra.mxu0 %v5895_v63 }
0x1025   :  { %5586 = vmatprep.subr.bf16.mxu0 %v6463_v40 }
0x1028   :  { %5587 = vmatpush3.bf16.msra.mxu0 %v5896_v41 }
0x1029   :  { %5588 = vmatprep.subr.bf16.mxu0 %v6463_v40 }
0x102c   :  { %5589 = vmatpush3.bf16.msra.mxu0 %v5897_v42 }
0x102d   :  { %5590 = vmatprep.subr.bf16.mxu0 %v6463_v40 }
0x1030   :  { %5591 = vmatpush3.bf16.msra.mxu0 %v5898_v32 }
0x1031   :  { %5592 = vmatprep.subr.bf16.mxu0 %v6463_v40 }
0x1034   :  { %5593 = vmatpush3.bf16.msra.mxu0 %v5899_v43 }
0x1035   :  { %5594 = vmatprep.subr.bf16.mxu0 %v6463_v40 }
0x1038   :  { %5595 = vmatpush3.bf16.msra.mxu0 %v5900_v49 }
0x1039   :  { %5596 = vmatprep.subr.bf16.mxu0 %v6463_v40 }
0x103c   :  { %5597 = vmatpush3.bf16.msra.mxu0 %v5901_v45 }
0x10f2   :  { %v4840_v55 = vpop.f32.mrb[92].mxu0  ;;  %v4881_v48 = vpop.f32.mrb[92].mxu1 }
0x10f3   :  { %v4888_v4 = vadd.f32 %v4840_v55, %v4802_v12  ;;  %v4890_v1 = vadd.f32 %v4881_v48, %v4804_v47  ;;  %v4842_v3 = vpop.f32.mrb[93].mxu0  ;;  %v4883_v52 = vpop.f32.mrb[93].mxu1 }
0x10f4   :  { %v4889_v54 = vadd.f32 %v4842_v3, %v4803_v56  ;;  %v4891_v9 = vadd.f32 %v4883_v52, %v4805_v18  ;;  %v4844_v10 = vpop.f32.mrb[94].mxu0  ;;  %v4885_v15 = vpop.f32.mrb[94].mxu1 }
0x10f5   :  { %v5528_v20 = vmul.f32 -1.442695, %v4888_v4  ;;  %v4845_v34 = vpop.f32.mrb[95].mxu0  ;;  %v4886_v19 = vpop.f32.mrb[95].mxu1  ;;  %v5530_v17 = vmul.f32 -1.442695, %v4890_v1 }
0x10f6   :  { %v5529_v13 = vmul.f32 -1.442695, %v4889_v54 }
0x10f7   :  { %6142 = vpow2.f32 %v5528_v20 }
0x10f8   :  { %6144 = vpow2.f32 %v5529_v13 }
0x10f9   :  { %6146 = vtanh.f32 %v4891_v9 }
0x10fa   :  { %6148 = vpow2.f32 %v5530_v17 }
0x1101   :  { %v6143_v2 = vpop.eup %6142 }
0x1102   :  { %v4901_v37 = vadd.f32 1.0, %v6143_v2  ;;  %v6145_v6 = vpop.eup %6144 }
0x1103   :  { %v4902_v38 = vadd.f32 1.0, %v6145_v6  ;;  %v6147_v31 = vpop.eup %6146 }
0x1104   :  { %6150 = vrcp.f32 %v4901_v37  ;;  %v6149_v28 = vpop.eup %6148 }
0x1105   :  { %6152 = vrcp.f32 %v4902_v38  ;;  %v4903_v58 = vadd.f32 1.0, %v6149_v28 }
0x1107   :  { %6154 = vrcp.f32 %v4903_v58 }
0x110e   :  { %v6151_v7 = vpop.eup %6150 }
0x110f   :  { %v4912_v30 = vmul.f32 %v6151_v7, %v6147_v31  ;;  %v6153_v57 = vpop.eup %6152 }
0x1110   :  { %v4911_v59 = vmul.f32 %v6153_v57, %v7758_v11 }
0x1111   :  { %v6155_v5 = vpop.eup %6154 }
0x1112   :  { %v4913_v60 = vadd.f32 %v4912_v30, %v4911_v59 }
0x1114   :  { %6156 = vtanh.f32 %v4913_v60  ;;  %4920 = vst [vmem:[#allocation21 + $0x8] sm:$0xff] %v4913_v60 }
0x111e   :  { %v6157_v36 = vpop.eup %6156 }
0x111f   :  { %v4915_v25 = vmul.f32 %v6157_v36, %v6155_v5 }
0x1121   :  { %v4916_v26 = vpack.c.bf16 %v4915_v25, %v4915_v25  ;;  %4918 = vst [vmem:[#allocation19 + $0x8] sm:$0xff] %v4915_v25 }
0x1123   :  { %5599 = vmatmul.mubr.bf16.vlgmr.msra.gmra.mrb[96].mxu0 %v4916_v26 }
0x1124   :  { %6381 = shalt.err (!%p6378_p12)
}
0x1125   :  { %s6382_s29 = scalar_lea.hbm %s7817_s12, 256 }
0x1126   :  { %p6383_p13 = scmp.ne.s32.totalorder %s7817_s12, %s6382_s29  ;;  %p6386_p0 = scmp.lt.u32.totalorder %s6382_s29, %s7817_s12 }
0x1128   :  { %p6388_p1 = pnand %p6386_p0, %p6383_p13 }
0x112a   :  { %6391 = shalt.err (!%p6388_p1)
}
0x112b   :  { %s6466_s3 = smov 128   ;;  %s6467_s14 = smov 8  }
0x112c   :  { %5060 = dma.vmem_to_hbm [thread:$0]  %s5055_s22, 256, %s7817_s12, [#allocation20], %s6466_s3, %s6466_s3, %s6467_s14  }
0x112d   :  { %s6468_s2 = smov [#allocation21]  }
0x112e   :  { %s5066_s30 = sshll.u32 %s6468_s2, 4  ;;  %s5067_s30 = int_to_ptr.vmem [resolvable:$true] %s5066_s30 }
0x112f   :  { %s6392_s26 = scalar_lea.vmem %s5067_s30, 256  ;;  %p6397_p3 = scmp.lt.s32.totalorder %s5067_s30, %s5067_s30 }
0x1130   :  { %p6393_p2 = scmp.ne.s32.totalorder %s5067_s30, %s6392_s26  ;;  %p6398_p4 = scmp.lt.s32.totalorder %s6392_s26, %s6392_s26 }
0x1132   :  { %p6399_p5 = por %p6398_p4, %p6397_p3 }
0x1134   :  { %p6400_p6 = pnand %p6399_p5, %p6393_p2 }
0x1136   :  { %6403 = shalt.err (!%p6400_p6)
}
0x1137   :  { %s6404_s7 = scalar_lea.hbm %s7818_s13, 256 }
0x1138   :  { %p6405_p7 = scmp.ne.s32.totalorder %s7818_s13, %s6404_s7  ;;  %p6408_p8 = scmp.lt.u32.totalorder %s6404_s7, %s7818_s13 }
0x113a   :  { %p6410_p9 = pnand %p6408_p8, %p6405_p7 }
0x113c   :  { %6413 = shalt.err (!%p6410_p9)
}
0x113d   :  { %5072 = dma.vmem_to_hbm [thread:$0]  %s5067_s30, 256, %s7818_s13, [#allocation20], %s6466_s3, %s6466_s3, %s6467_s14  }
0x113e   :  { %v5531_v27 = vld [vmem:[%s7813_s8] ss:$0 sm:$0xff]  ;;  %s6469_s10 = smov [#allocation18]  }
0x113f   :  { %s5045_s22 = sshll.u32 %s6469_s10, 4  ;;  %s5046_s22 = int_to_ptr.vmem [resolvable:$true] %s5045_s22 }
0x1140   :  { %s6414_s13 = scalar_lea.vmem %s5046_s22, 128  ;;  %p6419_p11 = scmp.lt.s32.totalorder %s5046_s22, %s5046_s22 }
0x1141   :  { %p6415_p10 = scmp.ne.s32.totalorder %s5046_s22, %s6414_s13  ;;  %p6420_p12 = scmp.lt.s32.totalorder %s6414_s13, %s6414_s13 }
0x1143   :  { %p6421_p13 = por %p6420_p12, %p6419_p11 }
0x1145   :  { %p6422_p0 = pnand %p6421_p13, %p6415_p10 }
0x11f6   :  { %v5026_v23 = vpop.f32.mrb[96].mxu0 }
0x11f7   :  { %v5027_v35 = vadd.f32 %v5531_v27, %v5026_v23  ;;  %v5600_v0 = vpop.f32.mrb[97].mxu0 }
0x11f8   :  { %v5029_v29 = vpop.f32.mrb[98].mxu0 }
0x11f9   :  { %v5540_v39 = vmul.f32 -1.442695, %v5027_v35  ;;  %v5601_v21 = vpop.f32.mrb[99].mxu0 }
0x11fb   :  { %6158 = vpow2.f32 %v5540_v39 }
0x1205   :  { %v6159_v24 = vpop.eup %6158 }
0x1206   :  { %v5035_v51 = vadd.f32 1.0, %v6159_v24 }
0x1208   :  { %6160 = vrcp.f32 %v5035_v51 }
0x1212   :  { %v6161_v50 = vpop.eup %6160 }
0x1213   :  { %5038 = vst [vmem:[#allocation18] sm:$0xff] %v6161_v50 }
0x1214   :  { %6425 = shalt.err (!%p6422_p0)
}
0x1215   :  { %s6426_s27 = scalar_lea.hbm %s7816_s11, 128 }
0x1216   :  { %p6427_p1 = scmp.ne.s32.totalorder %s7816_s11, %s6426_s27  ;;  %p6430_p2 = scmp.lt.u32.totalorder %s6426_s27, %s7816_s11 }
0x1218   :  { %p6432_p3 = pnand %p6430_p2, %p6427_p1 }
0x121a   :  { %6435 = shalt.err (!%p6432_p3)
}
0x121b   :  { %5048 = dma.vmem_to_hbm [thread:$0]  %s5046_s22, 128, %s7816_s11, [#allocation6]  }
0x121c   :  { %6446 = dma.done.wait [#allocation6], 128  }
0x121d   :  { %6447 = vsyncadd [#allocation6], 4294967168 }
0x121e   :  { %6448 = dma.done.wait [#allocation20], 512  }
0x121f   :  { %6449 = vsyncadd [#allocation20], 4294966784 }
0x1220   :  { %5082 = vsyncpa [#allocation5], 1 }
0x1221   :  { %5083 = vsyncpa [#allocation8], 1 }
0x1222   :  { %5084 = vsyncpa [#allocation11], 1 }
0x1223   :  { %5085 = vsyncpa [#allocation14], 1 }
0x1224   :  { %5086 = vsyncpa [#allocation17], 1 }
0x1225   :  { %5087 = vsyncpa [#allocation6], 1 }
0x1226   :  { %5088 = vsyncpa [#allocation20], 1 }

</bundles_post_ra>
